<compile_context>
chip_gen: v5e
topology: v5e:2x2
jax: 0.10.0
libtpu: 0.0.40
codegen_flags: <defaults>
</compile_context>

<pallas_src>
import functools

import jax
import jax.numpy as jnp
from jax.experimental import pallas as pl
from jax.experimental.pallas import tpu as pltpu

_VMEM_LIMIT = 32 * 1024 * 1024  # explicit scoped-VMEM budget (portable v5e/v6e/v7x)


def _round_up(x, m):
    return ((x + m - 1) // m) * m


def _pick_tile(dim_padded, cap=512):
    """Largest multiple-of-128 tile <= cap that divides dim_padded (itself a mult of 128)."""
    t = min(cap, dim_padded)
    while dim_padded % t:
        t -= 128
    return t


# ----------------------------------------------------------------------------
# Pallas kernels
# ----------------------------------------------------------------------------
def _matmul_kernel(a_ref, b_ref, o_ref, acc_ref, *, act):
    @pl.when(pl.program_id(2) == 0)
    def _():
        acc_ref[...] = jnp.zeros_like(acc_ref)

    acc_ref[...] += jnp.dot(a_ref[...], b_ref[...],
                            preferred_element_type=jnp.float32)

    @pl.when(pl.program_id(2) == pl.num_programs(2) - 1)
    def _():
        r = acc_ref[...]
        if act == "relu":
            r = jnp.maximum(r, 0.0)
        elif act == "tanh":
            r = jnp.tanh(r)
        o_ref[...] = r


def pallas_matmul(a, b, act=None):
    """(M, K) @ (K, N): bf16 MXU inputs, f32 accumulator, optional fused activation.

    Returns the full 128-padded (Mp, Np) f32 result (lane-dense output slab).
    Padded rows/cols of the inputs are zero, so padded outputs are act(0)."""
    M, K = a.shape
    K2, N = b.shape
    assert K == K2
    Mp, Kp, Np = _round_up(M, 128), _round_up(K, 128), _round_up(N, 128)
    tm, tk, tn = _pick_tile(Mp, 512), _pick_tile(Kp, 512), _pick_tile(Np, 512)
    # Cast to bf16 *before* padding so the staging copies are half-size.
    a_p = jnp.pad(a.astype(jnp.bfloat16), ((0, Mp - M), (0, Kp - K)))
    b_p = jnp.pad(b.astype(jnp.bfloat16), ((0, Kp - K), (0, Np - N)))

    return pl.pallas_call(
        functools.partial(_matmul_kernel, act=act),
        out_shape=jax.ShapeDtypeStruct((Mp, Np), jnp.float32),
        grid_spec=pltpu.PrefetchScalarGridSpec(
            num_scalar_prefetch=0,
            grid=(Mp // tm, Np // tn, Kp // tk),
            in_specs=[pl.BlockSpec((tm, tk), lambda i, j, k: (i, k)),
                      pl.BlockSpec((tk, tn), lambda i, j, k: (k, j))],
            out_specs=pl.BlockSpec((tm, tn), lambda i, j, k: (i, j)),
            scratch_shapes=[pltpu.VMEM((tm, tn), jnp.float32)],
        ),
        compiler_params=pltpu.CompilerParams(
            dimension_semantics=("parallel", "parallel", "arbitrary"),
            vmem_limit_bytes=_VMEM_LIMIT),
    )(a_p, b_p)


def _bn_stats_kernel(x_ref, sum_ref, ssq_ref):
    @pl.when(pl.program_id(0) == 0)
    def _():
        sum_ref[...] = jnp.zeros_like(sum_ref)
        ssq_ref[...] = jnp.zeros_like(ssq_ref)

    x = x_ref[...]
    sum_ref[...] += jnp.sum(x, axis=0, keepdims=True)
    ssq_ref[...] += jnp.sum(x * x, axis=0, keepdims=True)


def _bn_apply_kernel(x_ref, scale_ref, shift_ref, o_ref, *, act):
    y = x_ref[...] * scale_ref[...] + shift_ref[...]
    if act == "relu":
        y = jnp.maximum(y, 0.0)
    elif act == "tanh":
        y = jnp.tanh(y)
    o_ref[...] = y


def pallas_batchnorm_act(flat_p, true_m, gamma, beta, act, eps=1e-5):
    """Two-pass batch-norm (+activation) on a lane-dense (Mp, Np) slab.

    Rows >= true_m and channels >= len(gamma) must be zero: they contribute
    nothing to sum/sumsq (the divisor is the true row count) and their outputs
    are sliced away by the caller."""
    Mp, Np = flat_p.shape
    C = gamma.shape[0]
    tm = _pick_tile(Mp, 512)
    g = jnp.zeros((1, Np), jnp.float32).at[0, :C].set(gamma.astype(jnp.float32))
    b = jnp.zeros((1, Np), jnp.float32).at[0, :C].set(beta.astype(jnp.float32))

    # Pass 1: per-channel sum / sum-of-squares, accumulated over M tiles.
    s1, s2 = pl.pallas_call(
        _bn_stats_kernel,
        out_shape=(jax.ShapeDtypeStruct((1, Np), jnp.float32),
                   jax.ShapeDtypeStruct((1, Np), jnp.float32)),
        grid_spec=pltpu.PrefetchScalarGridSpec(
            num_scalar_prefetch=0,
            grid=(Mp // tm,),
            in_specs=[pl.BlockSpec((tm, Np), lambda i: (i, 0))],
            out_specs=[pl.BlockSpec((1, Np), lambda i: (0, 0)),
                       pl.BlockSpec((1, Np), lambda i: (0, 0))],
        ),
        compiler_params=pltpu.CompilerParams(
            dimension_semantics=("arbitrary",),
            vmem_limit_bytes=_VMEM_LIMIT),
    )(flat_p)

    inv_m = 1.0 / float(true_m)
    mean = s1 * inv_m
    var = jnp.maximum(s2 * inv_m - mean * mean, 0.0)     # biased variance (training-mode BN)
    scale = g * jax.lax.rsqrt(var + eps)
    shift = b - mean * scale

    # Pass 2: fused scale/shift + activation, tiled over M ("parallel").
    return pl.pallas_call(
        functools.partial(_bn_apply_kernel, act=act),
        out_shape=jax.ShapeDtypeStruct((Mp, Np), jnp.float32),
        grid_spec=pltpu.PrefetchScalarGridSpec(
            num_scalar_prefetch=0,
            grid=(Mp // tm,),
            in_specs=[pl.BlockSpec((tm, Np), lambda i: (i, 0)),
                      pl.BlockSpec((1, Np), lambda i: (0, 0)),
                      pl.BlockSpec((1, Np), lambda i: (0, 0))],
            out_specs=pl.BlockSpec((tm, Np), lambda i: (i, 0)),
        ),
        compiler_params=pltpu.CompilerParams(
            dimension_semantics=("parallel",),
            vmem_limit_bytes=_VMEM_LIMIT),
    )(flat_p, scale, shift)


# ----------------------------------------------------------------------------
# ConvTranspose2d lowerings (JAX glue for patch extraction, Pallas for matmul)
# ----------------------------------------------------------------------------
def _conv_transpose_dense(x_nhwc, w_t, k, s, p, fused_act):
    """General ConvTranspose2d: zero-dilate (if s>1) + pad + stride-1 im2col + matmul.
    Used for the stride-1 layers (no dilation waste there) and as a fallback."""
    N, H, W, Cin = x_nhwc.shape
    Cout = w_t.shape[1]
    if s > 1:  # fallback path; the s==2,k==4,p==1 layers use the sub-pixel path below
        Hd, Wd = (H - 1) * s + 1, (W - 1) * s + 1
        x_nhwc = jnp.zeros((N, Hd, Wd, Cin), x_nhwc.dtype).at[:, ::s, ::s, :].set(x_nhwc)
        H, W = Hd, Wd
    pad = k - 1 - p
    xp = jnp.pad(x_nhwc, ((0, 0), (pad, pad), (pad, pad), (0, 0)))
    OH = H + 2 * pad - k + 1
    OW = W + 2 * pad - k + 1
    # im2col with K ordering (kh, kw, cin)
    patches = [xp[:, dh:dh + OH, dw:dw + OW, :] for dh in range(k) for dw in range(k)]
    a = jnp.concatenate(patches, axis=-1).reshape(N * OH * OW, k * k * Cin)
    # spatially-flipped kernel, flattened to match (kh, kw, cin) ordering
    w_flat = w_t[:, :, ::-1, ::-1].transpose(2, 3, 0, 1).reshape(k * k * Cin, Cout)
    out = pallas_matmul(a, w_flat, act=fused_act)          # (Mp, Np) padded
    return out, OH, OW, N * OH * OW


def _conv_transpose_s2k4p1_subpixel(x_nhwc, w_t, fused_act):
    """ConvTranspose2d(k=4, s=2, p=1) as 4 dense stride-1 matmuls (one per output
    phase) on the un-dilated input, interleaved into the output -- ~4x fewer
    MXU FLOPs and ~4x less im2col traffic than the zero-dilation formulation."""
    N, H, W, Cin = x_nhwc.shape
    Cout = w_t.shape[1]
    OH, OW = 2 * H, 2 * W
    M = N * OH * OW
    phase_outs = []
    for r in (0, 1):                       # output row phase: oh = 2*i + r
        for c in (0, 1):                   # output col phase: ow = 2*j + c
            pad_h = (1, 0) if r == 0 else (0, 1)
            pad_w = (1, 0) if c == 0 else (0, 1)
            kh_off = [3, 1] if r == 0 else [2, 0]   # kernel tap for window offsets (0, 1)
            kw_off = [3, 1] if c == 0 else [2, 0]
            xp = jnp.pad(x_nhwc, ((0, 0), pad_h, pad_w, (0, 0)))
            patches = [xp[:, dh:dh + H, dw:dw + W, :] for dh in range(2) for dw in range(2)]
            a = jnp.concatenate(patches, axis=-1).reshape(N * H * W, 4 * Cin)
            w_ph = w_t[:, :, kh_off, :][:, :, :, kw_off]            # (Cin, Cout, 2, 2)
            w_flat = w_ph.transpose(2, 3, 0, 1).reshape(4 * Cin, Cout)
            out_ph = pallas_matmul(a, w_flat, act=fused_act)        # (Mp_ph, Np)
            phase_outs.append(out_ph[:N * H * W])                   # keep lane-dense Np
    Np = phase_outs[0].shape[-1]
    ph = jnp.stack(phase_outs, axis=0).reshape(2, 2, N, H, W, Np)
    y = ph.transpose(2, 3, 0, 4, 1, 5).reshape(N, OH, OW, Np)       # phase interleave
    flat = y.reshape(M, Np)
    Mp = _round_up(M, 128)
    if Mp != M:
        flat = jnp.pad(flat, ((0, Mp - M), (0, 0)))
    return flat, OH, OW, M


def apply_layer_nhwc(x_nhwc, w_t, gamma, beta, k, s, p, use_bn, act):
    N = x_nhwc.shape[0]
    Cout = w_t.shape[1]
    fused_act = None if use_bn else act    # fuse tanh of the final (no-BN) layer into the matmul
    if s == 2 and k == 4 and p == 1:
        flat_p, OH, OW, M = _conv_transpose_s2k4p1_subpixel(x_nhwc, w_t, fused_act)
    else:
        flat_p, OH, OW, M = _conv_transpose_dense(x_nhwc, w_t, k, s, p, fused_act)
    if use_bn:
        flat_p = pallas_batchnorm_act(flat_p, M, gamma, beta, act)
    return flat_p[:M, :Cout].reshape(N, OH, OW, Cout)


# ----------------------------------------------------------------------------
# Generator_DC_GAN equivalent
# ----------------------------------------------------------------------------
class GeneratorDCGANPallas:
    def __init__(self, In, Out, code, Kernel=4, Stride=2, Pad=1,
                 image_size=64, key=jax.random.PRNGKey(0)):
        assert image_size in (32, 64)
        # (Cin, Cout, k, s, p, use_bn, act)
        cfgs = [
            (code,    Out * 8, Kernel, Stride - 1, Pad - 1, True, "relu"),
            (Out * 8, Out * 4, Kernel, Stride,     Pad,     True, "relu"),
            (Out * 4, Out * 2, Kernel, Stride,     Pad,     True, "relu"),
            (Out * 2, Out,     Kernel, Stride,     Pad,     True, "relu"),
            (Out,     Out,     1,      1,          0,       True, "relu"),
        ]
        if image_size == 32:
            cfgs.append((Out, In, 3, 1, 1, False, "tanh"))
        else:  # 64
            cfgs.append((Out, In, Kernel, Stride, Pad, False, "tanh"))

        self.layers = []
        keys = jax.random.split(key, len(cfgs))
        for kk, (cin, cout, k, s, p, use_bn, act) in zip(keys, cfgs):
            w = 0.02 * jax.random.normal(kk, (cin, cout, k, k), jnp.float32)
            gamma = jnp.ones((cout,), jnp.float32)
            beta = jnp.zeros((cout,), jnp.float32)
            self.layers.append((w, gamma, beta, (k, s, p, use_bn, act)))

    def __call__(self, x_nchw):
        x = x_nchw.astype(jnp.float32).transpose(0, 2, 3, 1)   # NCHW -> NHWC once
        for w, gamma, beta, (k, s, p, use_bn, act) in self.layers:
            x = apply_layer_nhwc(x, w, gamma, beta, k, s, p, use_bn, act)
        return x.transpose(0, 3, 1, 2)                          # NHWC -> NCHW once


if __name__ == "__main__":
    # Small deterministic config: In=3 (RGB), Out=8 feature maps, code=16 latent dims,
    # image_size=64 (the module default). DCGAN latent input is (N, code, 1, 1).
    key = jax.random.PRNGKey(0)
    k_param, k_input = jax.random.split(key)

    In, Out, code, image_size = 3, 8, 16, 64
    gen = GeneratorDCGANPallas(In, Out, code, Kernel=4, Stride=2, Pad=1,
                               image_size=image_size, key=k_param)

    z = jax.random.normal(k_input, (2, code, 1, 1), jnp.float32)
    fwd = jax.jit(gen.__call__)
    img = fwd(z)
    img = jax.block_until_ready(img)

    assert img.shape == (2, In, image_size, image_size), img.shape
    assert bool(jnp.all(jnp.isfinite(img)))
    assert bool(jnp.all(jnp.abs(img) <= 1.0 + 1e-6))  # tanh range
    print("KERNEL_OK")
</pallas_src>

<mosaic_0001>
module attributes {stable_mosaic.version = 11 : i64} {
  func.func @_matmul_kernel(%arg0: i32, %arg1: i32, %arg2: i32, %arg3: memref<128x256xbf16, #tpu.memory_space<vmem>>, %arg4: memref<256x128xbf16, #tpu.memory_space<vmem>>, %arg5: memref<128x128xf32, #tpu.memory_space<vmem>>, %arg6: memref<128x128xf32, #tpu.memory_space<vmem>>) attributes {dimension_semantics = [#tpu.dimension_semantics<parallel>, #tpu.dimension_semantics<parallel>, #tpu.dimension_semantics<arbitrary>], iteration_bounds = array<i64: 1, 1, 1>, scalar_prefetch = 0 : i64, scratch_operands = 1 : i64, tpu.core_type = #tpu.core_type<tc>, window_params = [{transform_indices = @transform_0, window_bounds = array<i64: 128, 256>}, {transform_indices = @transform_1, window_bounds = array<i64: 256, 128>}, {transform_indices = @transform_2, window_bounds = array<i64: 128, 128>}]} {
    %c0_i32 = arith.constant 0 : i32
    %0 = arith.cmpi eq, %arg2, %c0_i32 : i32
    %1 = arith.extui %0 : i1 to i32
    %c0_i32_0 = arith.constant 0 : i32
    %2 = arith.cmpi ne, %1, %c0_i32_0 : i32
    scf.if %2 {
      %cst_10 = arith.constant 0.000000e+00 : f32
      %12 = vector.broadcast %cst_10 : f32 to vector<128x128xf32>
      %c0_11 = arith.constant 0 : index
      %c0_12 = arith.constant 0 : index
      %13 = vector.load %arg6[%c0_11, %c0_12] : memref<128x128xf32, #tpu.memory_space<vmem>>, vector<128x128xf32>
      tpu.vector_store %arg6[%c0_11, %c0_12], %12 {strides = array<i32>} : memref<128x128xf32, #tpu.memory_space<vmem>>, vector<128x128xf32>,
    } else {
    }
    %c0 = arith.constant 0 : index
    %c0_1 = arith.constant 0 : index
    %3 = vector.load %arg6[%c0, %c0_1] : memref<128x128xf32, #tpu.memory_space<vmem>>, vector<128x128xf32>
    %c0_2 = arith.constant 0 : index
    %c0_3 = arith.constant 0 : index
    %4 = vector.load %arg3[%c0_2, %c0_3] : memref<128x256xbf16, #tpu.memory_space<vmem>>, vector<128x256xbf16>
    %c0_4 = arith.constant 0 : index
    %c0_5 = arith.constant 0 : index
    %5 = vector.load %arg4[%c0_4, %c0_5] : memref<256x128xbf16, #tpu.memory_space<vmem>>, vector<256x128xbf16>
    %cst = arith.constant dense<0.000000e+00> : vector<128x128xf32>
    %6 = tpu.matmul %4, %5, %cst {dimension_numbers = #tpu.dot_dimension_numbers<[1], [0], [0], [1], [0, 0, 1, 1], [], []>} : vector<128x256xbf16>, vector<256x128xbf16>, vector<128x128xf32> -> vector<128x128xf32>
    %7 = arith.addf %3, %6 : vector<128x128xf32>
    %c0_6 = arith.constant 0 : index
    %c0_7 = arith.constant 0 : index
    %8 = vector.load %arg6[%c0_6, %c0_7] : memref<128x128xf32, #tpu.memory_space<vmem>>, vector<128x128xf32>
    tpu.vector_store %arg6[%c0_6, %c0_7], %7 {strides = array<i32>} : memref<128x128xf32, #tpu.memory_space<vmem>>, vector<128x128xf32>,
    %c0_i32_8 = arith.constant 0 : i32
    %9 = arith.cmpi eq, %arg2, %c0_i32_8 : i32
    %10 = arith.extui %9 : i1 to i32
    %c0_i32_9 = arith.constant 0 : i32
    %11 = arith.cmpi ne, %10, %c0_i32_9 : i32
    scf.if %11 {
      %c0_10 = arith.constant 0 : index
      %c0_11 = arith.constant 0 : index
      %12 = vector.load %arg6[%c0_10, %c0_11] : memref<128x128xf32, #tpu.memory_space<vmem>>, vector<128x128xf32>
      %c0_12 = arith.constant 0 : index
      %c0_13 = arith.constant 0 : index
      %13 = vector.load %arg5[%c0_12, %c0_13] : memref<128x128xf32, #tpu.memory_space<vmem>>, vector<128x128xf32>
      tpu.vector_store %arg5[%c0_12, %c0_13], %12 {strides = array<i32>} : memref<128x128xf32, #tpu.memory_space<vmem>>, vector<128x128xf32>,
    } else {
    }
    return
  }
  func.func @transform_0(%arg0: i32, %arg1: i32, %arg2: i32) -> (i32, i32) {
    %c0_i32 = arith.constant 0 : i32
    return %arg0, %arg2 : i32, i32
  }
  func.func @transform_1(%arg0: i32, %arg1: i32, %arg2: i32) -> (i32, i32) {
    %c0_i32 = arith.constant 0 : i32
    return %arg2, %arg1 : i32, i32
  }
  func.func @transform_2(%arg0: i32, %arg1: i32, %arg2: i32) -> (i32, i32) {
    %c0_i32 = arith.constant 0 : i32
    return %arg0, %arg1 : i32, i32
  }
}

module attributes {stable_mosaic.version = 11 : i64} {
  func.func @_bn_stats_kernel(%arg0: i32, %arg1: memref<128x128xf32, #tpu.memory_space<vmem>>, %arg2: memref<1x128xf32, #tpu.memory_space<vmem>>, %arg3: memref<1x128xf32, #tpu.memory_space<vmem>>) attributes {dimension_semantics = [#tpu.dimension_semantics<arbitrary>], iteration_bounds = array<i64: 1>, scalar_prefetch = 0 : i64, scratch_operands = 0 : i64, tpu.core_type = #tpu.core_type<tc>, window_params = [{transform_indices = @transform_0, window_bounds = array<i64: 128, 128>}, {pipeline_mode = #tpu.pipeline_mode<synchronous>, transform_indices = @transform_1, window_bounds = array<i64: 1, 128>}, {pipeline_mode = #tpu.pipeline_mode<synchronous>, transform_indices = @transform_2, window_bounds = array<i64: 1, 128>}]} {
    %c0_i32 = arith.constant 0 : i32
    %0 = arith.cmpi eq, %arg0, %c0_i32 : i32
    %1 = arith.extui %0 : i1 to i32
    %c0_i32_0 = arith.constant 0 : i32
    %2 = arith.cmpi ne, %1, %c0_i32_0 : i32
    scf.if %2 {
      %cst_11 = arith.constant 0.000000e+00 : f32
      %15 = vector.broadcast %cst_11 : f32 to vector<1x128xf32>
      %c0_12 = arith.constant 0 : index
      %c0_13 = arith.constant 0 : index
      %16 = vector.load %arg2[%c0_12, %c0_13] : memref<1x128xf32, #tpu.memory_space<vmem>>, vector<1x128xf32>
      tpu.vector_store %arg2[%c0_12, %c0_13], %15 {strides = array<i32>} : memref<1x128xf32, #tpu.memory_space<vmem>>, vector<1x128xf32>,
      %cst_14 = arith.constant 0.000000e+00 : f32
      %17 = vector.broadcast %cst_14 : f32 to vector<1x128xf32>
      %c0_15 = arith.constant 0 : index
      %c0_16 = arith.constant 0 : index
      %18 = vector.load %arg3[%c0_15, %c0_16] : memref<1x128xf32, #tpu.memory_space<vmem>>, vector<1x128xf32>
      tpu.vector_store %arg3[%c0_15, %c0_16], %17 {strides = array<i32>} : memref<1x128xf32, #tpu.memory_space<vmem>>, vector<1x128xf32>,
    } else {
    }
    %c0 = arith.constant 0 : index
    %c0_1 = arith.constant 0 : index
    %3 = vector.load %arg1[%c0, %c0_1] : memref<128x128xf32, #tpu.memory_space<vmem>>, vector<128x128xf32>
    %c0_2 = arith.constant 0 : index
    %c0_3 = arith.constant 0 : index
    %4 = vector.load %arg2[%c0_2, %c0_3] : memref<1x128xf32, #tpu.memory_space<vmem>>, vector<1x128xf32>
    %cst = arith.constant dense<0.000000e+00> : vector<128xf32>
    %5 = vector.multi_reduction <add>, %3, %cst [0] : vector<128x128xf32> to vector<128xf32>
    %6 = vector.shape_cast %5 : vector<128xf32> to vector<1x128xf32>
    %7 = arith.addf %4, %6 : vector<1x128xf32>
    %c0_4 = arith.constant 0 : index
    %c0_5 = arith.constant 0 : index
    %8 = vector.load %arg2[%c0_4, %c0_5] : memref<1x128xf32, #tpu.memory_space<vmem>>, vector<1x128xf32>
    tpu.vector_store %arg2[%c0_4, %c0_5], %7 {strides = array<i32>} : memref<1x128xf32, #tpu.memory_space<vmem>>, vector<1x128xf32>,
    %c0_6 = arith.constant 0 : index
    %c0_7 = arith.constant 0 : index
    %9 = vector.load %arg3[%c0_6, %c0_7] : memref<1x128xf32, #tpu.memory_space<vmem>>, vector<1x128xf32>
    %10 = arith.mulf %3, %3 : vector<128x128xf32>
    %cst_8 = arith.constant dense<0.000000e+00> : vector<128xf32>
    %11 = vector.multi_reduction <add>, %10, %cst_8 [0] : vector<128x128xf32> to vector<128xf32>
    %12 = vector.shape_cast %11 : vector<128xf32> to vector<1x128xf32>
    %13 = arith.addf %9, %12 : vector<1x128xf32>
    %c0_9 = arith.constant 0 : index
    %c0_10 = arith.constant 0 : index
    %14 = vector.load %arg3[%c0_9, %c0_10] : memref<1x128xf32, #tpu.memory_space<vmem>>, vector<1x128xf32>
    tpu.vector_store %arg3[%c0_9, %c0_10], %13 {strides = array<i32>} : memref<1x128xf32, #tpu.memory_space<vmem>>, vector<1x128xf32>,
    return
  }
  func.func @transform_0(%arg0: i32) -> (i32, i32) {
    %c0_i32 = arith.constant 0 : i32
    %c0_i32_0 = arith.constant 0 : i32
    return %arg0, %c0_i32 : i32, i32
  }
  func.func @transform_1(%arg0: i32) -> (i32, i32) {
    %c0_i32 = arith.constant 0 : i32
    %c0_i32_0 = arith.constant 0 : i32
    %c0_i32_1 = arith.constant 0 : i32
    return %c0_i32, %c0_i32_0 : i32, i32
  }
  func.func @transform_2(%arg0: i32) -> (i32, i32) {
    %c0_i32 = arith.constant 0 : i32
    %c0_i32_0 = arith.constant 0 : i32
    %c0_i32_1 = arith.constant 0 : i32
    return %c0_i32, %c0_i32_0 : i32, i32
  }
}

module attributes {stable_mosaic.version = 11 : i64} {
  func.func @_bn_apply_kernel(%arg0: i32, %arg1: memref<128x128xf32, #tpu.memory_space<vmem>>, %arg2: memref<1x128xf32, #tpu.memory_space<vmem>>, %arg3: memref<1x128xf32, #tpu.memory_space<vmem>>, %arg4: memref<128x128xf32, #tpu.memory_space<vmem>>) attributes {dimension_semantics = [#tpu.dimension_semantics<parallel>], iteration_bounds = array<i64: 1>, scalar_prefetch = 0 : i64, scratch_operands = 0 : i64, tpu.core_type = #tpu.core_type<tc>, window_params = [{transform_indices = @transform_0, window_bounds = array<i64: 128, 128>}, {pipeline_mode = #tpu.pipeline_mode<synchronous>, transform_indices = @transform_1, window_bounds = array<i64: 1, 128>}, {pipeline_mode = #tpu.pipeline_mode<synchronous>, transform_indices = @transform_2, window_bounds = array<i64: 1, 128>}, {transform_indices = @transform_3, window_bounds = array<i64: 128, 128>}]} {
    %c0 = arith.constant 0 : index
    %c0_0 = arith.constant 0 : index
    %0 = vector.load %arg1[%c0, %c0_0] : memref<128x128xf32, #tpu.memory_space<vmem>>, vector<128x128xf32>
    %c0_1 = arith.constant 0 : index
    %c0_2 = arith.constant 0 : index
    %1 = vector.load %arg2[%c0_1, %c0_2] : memref<1x128xf32, #tpu.memory_space<vmem>>, vector<1x128xf32>
    %2 = vector.broadcast %1 : vector<1x128xf32> to vector<128x128xf32>
    %3 = arith.mulf %0, %2 : vector<128x128xf32>
    %c0_3 = arith.constant 0 : index
    %c0_4 = arith.constant 0 : index
    %4 = vector.load %arg3[%c0_3, %c0_4] : memref<1x128xf32, #tpu.memory_space<vmem>>, vector<1x128xf32>
    %5 = vector.broadcast %4 : vector<1x128xf32> to vector<128x128xf32>
    %6 = arith.addf %3, %5 : vector<128x128xf32>
    %cst = arith.constant 0.000000e+00 : f32
    %7 = vector.broadcast %cst : f32 to vector<128x128xf32>
    %8 = arith.maximumf %6, %7 : vector<128x128xf32>
    %c0_5 = arith.constant 0 : index
    %c0_6 = arith.constant 0 : index
    %9 = vector.load %arg4[%c0_5, %c0_6] : memref<128x128xf32, #tpu.memory_space<vmem>>, vector<128x128xf32>
    tpu.vector_store %arg4[%c0_5, %c0_6], %8 {strides = array<i32>} : memref<128x128xf32, #tpu.memory_space<vmem>>, vector<128x128xf32>,
    return
  }
  func.func @transform_0(%arg0: i32) -> (i32, i32) {
    %c0_i32 = arith.constant 0 : i32
    %c0_i32_0 = arith.constant 0 : i32
    return %arg0, %c0_i32 : i32, i32
  }
  func.func @transform_1(%arg0: i32) -> (i32, i32) {
    %c0_i32 = arith.constant 0 : i32
    %c0_i32_0 = arith.constant 0 : i32
    %c0_i32_1 = arith.constant 0 : i32
    return %c0_i32, %c0_i32_0 : i32, i32
  }
  func.func @transform_2(%arg0: i32) -> (i32, i32) {
    %c0_i32 = arith.constant 0 : i32
    %c0_i32_0 = arith.constant 0 : i32
    %c0_i32_1 = arith.constant 0 : i32
    return %c0_i32, %c0_i32_0 : i32, i32
  }
  func.func @transform_3(%arg0: i32) -> (i32, i32) {
    %c0_i32 = arith.constant 0 : i32
    %c0_i32_0 = arith.constant 0 : i32
    return %arg0, %c0_i32 : i32, i32
  }
}

module attributes {stable_mosaic.version = 11 : i64} {
  func.func @_matmul_kernel(%arg0: i32, %arg1: i32, %arg2: i32, %arg3: memref<128x128xbf16, #tpu.memory_space<vmem>>, %arg4: memref<128x128xbf16, #tpu.memory_space<vmem>>, %arg5: memref<128x128xf32, #tpu.memory_space<vmem>>, %arg6: memref<128x128xf32, #tpu.memory_space<vmem>>) attributes {dimension_semantics = [#tpu.dimension_semantics<parallel>, #tpu.dimension_semantics<parallel>, #tpu.dimension_semantics<arbitrary>], iteration_bounds = array<i64: 1, 1, 1>, scalar_prefetch = 0 : i64, scratch_operands = 1 : i64, tpu.core_type = #tpu.core_type<tc>, window_params = [{transform_indices = @transform_0, window_bounds = array<i64: 128, 128>}, {transform_indices = @transform_1, window_bounds = array<i64: 128, 128>}, {transform_indices = @transform_2, window_bounds = array<i64: 128, 128>}]} {
    %c0_i32 = arith.constant 0 : i32
    %0 = arith.cmpi eq, %arg2, %c0_i32 : i32
    %1 = arith.extui %0 : i1 to i32
    %c0_i32_0 = arith.constant 0 : i32
    %2 = arith.cmpi ne, %1, %c0_i32_0 : i32
    scf.if %2 {
      %cst_10 = arith.constant 0.000000e+00 : f32
      %12 = vector.broadcast %cst_10 : f32 to vector<128x128xf32>
      %c0_11 = arith.constant 0 : index
      %c0_12 = arith.constant 0 : index
      %13 = vector.load %arg6[%c0_11, %c0_12] : memref<128x128xf32, #tpu.memory_space<vmem>>, vector<128x128xf32>
      tpu.vector_store %arg6[%c0_11, %c0_12], %12 {strides = array<i32>} : memref<128x128xf32, #tpu.memory_space<vmem>>, vector<128x128xf32>,
    } else {
    }
    %c0 = arith.constant 0 : index
    %c0_1 = arith.constant 0 : index
    %3 = vector.load %arg6[%c0, %c0_1] : memref<128x128xf32, #tpu.memory_space<vmem>>, vector<128x128xf32>
    %c0_2 = arith.constant 0 : index
    %c0_3 = arith.constant 0 : index
    %4 = vector.load %arg3[%c0_2, %c0_3] : memref<128x128xbf16, #tpu.memory_space<vmem>>, vector<128x128xbf16>
    %c0_4 = arith.constant 0 : index
    %c0_5 = arith.constant 0 : index
    %5 = vector.load %arg4[%c0_4, %c0_5] : memref<128x128xbf16, #tpu.memory_space<vmem>>, vector<128x128xbf16>
    %cst = arith.constant dense<0.000000e+00> : vector<128x128xf32>
    %6 = tpu.matmul %4, %5, %cst {dimension_numbers = #tpu.dot_dimension_numbers<[1], [0], [0], [1], [0, 0, 1, 1], [], []>} : vector<128x128xbf16>, vector<128x128xbf16>, vector<128x128xf32> -> vector<128x128xf32>
    %7 = arith.addf %3, %6 : vector<128x128xf32>
    %c0_6 = arith.constant 0 : index
    %c0_7 = arith.constant 0 : index
    %8 = vector.load %arg6[%c0_6, %c0_7] : memref<128x128xf32, #tpu.memory_space<vmem>>, vector<128x128xf32>
    tpu.vector_store %arg6[%c0_6, %c0_7], %7 {strides = array<i32>} : memref<128x128xf32, #tpu.memory_space<vmem>>, vector<128x128xf32>,
    %c0_i32_8 = arith.constant 0 : i32
    %9 = arith.cmpi eq, %arg2, %c0_i32_8 : i32
    %10 = arith.extui %9 : i1 to i32
    %c0_i32_9 = arith.constant 0 : i32
    %11 = arith.cmpi ne, %10, %c0_i32_9 : i32
    scf.if %11 {
      %c0_10 = arith.constant 0 : index
      %c0_11 = arith.constant 0 : index
      %12 = vector.load %arg6[%c0_10, %c0_11] : memref<128x128xf32, #tpu.memory_space<vmem>>, vector<128x128xf32>
      %c0_12 = arith.constant 0 : index
      %c0_13 = arith.constant 0 : index
      %13 = vector.load %arg5[%c0_12, %c0_13] : memref<128x128xf32, #tpu.memory_space<vmem>>, vector<128x128xf32>
      tpu.vector_store %arg5[%c0_12, %c0_13], %12 {strides = array<i32>} : memref<128x128xf32, #tpu.memory_space<vmem>>, vector<128x128xf32>,
    } else {
    }
    return
  }
  func.func @transform_0(%arg0: i32, %arg1: i32, %arg2: i32) -> (i32, i32) {
    %c0_i32 = arith.constant 0 : i32
    return %arg0, %arg2 : i32, i32
  }
  func.func @transform_1(%arg0: i32, %arg1: i32, %arg2: i32) -> (i32, i32) {
    %c0_i32 = arith.constant 0 : i32
    return %arg2, %arg1 : i32, i32
  }
  func.func @transform_2(%arg0: i32, %arg1: i32, %arg2: i32) -> (i32, i32) {
    %c0_i32 = arith.constant 0 : i32
    return %arg0, %arg1 : i32, i32
  }
}

module attributes {stable_mosaic.version = 11 : i64} {
  func.func @_bn_stats_kernel(%arg0: i32, %arg1: memref<512x128xf32, #tpu.memory_space<vmem>>, %arg2: memref<1x128xf32, #tpu.memory_space<vmem>>, %arg3: memref<1x128xf32, #tpu.memory_space<vmem>>) attributes {dimension_semantics = [#tpu.dimension_semantics<arbitrary>], iteration_bounds = array<i64: 1>, scalar_prefetch = 0 : i64, scratch_operands = 0 : i64, tpu.core_type = #tpu.core_type<tc>, window_params = [{transform_indices = @transform_0, window_bounds = array<i64: 512, 128>}, {pipeline_mode = #tpu.pipeline_mode<synchronous>, transform_indices = @transform_1, window_bounds = array<i64: 1, 128>}, {pipeline_mode = #tpu.pipeline_mode<synchronous>, transform_indices = @transform_2, window_bounds = array<i64: 1, 128>}]} {
    %c0_i32 = arith.constant 0 : i32
    %0 = arith.cmpi eq, %arg0, %c0_i32 : i32
    %1 = arith.extui %0 : i1 to i32
    %c0_i32_0 = arith.constant 0 : i32
    %2 = arith.cmpi ne, %1, %c0_i32_0 : i32
    scf.if %2 {
      %cst_11 = arith.constant 0.000000e+00 : f32
      %15 = vector.broadcast %cst_11 : f32 to vector<1x128xf32>
      %c0_12 = arith.constant 0 : index
      %c0_13 = arith.constant 0 : index
      %16 = vector.load %arg2[%c0_12, %c0_13] : memref<1x128xf32, #tpu.memory_space<vmem>>, vector<1x128xf32>
      tpu.vector_store %arg2[%c0_12, %c0_13], %15 {strides = array<i32>} : memref<1x128xf32, #tpu.memory_space<vmem>>, vector<1x128xf32>,
      %cst_14 = arith.constant 0.000000e+00 : f32
      %17 = vector.broadcast %cst_14 : f32 to vector<1x128xf32>
      %c0_15 = arith.constant 0 : index
      %c0_16 = arith.constant 0 : index
      %18 = vector.load %arg3[%c0_15, %c0_16] : memref<1x128xf32, #tpu.memory_space<vmem>>, vector<1x128xf32>
      tpu.vector_store %arg3[%c0_15, %c0_16], %17 {strides = array<i32>} : memref<1x128xf32, #tpu.memory_space<vmem>>, vector<1x128xf32>,
    } else {
    }
    %c0 = arith.constant 0 : index
    %c0_1 = arith.constant 0 : index
    %3 = vector.load %arg1[%c0, %c0_1] : memref<512x128xf32, #tpu.memory_space<vmem>>, vector<512x128xf32>
    %c0_2 = arith.constant 0 : index
    %c0_3 = arith.constant 0 : index
    %4 = vector.load %arg2[%c0_2, %c0_3] : memref<1x128xf32, #tpu.memory_space<vmem>>, vector<1x128xf32>
    %cst = arith.constant dense<0.000000e+00> : vector<128xf32>
    %5 = vector.multi_reduction <add>, %3, %cst [0] : vector<512x128xf32> to vector<128xf32>
    %6 = vector.shape_cast %5 : vector<128xf32> to vector<1x128xf32>
    %7 = arith.addf %4, %6 : vector<1x128xf32>
    %c0_4 = arith.constant 0 : index
    %c0_5 = arith.constant 0 : index
    %8 = vector.load %arg2[%c0_4, %c0_5] : memref<1x128xf32, #tpu.memory_space<vmem>>, vector<1x128xf32>
    tpu.vector_store %arg2[%c0_4, %c0_5], %7 {strides = array<i32>} : memref<1x128xf32, #tpu.memory_space<vmem>>, vector<1x128xf32>,
    %c0_6 = arith.constant 0 : index
    %c0_7 = arith.constant 0 : index
    %9 = vector.load %arg3[%c0_6, %c0_7] : memref<1x128xf32, #tpu.memory_space<vmem>>, vector<1x128xf32>
    %10 = arith.mulf %3, %3 : vector<512x128xf32>
    %cst_8 = arith.constant dense<0.000000e+00> : vector<128xf32>
    %11 = vector.multi_reduction <add>, %10, %cst_8 [0] : vector<512x128xf32> to vector<128xf32>
    %12 = vector.shape_cast %11 : vector<128xf32> to vector<1x128xf32>
    %13 = arith.addf %9, %12 : vector<1x128xf32>
    %c0_9 = arith.constant 0 : index
    %c0_10 = arith.constant 0 : index
    %14 = vector.load %arg3[%c0_9, %c0_10] : memref<1x128xf32, #tpu.memory_space<vmem>>, vector<1x128xf32>
    tpu.vector_store %arg3[%c0_9, %c0_10], %13 {strides = array<i32>} : memref<1x128xf32, #tpu.memory_space<vmem>>, vector<1x128xf32>,
    return
  }
  func.func @transform_0(%arg0: i32) -> (i32, i32) {
    %c0_i32 = arith.constant 0 : i32
    %c0_i32_0 = arith.constant 0 : i32
    return %arg0, %c0_i32 : i32, i32
  }
  func.func @transform_1(%arg0: i32) -> (i32, i32) {
    %c0_i32 = arith.constant 0 : i32
    %c0_i32_0 = arith.constant 0 : i32
    %c0_i32_1 = arith.constant 0 : i32
    return %c0_i32, %c0_i32_0 : i32, i32
  }
  func.func @transform_2(%arg0: i32) -> (i32, i32) {
    %c0_i32 = arith.constant 0 : i32
    %c0_i32_0 = arith.constant 0 : i32
    %c0_i32_1 = arith.constant 0 : i32
    return %c0_i32, %c0_i32_0 : i32, i32
  }
}

module attributes {stable_mosaic.version = 11 : i64} {
  func.func @_bn_apply_kernel(%arg0: i32, %arg1: memref<512x128xf32, #tpu.memory_space<vmem>>, %arg2: memref<1x128xf32, #tpu.memory_space<vmem>>, %arg3: memref<1x128xf32, #tpu.memory_space<vmem>>, %arg4: memref<512x128xf32, #tpu.memory_space<vmem>>) attributes {dimension_semantics = [#tpu.dimension_semantics<parallel>], iteration_bounds = array<i64: 1>, scalar_prefetch = 0 : i64, scratch_operands = 0 : i64, tpu.core_type = #tpu.core_type<tc>, window_params = [{transform_indices = @transform_0, window_bounds = array<i64: 512, 128>}, {pipeline_mode = #tpu.pipeline_mode<synchronous>, transform_indices = @transform_1, window_bounds = array<i64: 1, 128>}, {pipeline_mode = #tpu.pipeline_mode<synchronous>, transform_indices = @transform_2, window_bounds = array<i64: 1, 128>}, {transform_indices = @transform_3, window_bounds = array<i64: 512, 128>}]} {
    %c0 = arith.constant 0 : index
    %c0_0 = arith.constant 0 : index
    %0 = vector.load %arg1[%c0, %c0_0] : memref<512x128xf32, #tpu.memory_space<vmem>>, vector<512x128xf32>
    %c0_1 = arith.constant 0 : index
    %c0_2 = arith.constant 0 : index
    %1 = vector.load %arg2[%c0_1, %c0_2] : memref<1x128xf32, #tpu.memory_space<vmem>>, vector<1x128xf32>
    %2 = vector.broadcast %1 : vector<1x128xf32> to vector<512x128xf32>
    %3 = arith.mulf %0, %2 : vector<512x128xf32>
    %c0_3 = arith.constant 0 : index
    %c0_4 = arith.constant 0 : index
    %4 = vector.load %arg3[%c0_3, %c0_4] : memref<1x128xf32, #tpu.memory_space<vmem>>, vector<1x128xf32>
    %5 = vector.broadcast %4 : vector<1x128xf32> to vector<512x128xf32>
    %6 = arith.addf %3, %5 : vector<512x128xf32>
    %cst = arith.constant 0.000000e+00 : f32
    %7 = vector.broadcast %cst : f32 to vector<512x128xf32>
    %8 = arith.maximumf %6, %7 : vector<512x128xf32>
    %c0_5 = arith.constant 0 : index
    %c0_6 = arith.constant 0 : index
    %9 = vector.load %arg4[%c0_5, %c0_6] : memref<512x128xf32, #tpu.memory_space<vmem>>, vector<512x128xf32>
    tpu.vector_store %arg4[%c0_5, %c0_6], %8 {strides = array<i32>} : memref<512x128xf32, #tpu.memory_space<vmem>>, vector<512x128xf32>,
    return
  }
  func.func @transform_0(%arg0: i32) -> (i32, i32) {
    %c0_i32 = arith.constant 0 : i32
    %c0_i32_0 = arith.constant 0 : i32
    return %arg0, %c0_i32 : i32, i32
  }
  func.func @transform_1(%arg0: i32) -> (i32, i32) {
    %c0_i32 = arith.constant 0 : i32
    %c0_i32_0 = arith.constant 0 : i32
    %c0_i32_1 = arith.constant 0 : i32
    return %c0_i32, %c0_i32_0 : i32, i32
  }
  func.func @transform_2(%arg0: i32) -> (i32, i32) {
    %c0_i32 = arith.constant 0 : i32
    %c0_i32_0 = arith.constant 0 : i32
    %c0_i32_1 = arith.constant 0 : i32
    return %c0_i32, %c0_i32_0 : i32, i32
  }
  func.func @transform_3(%arg0: i32) -> (i32, i32) {
    %c0_i32 = arith.constant 0 : i32
    %c0_i32_0 = arith.constant 0 : i32
    return %arg0, %c0_i32 : i32, i32
  }
}

module attributes {stable_mosaic.version = 11 : i64} {
  func.func @_matmul_kernel(%arg0: i32, %arg1: i32, %arg2: i32, %arg3: memref<512x128xbf16, #tpu.memory_space<vmem>>, %arg4: memref<128x128xbf16, #tpu.memory_space<vmem>>, %arg5: memref<512x128xf32, #tpu.memory_space<vmem>>, %arg6: memref<512x128xf32, #tpu.memory_space<vmem>>) attributes {dimension_semantics = [#tpu.dimension_semantics<parallel>, #tpu.dimension_semantics<parallel>, #tpu.dimension_semantics<arbitrary>], iteration_bounds = array<i64: 1, 1, 1>, scalar_prefetch = 0 : i64, scratch_operands = 1 : i64, tpu.core_type = #tpu.core_type<tc>, window_params = [{transform_indices = @transform_0, window_bounds = array<i64: 512, 128>}, {transform_indices = @transform_1, window_bounds = array<i64: 128, 128>}, {transform_indices = @transform_2, window_bounds = array<i64: 512, 128>}]} {
    %c0_i32 = arith.constant 0 : i32
    %0 = arith.cmpi eq, %arg2, %c0_i32 : i32
    %1 = arith.extui %0 : i1 to i32
    %c0_i32_0 = arith.constant 0 : i32
    %2 = arith.cmpi ne, %1, %c0_i32_0 : i32
    scf.if %2 {
      %cst_10 = arith.constant 0.000000e+00 : f32
      %12 = vector.broadcast %cst_10 : f32 to vector<512x128xf32>
      %c0_11 = arith.constant 0 : index
      %c0_12 = arith.constant 0 : index
      %13 = vector.load %arg6[%c0_11, %c0_12] : memref<512x128xf32, #tpu.memory_space<vmem>>, vector<512x128xf32>
      tpu.vector_store %arg6[%c0_11, %c0_12], %12 {strides = array<i32>} : memref<512x128xf32, #tpu.memory_space<vmem>>, vector<512x128xf32>,
    } else {
    }
    %c0 = arith.constant 0 : index
    %c0_1 = arith.constant 0 : index
    %3 = vector.load %arg6[%c0, %c0_1] : memref<512x128xf32, #tpu.memory_space<vmem>>, vector<512x128xf32>
    %c0_2 = arith.constant 0 : index
    %c0_3 = arith.constant 0 : index
    %4 = vector.load %arg3[%c0_2, %c0_3] : memref<512x128xbf16, #tpu.memory_space<vmem>>, vector<512x128xbf16>
    %c0_4 = arith.constant 0 : index
    %c0_5 = arith.constant 0 : index
    %5 = vector.load %arg4[%c0_4, %c0_5] : memref<128x128xbf16, #tpu.memory_space<vmem>>, vector<128x128xbf16>
    %cst = arith.constant dense<0.000000e+00> : vector<512x128xf32>
    %6 = tpu.matmul %4, %5, %cst {dimension_numbers = #tpu.dot_dimension_numbers<[1], [0], [0], [1], [0, 0, 1, 1], [], []>} : vector<512x128xbf16>, vector<128x128xbf16>, vector<512x128xf32> -> vector<512x128xf32>
    %7 = arith.addf %3, %6 : vector<512x128xf32>
    %c0_6 = arith.constant 0 : index
    %c0_7 = arith.constant 0 : index
    %8 = vector.load %arg6[%c0_6, %c0_7] : memref<512x128xf32, #tpu.memory_space<vmem>>, vector<512x128xf32>
    tpu.vector_store %arg6[%c0_6, %c0_7], %7 {strides = array<i32>} : memref<512x128xf32, #tpu.memory_space<vmem>>, vector<512x128xf32>,
    %c0_i32_8 = arith.constant 0 : i32
    %9 = arith.cmpi eq, %arg2, %c0_i32_8 : i32
    %10 = arith.extui %9 : i1 to i32
    %c0_i32_9 = arith.constant 0 : i32
    %11 = arith.cmpi ne, %10, %c0_i32_9 : i32
    scf.if %11 {
      %c0_10 = arith.constant 0 : index
      %c0_11 = arith.constant 0 : index
      %12 = vector.load %arg6[%c0_10, %c0_11] : memref<512x128xf32, #tpu.memory_space<vmem>>, vector<512x128xf32>
      %c0_12 = arith.constant 0 : index
      %c0_13 = arith.constant 0 : index
      %13 = vector.load %arg5[%c0_12, %c0_13] : memref<512x128xf32, #tpu.memory_space<vmem>>, vector<512x128xf32>
      tpu.vector_store %arg5[%c0_12, %c0_13], %12 {strides = array<i32>} : memref<512x128xf32, #tpu.memory_space<vmem>>, vector<512x128xf32>,
    } else {
    }
    return
  }
  func.func @transform_0(%arg0: i32, %arg1: i32, %arg2: i32) -> (i32, i32) {
    %c0_i32 = arith.constant 0 : i32
    return %arg0, %arg2 : i32, i32
  }
  func.func @transform_1(%arg0: i32, %arg1: i32, %arg2: i32) -> (i32, i32) {
    %c0_i32 = arith.constant 0 : i32
    return %arg2, %arg1 : i32, i32
  }
  func.func @transform_2(%arg0: i32, %arg1: i32, %arg2: i32) -> (i32, i32) {
    %c0_i32 = arith.constant 0 : i32
    return %arg0, %arg1 : i32, i32
  }
}

module attributes {stable_mosaic.version = 11 : i64} {
  func.func @_bn_stats_kernel(%arg0: i32, %arg1: memref<512x128xf32, #tpu.memory_space<vmem>>, %arg2: memref<1x128xf32, #tpu.memory_space<vmem>>, %arg3: memref<1x128xf32, #tpu.memory_space<vmem>>) attributes {dimension_semantics = [#tpu.dimension_semantics<arbitrary>], iteration_bounds = array<i64: 4>, scalar_prefetch = 0 : i64, scratch_operands = 0 : i64, tpu.core_type = #tpu.core_type<tc>, window_params = [{transform_indices = @transform_0, window_bounds = array<i64: 512, 128>}, {pipeline_mode = #tpu.pipeline_mode<synchronous>, transform_indices = @transform_1, window_bounds = array<i64: 1, 128>}, {pipeline_mode = #tpu.pipeline_mode<synchronous>, transform_indices = @transform_2, window_bounds = array<i64: 1, 128>}]} {
    %c0_i32 = arith.constant 0 : i32
    %0 = arith.cmpi eq, %arg0, %c0_i32 : i32
    %1 = arith.extui %0 : i1 to i32
    %c0_i32_0 = arith.constant 0 : i32
    %2 = arith.cmpi ne, %1, %c0_i32_0 : i32
    scf.if %2 {
      %cst_11 = arith.constant 0.000000e+00 : f32
      %15 = vector.broadcast %cst_11 : f32 to vector<1x128xf32>
      %c0_12 = arith.constant 0 : index
      %c0_13 = arith.constant 0 : index
      %16 = vector.load %arg2[%c0_12, %c0_13] : memref<1x128xf32, #tpu.memory_space<vmem>>, vector<1x128xf32>
      tpu.vector_store %arg2[%c0_12, %c0_13], %15 {strides = array<i32>} : memref<1x128xf32, #tpu.memory_space<vmem>>, vector<1x128xf32>,
      %cst_14 = arith.constant 0.000000e+00 : f32
      %17 = vector.broadcast %cst_14 : f32 to vector<1x128xf32>
      %c0_15 = arith.constant 0 : index
      %c0_16 = arith.constant 0 : index
      %18 = vector.load %arg3[%c0_15, %c0_16] : memref<1x128xf32, #tpu.memory_space<vmem>>, vector<1x128xf32>
      tpu.vector_store %arg3[%c0_15, %c0_16], %17 {strides = array<i32>} : memref<1x128xf32, #tpu.memory_space<vmem>>, vector<1x128xf32>,
    } else {
    }
    %c0 = arith.constant 0 : index
    %c0_1 = arith.constant 0 : index
    %3 = vector.load %arg1[%c0, %c0_1] : memref<512x128xf32, #tpu.memory_space<vmem>>, vector<512x128xf32>
    %c0_2 = arith.constant 0 : index
    %c0_3 = arith.constant 0 : index
    %4 = vector.load %arg2[%c0_2, %c0_3] : memref<1x128xf32, #tpu.memory_space<vmem>>, vector<1x128xf32>
    %cst = arith.constant dense<0.000000e+00> : vector<128xf32>
    %5 = vector.multi_reduction <add>, %3, %cst [0] : vector<512x128xf32> to vector<128xf32>
    %6 = vector.shape_cast %5 : vector<128xf32> to vector<1x128xf32>
    %7 = arith.addf %4, %6 : vector<1x128xf32>
    %c0_4 = arith.constant 0 : index
    %c0_5 = arith.constant 0 : index
    %8 = vector.load %arg2[%c0_4, %c0_5] : memref<1x128xf32, #tpu.memory_space<vmem>>, vector<1x128xf32>
    tpu.vector_store %arg2[%c0_4, %c0_5], %7 {strides = array<i32>} : memref<1x128xf32, #tpu.memory_space<vmem>>, vector<1x128xf32>,
    %c0_6 = arith.constant 0 : index
    %c0_7 = arith.constant 0 : index
    %9 = vector.load %arg3[%c0_6, %c0_7] : memref<1x128xf32, #tpu.memory_space<vmem>>, vector<1x128xf32>
    %10 = arith.mulf %3, %3 : vector<512x128xf32>
    %cst_8 = arith.constant dense<0.000000e+00> : vector<128xf32>
    %11 = vector.multi_reduction <add>, %10, %cst_8 [0] : vector<512x128xf32> to vector<128xf32>
    %12 = vector.shape_cast %11 : vector<128xf32> to vector<1x128xf32>
    %13 = arith.addf %9, %12 : vector<1x128xf32>
    %c0_9 = arith.constant 0 : index
    %c0_10 = arith.constant 0 : index
    %14 = vector.load %arg3[%c0_9, %c0_10] : memref<1x128xf32, #tpu.memory_space<vmem>>, vector<1x128xf32>
    tpu.vector_store %arg3[%c0_9, %c0_10], %13 {strides = array<i32>} : memref<1x128xf32, #tpu.memory_space<vmem>>, vector<1x128xf32>,
    return
  }
  func.func @transform_0(%arg0: i32) -> (i32, i32) {
    %c0_i32 = arith.constant 0 : i32
    %c0_i32_0 = arith.constant 0 : i32
    return %arg0, %c0_i32 : i32, i32
  }
  func.func @transform_1(%arg0: i32) -> (i32, i32) {
    %c0_i32 = arith.constant 0 : i32
    %c0_i32_0 = arith.constant 0 : i32
    %c0_i32_1 = arith.constant 0 : i32
    return %c0_i32, %c0_i32_0 : i32, i32
  }
  func.func @transform_2(%arg0: i32) -> (i32, i32) {
    %c0_i32 = arith.constant 0 : i32
    %c0_i32_0 = arith.constant 0 : i32
    %c0_i32_1 = arith.constant 0 : i32
    return %c0_i32, %c0_i32_0 : i32, i32
  }
}

module attributes {stable_mosaic.version = 11 : i64} {
  func.func @_bn_apply_kernel(%arg0: i32, %arg1: memref<512x128xf32, #tpu.memory_space<vmem>>, %arg2: memref<1x128xf32, #tpu.memory_space<vmem>>, %arg3: memref<1x128xf32, #tpu.memory_space<vmem>>, %arg4: memref<512x128xf32, #tpu.memory_space<vmem>>) attributes {dimension_semantics = [#tpu.dimension_semantics<parallel>], iteration_bounds = array<i64: 4>, scalar_prefetch = 0 : i64, scratch_operands = 0 : i64, tpu.core_type = #tpu.core_type<tc>, window_params = [{transform_indices = @transform_0, window_bounds = array<i64: 512, 128>}, {pipeline_mode = #tpu.pipeline_mode<synchronous>, transform_indices = @transform_1, window_bounds = array<i64: 1, 128>}, {pipeline_mode = #tpu.pipeline_mode<synchronous>, transform_indices = @transform_2, window_bounds = array<i64: 1, 128>}, {transform_indices = @transform_3, window_bounds = array<i64: 512, 128>}]} {
    %c0 = arith.constant 0 : index
    %c0_0 = arith.constant 0 : index
    %0 = vector.load %arg1[%c0, %c0_0] : memref<512x128xf32, #tpu.memory_space<vmem>>, vector<512x128xf32>
    %c0_1 = arith.constant 0 : index
    %c0_2 = arith.constant 0 : index
    %1 = vector.load %arg2[%c0_1, %c0_2] : memref<1x128xf32, #tpu.memory_space<vmem>>, vector<1x128xf32>
    %2 = vector.broadcast %1 : vector<1x128xf32> to vector<512x128xf32>
    %3 = arith.mulf %0, %2 : vector<512x128xf32>
    %c0_3 = arith.constant 0 : index
    %c0_4 = arith.constant 0 : index
    %4 = vector.load %arg3[%c0_3, %c0_4] : memref<1x128xf32, #tpu.memory_space<vmem>>, vector<1x128xf32>
    %5 = vector.broadcast %4 : vector<1x128xf32> to vector<512x128xf32>
    %6 = arith.addf %3, %5 : vector<512x128xf32>
    %cst = arith.constant 0.000000e+00 : f32
    %7 = vector.broadcast %cst : f32 to vector<512x128xf32>
    %8 = arith.maximumf %6, %7 : vector<512x128xf32>
    %c0_5 = arith.constant 0 : index
    %c0_6 = arith.constant 0 : index
    %9 = vector.load %arg4[%c0_5, %c0_6] : memref<512x128xf32, #tpu.memory_space<vmem>>, vector<512x128xf32>
    tpu.vector_store %arg4[%c0_5, %c0_6], %8 {strides = array<i32>} : memref<512x128xf32, #tpu.memory_space<vmem>>, vector<512x128xf32>,
    return
  }
  func.func @transform_0(%arg0: i32) -> (i32, i32) {
    %c0_i32 = arith.constant 0 : i32
    %c0_i32_0 = arith.constant 0 : i32
    return %arg0, %c0_i32 : i32, i32
  }
  func.func @transform_1(%arg0: i32) -> (i32, i32) {
    %c0_i32 = arith.constant 0 : i32
    %c0_i32_0 = arith.constant 0 : i32
    %c0_i32_1 = arith.constant 0 : i32
    return %c0_i32, %c0_i32_0 : i32, i32
  }
  func.func @transform_2(%arg0: i32) -> (i32, i32) {
    %c0_i32 = arith.constant 0 : i32
    %c0_i32_0 = arith.constant 0 : i32
    %c0_i32_1 = arith.constant 0 : i32
    return %c0_i32, %c0_i32_0 : i32, i32
  }
  func.func @transform_3(%arg0: i32) -> (i32, i32) {
    %c0_i32 = arith.constant 0 : i32
    %c0_i32_0 = arith.constant 0 : i32
    return %arg0, %c0_i32 : i32, i32
  }
}

module attributes {stable_mosaic.version = 11 : i64} {
  func.func @_matmul_kernel(%arg0: i32, %arg1: i32, %arg2: i32, %arg3: memref<512x128xbf16, #tpu.memory_space<vmem>>, %arg4: memref<128x128xbf16, #tpu.memory_space<vmem>>, %arg5: memref<512x128xf32, #tpu.memory_space<vmem>>, %arg6: memref<512x128xf32, #tpu.memory_space<vmem>>) attributes {dimension_semantics = [#tpu.dimension_semantics<parallel>, #tpu.dimension_semantics<parallel>, #tpu.dimension_semantics<arbitrary>], iteration_bounds = array<i64: 4, 1, 1>, scalar_prefetch = 0 : i64, scratch_operands = 1 : i64, tpu.core_type = #tpu.core_type<tc>, window_params = [{transform_indices = @transform_0, window_bounds = array<i64: 512, 128>}, {transform_indices = @transform_1, window_bounds = array<i64: 128, 128>}, {transform_indices = @transform_2, window_bounds = array<i64: 512, 128>}]} {
    %c0_i32 = arith.constant 0 : i32
    %0 = arith.cmpi eq, %arg2, %c0_i32 : i32
    %1 = arith.extui %0 : i1 to i32
    %c0_i32_0 = arith.constant 0 : i32
    %2 = arith.cmpi ne, %1, %c0_i32_0 : i32
    scf.if %2 {
      %cst_10 = arith.constant 0.000000e+00 : f32
      %12 = vector.broadcast %cst_10 : f32 to vector<512x128xf32>
      %c0_11 = arith.constant 0 : index
      %c0_12 = arith.constant 0 : index
      %13 = vector.load %arg6[%c0_11, %c0_12] : memref<512x128xf32, #tpu.memory_space<vmem>>, vector<512x128xf32>
      tpu.vector_store %arg6[%c0_11, %c0_12], %12 {strides = array<i32>} : memref<512x128xf32, #tpu.memory_space<vmem>>, vector<512x128xf32>,
    } else {
    }
    %c0 = arith.constant 0 : index
    %c0_1 = arith.constant 0 : index
    %3 = vector.load %arg6[%c0, %c0_1] : memref<512x128xf32, #tpu.memory_space<vmem>>, vector<512x128xf32>
    %c0_2 = arith.constant 0 : index
    %c0_3 = arith.constant 0 : index
    %4 = vector.load %arg3[%c0_2, %c0_3] : memref<512x128xbf16, #tpu.memory_space<vmem>>, vector<512x128xbf16>
    %c0_4 = arith.constant 0 : index
    %c0_5 = arith.constant 0 : index
    %5 = vector.load %arg4[%c0_4, %c0_5] : memref<128x128xbf16, #tpu.memory_space<vmem>>, vector<128x128xbf16>
    %cst = arith.constant dense<0.000000e+00> : vector<512x128xf32>
    %6 = tpu.matmul %4, %5, %cst {dimension_numbers = #tpu.dot_dimension_numbers<[1], [0], [0], [1], [0, 0, 1, 1], [], []>} : vector<512x128xbf16>, vector<128x128xbf16>, vector<512x128xf32> -> vector<512x128xf32>
    %7 = arith.addf %3, %6 : vector<512x128xf32>
    %c0_6 = arith.constant 0 : index
    %c0_7 = arith.constant 0 : index
    %8 = vector.load %arg6[%c0_6, %c0_7] : memref<512x128xf32, #tpu.memory_space<vmem>>, vector<512x128xf32>
    tpu.vector_store %arg6[%c0_6, %c0_7], %7 {strides = array<i32>} : memref<512x128xf32, #tpu.memory_space<vmem>>, vector<512x128xf32>,
    %c0_i32_8 = arith.constant 0 : i32
    %9 = arith.cmpi eq, %arg2, %c0_i32_8 : i32
    %10 = arith.extui %9 : i1 to i32
    %c0_i32_9 = arith.constant 0 : i32
    %11 = arith.cmpi ne, %10, %c0_i32_9 : i32
    scf.if %11 {
      %c0_10 = arith.constant 0 : index
      %c0_11 = arith.constant 0 : index
      %12 = vector.load %arg6[%c0_10, %c0_11] : memref<512x128xf32, #tpu.memory_space<vmem>>, vector<512x128xf32>
      %c0_12 = arith.constant 0 : index
      %c0_13 = arith.constant 0 : index
      %13 = vector.load %arg5[%c0_12, %c0_13] : memref<512x128xf32, #tpu.memory_space<vmem>>, vector<512x128xf32>
      tpu.vector_store %arg5[%c0_12, %c0_13], %12 {strides = array<i32>} : memref<512x128xf32, #tpu.memory_space<vmem>>, vector<512x128xf32>,
    } else {
    }
    return
  }
  func.func @transform_0(%arg0: i32, %arg1: i32, %arg2: i32) -> (i32, i32) {
    %c0_i32 = arith.constant 0 : i32
    return %arg0, %arg2 : i32, i32
  }
  func.func @transform_1(%arg0: i32, %arg1: i32, %arg2: i32) -> (i32, i32) {
    %c0_i32 = arith.constant 0 : i32
    return %arg2, %arg1 : i32, i32
  }
  func.func @transform_2(%arg0: i32, %arg1: i32, %arg2: i32) -> (i32, i32) {
    %c0_i32 = arith.constant 0 : i32
    return %arg0, %arg1 : i32, i32
  }
}

module attributes {stable_mosaic.version = 11 : i64} {
  func.func @_matmul_kernel(%arg0: i32, %arg1: i32, %arg2: i32, %arg3: memref<512x128xbf16, #tpu.memory_space<vmem>>, %arg4: memref<128x128xbf16, #tpu.memory_space<vmem>>, %arg5: memref<512x128xf32, #tpu.memory_space<vmem>>, %arg6: memref<512x128xf32, #tpu.memory_space<vmem>>) attributes {dimension_semantics = [#tpu.dimension_semantics<parallel>, #tpu.dimension_semantics<parallel>, #tpu.dimension_semantics<arbitrary>], iteration_bounds = array<i64: 4, 1, 1>, scalar_prefetch = 0 : i64, scratch_operands = 1 : i64, tpu.core_type = #tpu.core_type<tc>, window_params = [{transform_indices = @transform_0, window_bounds = array<i64: 512, 128>}, {transform_indices = @transform_1, window_bounds = array<i64: 128, 128>}, {transform_indices = @transform_2, window_bounds = array<i64: 512, 128>}]} {
    %c0_i32 = arith.constant 0 : i32
    %0 = arith.cmpi eq, %arg2, %c0_i32 : i32
    %1 = arith.extui %0 : i1 to i32
    %c0_i32_0 = arith.constant 0 : i32
    %2 = arith.cmpi ne, %1, %c0_i32_0 : i32
    scf.if %2 {
      %cst_10 = arith.constant 0.000000e+00 : f32
      %12 = vector.broadcast %cst_10 : f32 to vector<512x128xf32>
      %c0_11 = arith.constant 0 : index
      %c0_12 = arith.constant 0 : index
      %13 = vector.load %arg6[%c0_11, %c0_12] : memref<512x128xf32, #tpu.memory_space<vmem>>, vector<512x128xf32>
      tpu.vector_store %arg6[%c0_11, %c0_12], %12 {strides = array<i32>} : memref<512x128xf32, #tpu.memory_space<vmem>>, vector<512x128xf32>,
    } else {
    }
    %c0 = arith.constant 0 : index
    %c0_1 = arith.constant 0 : index
    %3 = vector.load %arg6[%c0, %c0_1] : memref<512x128xf32, #tpu.memory_space<vmem>>, vector<512x128xf32>
    %c0_2 = arith.constant 0 : index
    %c0_3 = arith.constant 0 : index
    %4 = vector.load %arg3[%c0_2, %c0_3] : memref<512x128xbf16, #tpu.memory_space<vmem>>, vector<512x128xbf16>
    %c0_4 = arith.constant 0 : index
    %c0_5 = arith.constant 0 : index
    %5 = vector.load %arg4[%c0_4, %c0_5] : memref<128x128xbf16, #tpu.memory_space<vmem>>, vector<128x128xbf16>
    %cst = arith.constant dense<0.000000e+00> : vector<512x128xf32>
    %6 = tpu.matmul %4, %5, %cst {dimension_numbers = #tpu.dot_dimension_numbers<[1], [0], [0], [1], [0, 0, 1, 1], [], []>} : vector<512x128xbf16>, vector<128x128xbf16>, vector<512x128xf32> -> vector<512x128xf32>
    %7 = arith.addf %3, %6 : vector<512x128xf32>
    %c0_6 = arith.constant 0 : index
    %c0_7 = arith.constant 0 : index
    %8 = vector.load %arg6[%c0_6, %c0_7] : memref<512x128xf32, #tpu.memory_space<vmem>>, vector<512x128xf32>
    tpu.vector_store %arg6[%c0_6, %c0_7], %7 {strides = array<i32>} : memref<512x128xf32, #tpu.memory_space<vmem>>, vector<512x128xf32>,
    %c0_i32_8 = arith.constant 0 : i32
    %9 = arith.cmpi eq, %arg2, %c0_i32_8 : i32
    %10 = arith.extui %9 : i1 to i32
    %c0_i32_9 = arith.constant 0 : i32
    %11 = arith.cmpi ne, %10, %c0_i32_9 : i32
    scf.if %11 {
      %c0_10 = arith.constant 0 : index
      %c0_11 = arith.constant 0 : index
      %12 = vector.load %arg6[%c0_10, %c0_11] : memref<512x128xf32, #tpu.memory_space<vmem>>, vector<512x128xf32>
      %13 = math.tanh %12 : vector<512x128xf32>
      %c0_12 = arith.constant 0 : index
      %c0_13 = arith.constant 0 : index
      %14 = vector.load %arg5[%c0_12, %c0_13] : memref<512x128xf32, #tpu.memory_space<vmem>>, vector<512x128xf32>
      tpu.vector_store %arg5[%c0_12, %c0_13], %13 {strides = array<i32>} : memref<512x128xf32, #tpu.memory_space<vmem>>, vector<512x128xf32>,
    } else {
    }
    return
  }
  func.func @transform_0(%arg0: i32, %arg1: i32, %arg2: i32) -> (i32, i32) {
    %c0_i32 = arith.constant 0 : i32
    return %arg0, %arg2 : i32, i32
  }
  func.func @transform_1(%arg0: i32, %arg1: i32, %arg2: i32) -> (i32, i32) {
    %c0_i32 = arith.constant 0 : i32
    return %arg2, %arg1 : i32, i32
  }
  func.func @transform_2(%arg0: i32, %arg1: i32, %arg2: i32) -> (i32, i32) {
    %c0_i32 = arith.constant 0 : i32
    return %arg0, %arg1 : i32, i32
  }
}

</mosaic_0001>

<bundles_post_ra>
// kernel: a_call__.29
= control target key start
LH: loop header
LB: loop body
LE: loop exit
PB: predicated region body
PF: predicated region fallthrough
CT: control target
= control target key end

     0   :  { %v105_v0 = vmov 0.0   ;;  %s187_s1 = inlined_call_operand.vmem [shape: f32[1,128], index: 1, kind: output, shape index: {0}]   ;;  %s188_s2 = inlined_call_operand.vmem [shape: f32[1,128], index: 2, kind: output, shape index: {1}]   ;;  %s189_s0 = inlined_call_operand.vmem [shape: f32[128,128], index: 0, kind: input, shape index: {}]  }
   0x1   :  { %14 = vst [vmem:[%s187_s1] sm:$0x1] %v105_v0  ;;  %v16_v1 = vld [vmem:[%s189_s0] sm:$0xff]  ;;  %v17_v2 = vld [vmem:[%s189_s0 + $0x8] sm:$0xff]  ;;  %v18_v3 = vld [vmem:[%s189_s0 + $0x10] sm:$0xff] }
   0x2   :  { %15 = vst [vmem:[%s188_s2] sm:$0x1] %v105_v0  ;;  %v19_v4 = vld [vmem:[%s189_s0 + $0x18] sm:$0xff]  ;;  %v33_v5 = vadd.f32 %v17_v2, %v16_v1  ;;  %v57_v6 = vmul.f32 %v16_v1, %v16_v1  ;;  %v58_v7 = vmul.f32 %v17_v2, %v17_v2  ;;  %v59_v8 = vmul.f32 %v18_v3, %v18_v3  ;;  %v20_v9 = vld [vmem:[%s189_s0 + $0x20] sm:$0xff]  ;;  %v21_v13 = vld [vmem:[%s189_s0 + $0x28] sm:$0xff] }
   0x3   :  { %v60_v11 = vmul.f32 %v19_v4, %v19_v4  ;;  %v61_v15 = vmul.f32 %v20_v9, %v20_v9  ;;  %v22_v17 = vld [vmem:[%s189_s0 + $0x30] sm:$0xff]  ;;  %v62_v19 = vmul.f32 %v21_v13, %v21_v13  ;;  %v23_v21 = vld [vmem:[%s189_s0 + $0x38] sm:$0xff]  ;;  %v24_v25 = vld [vmem:[%s189_s0 + $0x40] sm:$0xff] }
   0x4   :  { %v34_v10 = vadd.f32 %v33_v5, %v18_v3  ;;  %v73_v12 = vadd.f32 %v58_v7, %v57_v6  ;;  %v63_v23 = vmul.f32 %v22_v17, %v22_v17  ;;  %v64_v27 = vmul.f32 %v23_v21, %v23_v21  ;;  %v25_v29 = vld [vmem:[%s189_s0 + $0x48] sm:$0xff]  ;;  %v26_v33 = vld [vmem:[%s189_s0 + $0x50] sm:$0xff]  ;;  %v27_v37 = vld [vmem:[%s189_s0 + $0x58] sm:$0xff] }
   0x5   :  { %v65_v31 = vmul.f32 %v24_v25, %v24_v25  ;;  %v66_v35 = vmul.f32 %v25_v29, %v25_v29  ;;  %v67_v39 = vmul.f32 %v26_v33, %v26_v33  ;;  %v28_v41 = vld [vmem:[%s189_s0 + $0x60] sm:$0xff]  ;;  %v68_v43 = vmul.f32 %v27_v37, %v27_v37  ;;  %v29_v45 = vld [vmem:[%s189_s0 + $0x68] sm:$0xff]  ;;  %v30_v49 = vld [vmem:[%s189_s0 + $0x70] sm:$0xff] }
   0x6   :  { %v35_v14 = vadd.f32 %v34_v10, %v19_v4  ;;  %v74_v16 = vadd.f32 %v73_v12, %v59_v8  ;;  %v69_v47 = vmul.f32 %v28_v41, %v28_v41  ;;  %v70_v51 = vmul.f32 %v29_v45, %v29_v45  ;;  %v31_v53 = vld [vmem:[%s189_s0 + $0x78] sm:$0xff] }
   0x7   :  { %v71_v55 = vmul.f32 %v30_v49, %v30_v49  ;;  %v72_v58 = vmul.f32 %v31_v53, %v31_v53 }
   0x8   :  { %v36_v18 = vadd.f32 %v35_v14, %v20_v9  ;;  %v75_v20 = vadd.f32 %v74_v16, %v60_v11  ;;  %v32_v7 = vld [vmem:[%s187_s1] sm:$0x1] }
   0x9   :  { %v56_v12 = vld [vmem:[%s188_s2] sm:$0x1] }
   0xa   :  { %v37_v22 = vadd.f32 %v36_v18, %v21_v13  ;;  %v76_v24 = vadd.f32 %v75_v20, %v61_v15 }
   0xc   :  { %v38_v26 = vadd.f32 %v37_v22, %v22_v17  ;;  %v77_v28 = vadd.f32 %v76_v24, %v62_v19 }
   0xe   :  { %v39_v30 = vadd.f32 %v38_v26, %v23_v21  ;;  %v78_v32 = vadd.f32 %v77_v28, %v63_v23 }
  0x10   :  { %v40_v34 = vadd.f32 %v39_v30, %v24_v25  ;;  %v79_v36 = vadd.f32 %v78_v32, %v64_v27 }
  0x12   :  { %v41_v38 = vadd.f32 %v40_v34, %v25_v29  ;;  %v80_v40 = vadd.f32 %v79_v36, %v65_v31 }
  0x14   :  { %v42_v42 = vadd.f32 %v41_v38, %v26_v33  ;;  %v81_v44 = vadd.f32 %v80_v40, %v66_v35 }
  0x16   :  { %v43_v46 = vadd.f32 %v42_v42, %v27_v37  ;;  %v82_v48 = vadd.f32 %v81_v44, %v67_v39 }
  0x18   :  { %v44_v50 = vadd.f32 %v43_v46, %v28_v41  ;;  %v83_v52 = vadd.f32 %v82_v48, %v68_v43 }
  0x1a   :  { %v45_v54 = vadd.f32 %v44_v50, %v29_v45  ;;  %v84_v56 = vadd.f32 %v83_v52, %v69_v47 }
  0x1c   :  { %v46_v57 = vadd.f32 %v45_v54, %v30_v49  ;;  %v85_v59 = vadd.f32 %v84_v56, %v70_v51 }
  0x1e   :  { %v47_v60 = vadd.f32 %v46_v57, %v31_v53  ;;  %v86_v61 = vadd.f32 %v85_v59, %v71_v55 }
  0x20   :  { %v48_v62 = vrot.slane %v47_v60, 4  ;;  %v87_v63 = vadd.f32 %v86_v61, %v72_v58 }
  0x22   :  { %v49_v0 = vadd.f32 %v48_v62, %v47_v60  ;;  %v88_v1 = vrot.slane %v87_v63, 4 }
  0x24   :  { %v50_v2 = vrot.slane %v49_v0, 2  ;;  %v89_v3 = vadd.f32 %v88_v1, %v87_v63 }
  0x26   :  { %v51_v4 = vadd.f32 %v50_v2, %v49_v0  ;;  %v90_v5 = vrot.slane %v89_v3, 2 }
  0x28   :  { %v52_v6 = vrot.slane %v51_v4, 1  ;;  %v91_v8 = vadd.f32 %v90_v5, %v89_v3 }
  0x2a   :  { %v53_v9 = vadd.f32 %v52_v6, %v51_v4  ;;  %v92_v10 = vrot.slane %v91_v8, 1 }
  0x2c   :  { %v54_v11 = vadd.f32 %v53_v9, %v32_v7  ;;  %v93_v13 = vadd.f32 %v92_v10, %v91_v8 }
  0x2e   :  { %55 = vst [vmem:[%s187_s1] sm:$0x1] %v54_v11  ;;  %v94_v14 = vadd.f32 %v93_v13, %v56_v12 }
  0x30   :  { %95 = vst [vmem:[%s188_s2] sm:$0x1] %v94_v14 }

// kernel: a_call__.28
= control target key start
LH: loop header
LB: loop body
LE: loop exit
PB: predicated region body
PF: predicated region fallthrough
CT: control target
= control target key end

     0   :  { %7 = vsyncpa [#allocation4], 0  ;;  %s662_s12 = smov [#allocation3]   ;;  %s663_s14 = smov 64   ;;  %s827_s0 = inlined_call_operand.vmem [shape: bf16[128,256], index: 0, kind: input, shape index: {}]   ;;  %s828_s1 = inlined_call_operand.hbm [shape: bf16[256,128], index: 1, kind: input, shape index: {}]   ;;  %s829_s2 = inlined_call_operand.vmem [shape: f32[128,128], index: 2, kind: output, shape index: {}]  }
   0x1   :  { %s14_s11 = sshll.u32 %s828_s1, 4  ;;  %s16_s13 = sshll.u32 %s662_s12, 4  ;;  %s15_s11 = int_to_ptr.hbm [resolvable:$true] %s14_s11  ;;  %s17_s13 = int_to_ptr.vmem [resolvable:$true] %s16_s13 }
   0x2   :  { %s664_s15 = smov 4  }
   0x3   :  { %22 = dma.hbm_to_vmem [thread:$0]  %s15_s11, 2048, %s17_s13, [#allocation4], %s663_s14, %s663_s14, %s664_s15  }
   0x4   :  { %660 = dma.done.wait [#allocation4], 2048  }
   0x5   :  { %661 = vsyncadd [#allocation4], 4294965248  ;;  %v608_v0 = vld [vmem:[#allocation3 + $0x38] sm:$0xff]  ;;  %v607_v2 = vld [vmem:[#allocation3 + $0x30] sm:$0xff] }
   0x6   :  { %v616_v1 = vld [vmem:[#allocation3 + $0x78] sm:$0xff]  ;;  %287 = vmatpush.bf16.msra.mxu0 %v608_v0  ;;  %617 = vmatpush.bf16.msra.mxu2 %v608_v0  ;;  %v615_v3 = vld [vmem:[#allocation3 + $0x70] sm:$0xff]  ;;  %v606_v4 = vld [vmem:[#allocation3 + $0x28] sm:$0xff] }
   0x7   :  { %336 = vmatpush.bf16.msra.mxu1 %v616_v1  ;;  %625 = vmatpush.bf16.msra.mxu3 %v616_v1  ;;  %v614_v5 = vld [vmem:[#allocation3 + $0x68] sm:$0xff]  ;;  %v605_v6 = vld [vmem:[#allocation3 + $0x20] sm:$0xff]  ;;  %v604_v8 = vld [vmem:[#allocation3 + $0x18] sm:$0xff] }
   0x8   :  { %v613_v7 = vld [vmem:[#allocation3 + $0x60] sm:$0xff]  ;;  %v612_v9 = vld [vmem:[#allocation3 + $0x58] sm:$0xff]  ;;  %v603_v10 = vld [vmem:[#allocation3 + $0x10] sm:$0xff] }
   0x9   :  { %v611_v11 = vld [vmem:[#allocation3 + $0x50] sm:$0xff]  ;;  %v602_v12 = vld [vmem:[#allocation3 + $0x8] sm:$0xff]  ;;  %v601_v14 = vld [vmem:[#allocation3] sm:$0xff] }
   0xa   :  { %288 = vmatpush.bf16.msra.mxu0 %v607_v2  ;;  %618 = vmatpush.bf16.msra.mxu2 %v607_v2  ;;  %v610_v13 = vld [vmem:[#allocation3 + $0x48] sm:$0xff]  ;;  %v609_v15 = vld [vmem:[#allocation3 + $0x40] sm:$0xff]  ;;  %v467_v28 = vld [vmem:[%s827_s0 + $0x10] sm:$0xf] }
   0xb   :  { %337 = vmatpush.bf16.msra.mxu1 %v615_v3  ;;  %626 = vmatpush.bf16.msra.mxu3 %v615_v3  ;;  %v459_v16 = vld [vmem:[%s827_s0] sm:$0xf]  ;;  %v586_v17 = vld [vmem:[%s827_s0 + $0x4] sm:$0xf0]  ;;  %v585_v20 = vld [vmem:[%s827_s0 + $0x4] sm:$0xf] }
   0xc   :  { %v491_v18 = vld [vmem:[%s827_s0 + $0x40] sm:$0xf]  ;;  %v594_v19 = vld [vmem:[%s827_s0 + $0x44] sm:$0xf0]  ;;  %v461_v21 = vld [vmem:[%s827_s0 + $0x8] sm:$0xf0]  ;;  %v460_v24 = vor.u32 %v586_v17, %v459_v16 }
   0xd   :  { %v593_v22 = vld [vmem:[%s827_s0 + $0x44] sm:$0xf]  ;;  %v493_v23 = vld [vmem:[%s827_s0 + $0x48] sm:$0xf0]  ;;  %v492_v25 = vor.u32 %v594_v19, %v491_v18  ;;  %v464_v26 = vor.u32 %v585_v20, %v461_v21  ;;  %v588_v29 = vld [vmem:[%s827_s0 + $0x14] sm:$0xf0] }
   0xe   :  { %289 = vmatpush.bf16.msra.mxu0 %v606_v4  ;;  %619 = vmatpush.bf16.msra.mxu2 %v606_v4  ;;  %v496_v27 = vor.u32 %v593_v22, %v493_v23  ;;  %v499_v30 = vld [vmem:[%s827_s0 + $0x50] sm:$0xf]  ;;  %v596_v31 = vld [vmem:[%s827_s0 + $0x54] sm:$0xf0]  ;;  %v587_v32 = vld [vmem:[%s827_s0 + $0x14] sm:$0xf]  ;;  %v468_v36 = vor.u32 %v588_v29, %v467_v28 }
   0xf   :  { %338 = vmatpush.bf16.msra.mxu1 %v614_v5  ;;  %627 = vmatpush.bf16.msra.mxu3 %v614_v5  ;;  %v469_v33 = vld [vmem:[%s827_s0 + $0x18] sm:$0xf0]  ;;  %v595_v34 = vld [vmem:[%s827_s0 + $0x54] sm:$0xf]  ;;  %v500_v37 = vor.u32 %v596_v31, %v499_v30  ;;  %v475_v40 = vld [vmem:[%s827_s0 + $0x20] sm:$0xf] }
  0x10   :  { %v501_v35 = vld [vmem:[%s827_s0 + $0x58] sm:$0xf0]  ;;  %v472_v38 = vor.u32 %v587_v32, %v469_v33  ;;  %v590_v41 = vld [vmem:[%s827_s0 + $0x24] sm:$0xf0]  ;;  %v507_v42 = vld [vmem:[%s827_s0 + $0x60] sm:$0xf] }
  0x11   :  { %v504_v39 = vor.u32 %v595_v34, %v501_v35  ;;  %v598_v43 = vld [vmem:[%s827_s0 + $0x64] sm:$0xf0]  ;;  %v589_v44 = vld [vmem:[%s827_s0 + $0x24] sm:$0xf]  ;;  %v477_v45 = vld [vmem:[%s827_s0 + $0x28] sm:$0xf0]  ;;  %v476_v48 = vor.u32 %v590_v41, %v475_v40 }
  0x12   :  { %290 = vmatpush.bf16.msra.mxu0 %v605_v6  ;;  %620 = vmatpush.bf16.msra.mxu2 %v605_v6  ;;  %v597_v46 = vld [vmem:[%s827_s0 + $0x64] sm:$0xf]  ;;  %v509_v47 = vld [vmem:[%s827_s0 + $0x68] sm:$0xf0]  ;;  %v508_v49 = vor.u32 %v598_v43, %v507_v42  ;;  %v480_v50 = vor.u32 %v589_v44, %v477_v45  ;;  %v483_v52 = vld [vmem:[%s827_s0 + $0x30] sm:$0xf] }
  0x13   :  { %339 = vmatpush.bf16.msra.mxu1 %v613_v7  ;;  %628 = vmatpush.bf16.msra.mxu3 %v613_v7  ;;  %v512_v51 = vor.u32 %v597_v46, %v509_v47  ;;  %v592_v53 = vld [vmem:[%s827_s0 + $0x34] sm:$0xf0]  ;;  %v515_v54 = vld [vmem:[%s827_s0 + $0x70] sm:$0xf]  ;;  %v591_v56 = vld [vmem:[%s827_s0 + $0x34] sm:$0xf] }
  0x14   :  { %v600_v55 = vld [vmem:[%s827_s0 + $0x74] sm:$0xf0]  ;;  %v485_v57 = vld [vmem:[%s827_s0 + $0x38] sm:$0xf0]  ;;  %v599_v58 = vld [vmem:[%s827_s0 + $0x74] sm:$0xf]  ;;  %v484_v60 = vor.u32 %v592_v53, %v483_v52 }
  0x15   :  { %v517_v59 = vld [vmem:[%s827_s0 + $0x78] sm:$0xf0]  ;;  %v516_v61 = vor.u32 %v600_v55, %v515_v54  ;;  %v488_v62 = vor.u32 %v591_v56, %v485_v57 }
  0x16   :  { %291 = vmatpush.bf16.msra.mxu0 %v604_v8  ;;  %621 = vmatpush.bf16.msra.mxu2 %v604_v8  ;;  %v520_v63 = vor.u32 %v599_v58, %v517_v59 }
  0x17   :  { %340 = vmatpush.bf16.msra.mxu1 %v612_v9  ;;  %629 = vmatpush.bf16.msra.mxu3 %v612_v9 }
  0x1a   :  { %292 = vmatpush.bf16.msra.mxu0 %v603_v10  ;;  %622 = vmatpush.bf16.msra.mxu2 %v603_v10 }
  0x1b   :  { %341 = vmatpush.bf16.msra.mxu1 %v611_v11  ;;  %630 = vmatpush.bf16.msra.mxu3 %v611_v11 }
  0x1e   :  { %293 = vmatpush.bf16.msra.mxu0 %v602_v12  ;;  %623 = vmatpush.bf16.msra.mxu2 %v602_v12 }
  0x1f   :  { %342 = vmatpush.bf16.msra.mxu1 %v610_v13  ;;  %631 = vmatpush.bf16.msra.mxu3 %v610_v13 }
  0x22   :  { %294 = vmatpush.bf16.msra.mxu0 %v601_v14  ;;  %624 = vmatpush.bf16.msra.mxu2 %v601_v14 }
  0x23   :  { %343 = vmatpush.bf16.msra.mxu1 %v609_v15  ;;  %632 = vmatpush.bf16.msra.mxu3 %v609_v15 }
  0x25   :  { %295 = vmatmul.bf16.vlgmr.msra.gmra.mxu0 %v460_v24  ;;  %315 = vmatmul.bf16.vlgmr.msra.gmra.mxu2 %v492_v25 }
  0x26   :  { %344 = vmatmul.bf16.vlgmr.msra.gmra.mxu1 %v464_v26  ;;  %364 = vmatmul.bf16.vlgmr.msra.gmra.mxu3 %v496_v27 }
  0x35   :  { %300 = vmatmul.bf16.gmra.mxu0 %v468_v36  ;;  %320 = vmatmul.bf16.gmra.mxu2 %v500_v37 }
  0x36   :  { %349 = vmatmul.bf16.gmra.mxu1 %v472_v38  ;;  %369 = vmatmul.bf16.gmra.mxu3 %v504_v39 }
  0x45   :  { %305 = vmatmul.bf16.gmra.mxu0 %v476_v48  ;;  %325 = vmatmul.bf16.gmra.mxu2 %v508_v49 }
  0x46   :  { %354 = vmatmul.bf16.gmra.mxu1 %v480_v50  ;;  %374 = vmatmul.bf16.gmra.mxu3 %v512_v51 }
  0x55   :  { %310 = vmatmul.bf16.gmra.mxu0 %v484_v60  ;;  %330 = vmatmul.bf16.gmra.mxu2 %v516_v61 }
  0x56   :  { %359 = vmatmul.bf16.gmra.mxu1 %v488_v62  ;;  %379 = vmatmul.bf16.gmra.mxu3 %v520_v63 }
  0xa2   :  { %v296_v0 = vpop.f32.mrf.mxu0 }
  0xa3   :  { %v345_v1 = vpop.f32.mrf.mxu1 }
  0xa4   :  { %v346_v2 = vadd.f32 %v345_v1, %v296_v0 }
  0xa6   :  { %436 = vst [vmem:[%s829_s2] sm:$0xff] %v346_v2 }
  0xa8   :  { %v316_v3 = vpop.f32.mrf.mxu2 }
  0xa9   :  { %v365_v4 = vpop.f32.mrf.mxu3 }
  0xaa   :  { %v366_v5 = vadd.f32 %v365_v4, %v316_v3  ;;  %v298_v6 = vpop.f32.mrf.mxu0 }
  0xab   :  { %v347_v7 = vpop.f32.mrf.mxu1 }
  0xac   :  { %444 = vst [vmem:[%s829_s2 + $0x40] sm:$0xff] %v366_v5  ;;  %v348_v8 = vadd.f32 %v347_v7, %v298_v6 }
  0xae   :  { %437 = vst [vmem:[%s829_s2 + $0x8] sm:$0xff] %v348_v8 }
  0xb0   :  { %v318_v9 = vpop.f32.mrf.mxu2 }
  0xb1   :  { %v367_v10 = vpop.f32.mrf.mxu3 }
  0xb2   :  { %v368_v11 = vadd.f32 %v367_v10, %v318_v9  ;;  %v301_v12 = vpop.f32.mrf.mxu0 }
  0xb3   :  { %v350_v13 = vpop.f32.mrf.mxu1 }
  0xb4   :  { %445 = vst [vmem:[%s829_s2 + $0x48] sm:$0xff] %v368_v11  ;;  %v351_v14 = vadd.f32 %v350_v13, %v301_v12 }
  0xb6   :  { %438 = vst [vmem:[%s829_s2 + $0x10] sm:$0xff] %v351_v14 }
  0xb8   :  { %v321_v15 = vpop.f32.mrf.mxu2 }
  0xb9   :  { %v370_v16 = vpop.f32.mrf.mxu3 }
  0xba   :  { %v371_v17 = vadd.f32 %v370_v16, %v321_v15  ;;  %v303_v18 = vpop.f32.mrf.mxu0 }
  0xbb   :  { %v352_v19 = vpop.f32.mrf.mxu1 }
  0xbc   :  { %446 = vst [vmem:[%s829_s2 + $0x50] sm:$0xff] %v371_v17  ;;  %v353_v20 = vadd.f32 %v352_v19, %v303_v18 }
  0xbe   :  { %439 = vst [vmem:[%s829_s2 + $0x18] sm:$0xff] %v353_v20 }
  0xc0   :  { %v323_v21 = vpop.f32.mrf.mxu2 }
  0xc1   :  { %v372_v22 = vpop.f32.mrf.mxu3 }
  0xc2   :  { %v373_v23 = vadd.f32 %v372_v22, %v323_v21  ;;  %v306_v24 = vpop.f32.mrf.mxu0 }
  0xc3   :  { %v355_v25 = vpop.f32.mrf.mxu1 }
  0xc4   :  { %447 = vst [vmem:[%s829_s2 + $0x58] sm:$0xff] %v373_v23  ;;  %v356_v26 = vadd.f32 %v355_v25, %v306_v24 }
  0xc6   :  { %440 = vst [vmem:[%s829_s2 + $0x20] sm:$0xff] %v356_v26 }
  0xc8   :  { %v326_v27 = vpop.f32.mrf.mxu2 }
  0xc9   :  { %v375_v28 = vpop.f32.mrf.mxu3 }
  0xca   :  { %v376_v29 = vadd.f32 %v375_v28, %v326_v27  ;;  %v308_v30 = vpop.f32.mrf.mxu0 }
  0xcb   :  { %v357_v31 = vpop.f32.mrf.mxu1 }
  0xcc   :  { %448 = vst [vmem:[%s829_s2 + $0x60] sm:$0xff] %v376_v29  ;;  %v358_v32 = vadd.f32 %v357_v31, %v308_v30 }
  0xce   :  { %441 = vst [vmem:[%s829_s2 + $0x28] sm:$0xff] %v358_v32 }
  0xd0   :  { %v328_v33 = vpop.f32.mrf.mxu2 }
  0xd1   :  { %v377_v34 = vpop.f32.mrf.mxu3 }
  0xd2   :  { %v378_v35 = vadd.f32 %v377_v34, %v328_v33  ;;  %v311_v36 = vpop.f32.mrf.mxu0 }
  0xd3   :  { %v360_v37 = vpop.f32.mrf.mxu1 }
  0xd4   :  { %449 = vst [vmem:[%s829_s2 + $0x68] sm:$0xff] %v378_v35  ;;  %v361_v38 = vadd.f32 %v360_v37, %v311_v36 }
  0xd6   :  { %442 = vst [vmem:[%s829_s2 + $0x30] sm:$0xff] %v361_v38 }
  0xd8   :  { %v331_v39 = vpop.f32.mrf.mxu2 }
  0xd9   :  { %v380_v40 = vpop.f32.mrf.mxu3 }
  0xda   :  { %v381_v41 = vadd.f32 %v380_v40, %v331_v39  ;;  %v313_v42 = vpop.f32.mrf.mxu0 }
  0xdb   :  { %v362_v43 = vpop.f32.mrf.mxu1 }
  0xdc   :  { %450 = vst [vmem:[%s829_s2 + $0x70] sm:$0xff] %v381_v41  ;;  %v363_v44 = vadd.f32 %v362_v43, %v313_v42 }
  0xde   :  { %443 = vst [vmem:[%s829_s2 + $0x38] sm:$0xff] %v363_v44 }
  0xe0   :  { %v333_v45 = vpop.f32.mrf.mxu2 }
  0xe1   :  { %v382_v46 = vpop.f32.mrf.mxu3 }
  0xe2   :  { %v383_v47 = vadd.f32 %v382_v46, %v333_v45 }
  0xe4   :  { %451 = vst [vmem:[%s829_s2 + $0x78] sm:$0xff] %v383_v47 }
  0xe5   :  { %456 = vsyncpa [#allocation4], 1 }

// kernel: a_call__.30
= control target key start
LH: loop header
LB: loop body
LE: loop exit
PB: predicated region body
PF: predicated region fallthrough
CT: control target
= control target key end

     0   :  { %s248_s0 = inlined_call_operand.vmem [shape: f32[128,128], index: 0, kind: input, shape index: {}]   ;;  %s249_s1 = inlined_call_operand.vmem [shape: f32[1,128], index: 1, kind: input, shape index: {}]   ;;  %s250_s2 = inlined_call_operand.vmem [shape: f32[1,128], index: 2, kind: input, shape index: {}]   ;;  %s251_s3 = inlined_call_operand.vmem [shape: f32[128,128], index: 3, kind: output, shape index: {}]  }
   0x1   :  { %v14_v0 = vld [vmem:[%s248_s0] sm:$0xff]  ;;  %v15_v3 = vld [vmem:[%s248_s0 + $0x8] sm:$0xff]  ;;  %v16_v6 = vld [vmem:[%s248_s0 + $0x10] sm:$0xff] }
   0x2   :  { %v106_v1 = vld [vmem:[%s249_s1] ss:$0 sm:$0xff]  ;;  %v17_v7 = vld [vmem:[%s248_s0 + $0x18] sm:$0xff]  ;;  %v19_v12 = vld [vmem:[%s248_s0 + $0x28] sm:$0xff] }
   0x3   :  { %v137_v2 = vld [vmem:[%s250_s2] ss:$0 sm:$0xff]  ;;  %v34_v4 = vmul.f32 %v106_v1, %v14_v0  ;;  %v35_v5 = vmul.f32 %v106_v1, %v15_v3  ;;  %v36_v9 = vmul.f32 %v106_v1, %v16_v6  ;;  %v37_v10 = vmul.f32 %v106_v1, %v17_v7  ;;  %v20_v13 = vld [vmem:[%s248_s0 + $0x30] sm:$0xff]  ;;  %v21_v14 = vld [vmem:[%s248_s0 + $0x38] sm:$0xff] }
   0x4   :  { %v18_v8 = vld [vmem:[%s248_s0 + $0x20] sm:$0xff]  ;;  %v39_v17 = vmul.f32 %v106_v1, %v19_v12  ;;  %v40_v18 = vmul.f32 %v106_v1, %v20_v13  ;;  %v41_v22 = vmul.f32 %v106_v1, %v21_v14  ;;  %v23_v24 = vld [vmem:[%s248_s0 + $0x48] sm:$0xff]  ;;  %v24_v29 = vld [vmem:[%s248_s0 + $0x50] sm:$0xff] }
   0x5   :  { %v38_v11 = vmul.f32 %v106_v1, %v18_v8  ;;  %v54_v15 = vadd.f32 %v137_v2, %v34_v4  ;;  %v55_v16 = vadd.f32 %v137_v2, %v35_v5  ;;  %v56_v19 = vadd.f32 %v137_v2, %v36_v9  ;;  %v22_v23 = vld [vmem:[%s248_s0 + $0x40] sm:$0xff]  ;;  %v25_v30 = vld [vmem:[%s248_s0 + $0x58] sm:$0xff]  ;;  %v27_v35 = vld [vmem:[%s248_s0 + $0x68] sm:$0xff] }
   0x6   :  { %v57_v20 = vadd.f32 %v137_v2, %v37_v10  ;;  %v59_v27 = vadd.f32 %v137_v2, %v39_v17  ;;  %v60_v28 = vadd.f32 %v137_v2, %v40_v18  ;;  %v26_v31 = vld [vmem:[%s248_s0 + $0x60] sm:$0xff]  ;;  %v61_v34 = vadd.f32 %v137_v2, %v41_v22  ;;  %v28_v36 = vld [vmem:[%s248_s0 + $0x70] sm:$0xff]  ;;  %v29_v41 = vld [vmem:[%s248_s0 + $0x78] sm:$0xff] }
   0x7   :  { %v58_v21 = vadd.f32 %v137_v2, %v38_v11  ;;  %v70_v25 = vmax.f32 %v54_v15, 0.0  ;;  %v71_v26 = vmax.f32 %v55_v16, 0.0  ;;  %v72_v32 = vmax.f32 %v56_v19, 0.0 }
   0x8   :  { %v73_v33 = vmax.f32 %v57_v20, 0.0  ;;  %v75_v38 = vmax.f32 %v59_v27, 0.0  ;;  %v42_v39 = vmul.f32 %v106_v1, %v22_v23  ;;  %v43_v40 = vmul.f32 %v106_v1, %v23_v24 }
   0x9   :  { %86 = vst [vmem:[%s251_s3] sm:$0xff] %v70_v25  ;;  %v74_v37 = vmax.f32 %v58_v21, 0.0  ;;  %v76_v42 = vmax.f32 %v60_v28, 0.0  ;;  %v44_v43 = vmul.f32 %v106_v1, %v24_v29  ;;  %v45_v44 = vmul.f32 %v106_v1, %v25_v30 }
   0xa   :  { %87 = vst [vmem:[%s251_s3 + $0x8] sm:$0xff] %v71_v26  ;;  %v46_v45 = vmul.f32 %v106_v1, %v26_v31  ;;  %v62_v46 = vadd.f32 %v137_v2, %v42_v39  ;;  %v63_v47 = vadd.f32 %v137_v2, %v43_v40  ;;  %v47_v48 = vmul.f32 %v106_v1, %v27_v35 }
   0xb   :  { %88 = vst [vmem:[%s251_s3 + $0x10] sm:$0xff] %v72_v32  ;;  %v48_v49 = vmul.f32 %v106_v1, %v28_v36  ;;  %v77_v50 = vmax.f32 %v61_v34, 0.0  ;;  %v64_v51 = vadd.f32 %v137_v2, %v44_v43  ;;  %v65_v52 = vadd.f32 %v137_v2, %v45_v44 }
   0xc   :  { %89 = vst [vmem:[%s251_s3 + $0x18] sm:$0xff] %v73_v33  ;;  %v49_v53 = vmul.f32 %v106_v1, %v29_v41  ;;  %v78_v54 = vmax.f32 %v62_v46, 0.0  ;;  %v66_v55 = vadd.f32 %v137_v2, %v46_v45  ;;  %v79_v56 = vmax.f32 %v63_v47, 0.0 }
   0xd   :  { %90 = vst [vmem:[%s251_s3 + $0x20] sm:$0xff] %v74_v37  ;;  %v67_v57 = vadd.f32 %v137_v2, %v47_v48  ;;  %v80_v58 = vmax.f32 %v64_v51, 0.0  ;;  %v68_v59 = vadd.f32 %v137_v2, %v48_v49  ;;  %v81_v60 = vmax.f32 %v65_v52, 0.0 }
   0xe   :  { %91 = vst [vmem:[%s251_s3 + $0x28] sm:$0xff] %v75_v38  ;;  %v69_v61 = vadd.f32 %v137_v2, %v49_v53  ;;  %v82_v62 = vmax.f32 %v66_v55, 0.0 }
   0xf   :  { %92 = vst [vmem:[%s251_s3 + $0x30] sm:$0xff] %v76_v42  ;;  %v83_v63 = vmax.f32 %v67_v57, 0.0  ;;  %v84_v0 = vmax.f32 %v68_v59, 0.0 }
  0x10   :  { %93 = vst [vmem:[%s251_s3 + $0x38] sm:$0xff] %v77_v50  ;;  %v85_v1 = vmax.f32 %v69_v61, 0.0 }
  0x11   :  { %94 = vst [vmem:[%s251_s3 + $0x40] sm:$0xff] %v78_v54 }
  0x12   :  { %95 = vst [vmem:[%s251_s3 + $0x48] sm:$0xff] %v79_v56 }
  0x13   :  { %96 = vst [vmem:[%s251_s3 + $0x50] sm:$0xff] %v80_v58 }
  0x14   :  { %97 = vst [vmem:[%s251_s3 + $0x58] sm:$0xff] %v81_v60 }
  0x15   :  { %98 = vst [vmem:[%s251_s3 + $0x60] sm:$0xff] %v82_v62 }
  0x16   :  { %99 = vst [vmem:[%s251_s3 + $0x68] sm:$0xff] %v83_v63 }
  0x17   :  { %100 = vst [vmem:[%s251_s3 + $0x70] sm:$0xff] %v84_v0 }
  0x18   :  { %101 = vst [vmem:[%s251_s3 + $0x78] sm:$0xff] %v85_v1 }

// kernel: a_call__.37
= control target key start
LH: loop header
LB: loop body
LE: loop exit
PB: predicated region body
PF: predicated region fallthrough
CT: control target
= control target key end

     0   :  { %7 = vsyncpa [#allocation4], 0  ;;  %s445_s12 = smov [#allocation3]   ;;  %s446_s14 = smov 64   ;;  %s538_s0 = inlined_call_operand.vmem [shape: bf16[128,128], index: 0, kind: input, shape index: {}]   ;;  %s539_s1 = inlined_call_operand.hbm [shape: bf16[128,128], index: 1, kind: input, shape index: {}]   ;;  %s540_s2 = inlined_call_operand.vmem [shape: f32[128,128], index: 2, kind: output, shape index: {}]  }
   0x1   :  { %s14_s11 = sshll.u32 %s539_s1, 4  ;;  %s16_s13 = sshll.u32 %s445_s12, 4  ;;  %s15_s11 = int_to_ptr.hbm [resolvable:$true] %s14_s11  ;;  %s17_s13 = int_to_ptr.vmem [resolvable:$true] %s16_s13 }
   0x2   :  { %s447_s15 = smov 4  }
   0x3   :  { %22 = dma.hbm_to_vmem [thread:$0]  %s15_s11, 1024, %s17_s13, [#allocation4], %s446_s14, %s446_s14, %s447_s15  }
   0x4   :  { %443 = dma.done.wait [#allocation4], 1024  }
   0x5   :  { %444 = vsyncadd [#allocation4], 4294966272  ;;  %v391_v0 = vld [vmem:[#allocation3 + $0x38] sm:$0xff]  ;;  %v390_v1 = vld [vmem:[#allocation3 + $0x30] sm:$0xff] }
   0x6   :  { %191 = vmatpush.bf16.msra.mxu0 %v391_v0  ;;  %392 = vmatpush.bf16.msra.mxu1 %v391_v0  ;;  %v389_v2 = vld [vmem:[#allocation3 + $0x28] sm:$0xff]  ;;  %v388_v3 = vld [vmem:[#allocation3 + $0x20] sm:$0xff]  ;;  %v387_v4 = vld [vmem:[#allocation3 + $0x18] sm:$0xff] }
   0x7   :  { %393 = vmatpush.bf16.msra.mxu2 %v391_v0  ;;  %394 = vmatpush.bf16.msra.mxu3 %v391_v0  ;;  %v386_v5 = vld [vmem:[#allocation3 + $0x10] sm:$0xff]  ;;  %v385_v6 = vld [vmem:[#allocation3 + $0x8] sm:$0xff]  ;;  %v384_v7 = vld [vmem:[#allocation3] sm:$0xff] }
   0x8   :  { %v376_v8 = vld [vmem:[%s538_s0] sm:$0xff]  ;;  %v378_v9 = vld [vmem:[%s538_s0 + $0x10] sm:$0xff]  ;;  %v377_v12 = vld [vmem:[%s538_s0 + $0x8] sm:$0xff] }
   0x9   :  { %v380_v10 = vld [vmem:[%s538_s0 + $0x20] sm:$0xff]  ;;  %v382_v11 = vld [vmem:[%s538_s0 + $0x30] sm:$0xff]  ;;  %v379_v13 = vld [vmem:[%s538_s0 + $0x18] sm:$0xff] }
   0xa   :  { %192 = vmatpush.bf16.msra.mxu0 %v390_v1  ;;  %395 = vmatpush.bf16.msra.mxu1 %v390_v1  ;;  %v381_v14 = vld [vmem:[%s538_s0 + $0x28] sm:$0xff]  ;;  %v383_v15 = vld [vmem:[%s538_s0 + $0x38] sm:$0xff] }
   0xb   :  { %396 = vmatpush.bf16.msra.mxu2 %v390_v1  ;;  %397 = vmatpush.bf16.msra.mxu3 %v390_v1 }
   0xe   :  { %193 = vmatpush.bf16.msra.mxu0 %v389_v2  ;;  %398 = vmatpush.bf16.msra.mxu1 %v389_v2 }
   0xf   :  { %399 = vmatpush.bf16.msra.mxu2 %v389_v2  ;;  %400 = vmatpush.bf16.msra.mxu3 %v389_v2 }
  0x12   :  { %194 = vmatpush.bf16.msra.mxu0 %v388_v3  ;;  %401 = vmatpush.bf16.msra.mxu1 %v388_v3 }
  0x13   :  { %402 = vmatpush.bf16.msra.mxu2 %v388_v3  ;;  %403 = vmatpush.bf16.msra.mxu3 %v388_v3 }
  0x16   :  { %195 = vmatpush.bf16.msra.mxu0 %v387_v4  ;;  %404 = vmatpush.bf16.msra.mxu1 %v387_v4 }
  0x17   :  { %405 = vmatpush.bf16.msra.mxu2 %v387_v4  ;;  %406 = vmatpush.bf16.msra.mxu3 %v387_v4 }
  0x1a   :  { %196 = vmatpush.bf16.msra.mxu0 %v386_v5  ;;  %407 = vmatpush.bf16.msra.mxu1 %v386_v5 }
  0x1b   :  { %408 = vmatpush.bf16.msra.mxu2 %v386_v5  ;;  %409 = vmatpush.bf16.msra.mxu3 %v386_v5 }
  0x1e   :  { %197 = vmatpush.bf16.msra.mxu0 %v385_v6  ;;  %410 = vmatpush.bf16.msra.mxu1 %v385_v6 }
  0x1f   :  { %411 = vmatpush.bf16.msra.mxu2 %v385_v6  ;;  %412 = vmatpush.bf16.msra.mxu3 %v385_v6 }
  0x22   :  { %198 = vmatpush.bf16.msra.mxu0 %v384_v7  ;;  %413 = vmatpush.bf16.msra.mxu1 %v384_v7 }
  0x23   :  { %414 = vmatpush.bf16.msra.mxu2 %v384_v7  ;;  %415 = vmatpush.bf16.msra.mxu3 %v384_v7 }
  0x25   :  { %199 = vmatmul.bf16.vlgmr.msra.gmra.mxu0 %v376_v8  ;;  %209 = vmatmul.bf16.vlgmr.msra.gmra.mxu1 %v378_v9 }
  0x26   :  { %219 = vmatmul.bf16.vlgmr.msra.gmra.mxu2 %v380_v10  ;;  %229 = vmatmul.bf16.vlgmr.msra.gmra.mxu3 %v382_v11 }
  0x35   :  { %204 = vmatmul.bf16.gmra.mxu0 %v377_v12  ;;  %214 = vmatmul.bf16.gmra.mxu1 %v379_v13 }
  0x36   :  { %224 = vmatmul.bf16.gmra.mxu2 %v381_v14  ;;  %234 = vmatmul.bf16.gmra.mxu3 %v383_v15 }
  0xa2   :  { %v200_v16 = vpop.f32.mrf.mxu0  ;;  %v210_v17 = vpop.f32.mrf.mxu1 }
  0xa3   :  { %291 = vst [vmem:[%s540_s2] sm:$0xff] %v200_v16 }
  0xa4   :  { %295 = vst [vmem:[%s540_s2 + $0x20] sm:$0xff] %v210_v17 }
  0xa9   :  { %v220_v18 = vpop.f32.mrf.mxu2  ;;  %v230_v19 = vpop.f32.mrf.mxu3 }
  0xaa   :  { %299 = vst [vmem:[%s540_s2 + $0x40] sm:$0xff] %v220_v18  ;;  %v202_v20 = vpop.f32.mrf.mxu0  ;;  %v212_v21 = vpop.f32.mrf.mxu1 }
  0xab   :  { %303 = vst [vmem:[%s540_s2 + $0x60] sm:$0xff] %v230_v19 }
  0xac   :  { %292 = vst [vmem:[%s540_s2 + $0x8] sm:$0xff] %v202_v20 }
  0xad   :  { %296 = vst [vmem:[%s540_s2 + $0x28] sm:$0xff] %v212_v21 }
  0xb1   :  { %v222_v22 = vpop.f32.mrf.mxu2  ;;  %v232_v23 = vpop.f32.mrf.mxu3 }
  0xb2   :  { %300 = vst [vmem:[%s540_s2 + $0x48] sm:$0xff] %v222_v22  ;;  %v205_v24 = vpop.f32.mrf.mxu0  ;;  %v215_v25 = vpop.f32.mrf.mxu1 }
  0xb3   :  { %304 = vst [vmem:[%s540_s2 + $0x68] sm:$0xff] %v232_v23 }
  0xb4   :  { %293 = vst [vmem:[%s540_s2 + $0x10] sm:$0xff] %v205_v24 }
  0xb5   :  { %297 = vst [vmem:[%s540_s2 + $0x30] sm:$0xff] %v215_v25 }
  0xb9   :  { %v225_v26 = vpop.f32.mrf.mxu2  ;;  %v235_v27 = vpop.f32.mrf.mxu3 }
  0xba   :  { %301 = vst [vmem:[%s540_s2 + $0x50] sm:$0xff] %v225_v26  ;;  %v207_v28 = vpop.f32.mrf.mxu0  ;;  %v217_v29 = vpop.f32.mrf.mxu1 }
  0xbb   :  { %305 = vst [vmem:[%s540_s2 + $0x70] sm:$0xff] %v235_v27 }
  0xbc   :  { %294 = vst [vmem:[%s540_s2 + $0x18] sm:$0xff] %v207_v28 }
  0xbd   :  { %298 = vst [vmem:[%s540_s2 + $0x38] sm:$0xff] %v217_v29 }
  0xc1   :  { %v227_v30 = vpop.f32.mrf.mxu2  ;;  %v237_v31 = vpop.f32.mrf.mxu3 }
  0xc2   :  { %302 = vst [vmem:[%s540_s2 + $0x58] sm:$0xff] %v227_v30 }
  0xc3   :  { %306 = vst [vmem:[%s540_s2 + $0x78] sm:$0xff] %v237_v31 }
  0xc4   :  { %311 = vsyncpa [#allocation4], 1 }

// kernel: a_call__.41
= control target key start
LH: loop header
LB: loop body
LE: loop exit
PB: predicated region body
PF: predicated region fallthrough
CT: control target
= control target key end

     0   :  { %v297_v0 = vmov 0.0   ;;  %s523_s0 = inlined_call_operand.vmem [shape: f32[512,128], index: 0, kind: input, shape index: {}]   ;;  %s524_s1 = inlined_call_operand.vmem [shape: f32[1,128], index: 1, kind: output, shape index: {0}]   ;;  %s525_s2 = inlined_call_operand.vmem [shape: f32[1,128], index: 2, kind: output, shape index: {1}]  }
   0x1   :  { %14 = vst [vmem:[%s524_s1] sm:$0x1] %v297_v0  ;;  %v16_v1 = vld [vmem:[%s523_s0] sm:$0xff]  ;;  %v17_v2 = vld [vmem:[%s523_s0 + $0x8] sm:$0xff]  ;;  %v18_v3 = vld [vmem:[%s523_s0 + $0x10] sm:$0xff] }
   0x2   :  { %15 = vst [vmem:[%s525_s2] sm:$0x1] %v297_v0  ;;  %v19_v4 = vld [vmem:[%s523_s0 + $0x18] sm:$0xff]  ;;  %v81_v5 = vadd.f32 %v17_v2, %v16_v1  ;;  %v153_v6 = vmul.f32 %v16_v1, %v16_v1  ;;  %v154_v7 = vmul.f32 %v17_v2, %v17_v2  ;;  %v155_v8 = vmul.f32 %v18_v3, %v18_v3  ;;  %v20_v9 = vld [vmem:[%s523_s0 + $0x20] sm:$0xff]  ;;  %v21_v13 = vld [vmem:[%s523_s0 + $0x28] sm:$0xff] }
   0x3   :  { %v156_v11 = vmul.f32 %v19_v4, %v19_v4  ;;  %v157_v15 = vmul.f32 %v20_v9, %v20_v9  ;;  %v22_v17 = vld [vmem:[%s523_s0 + $0x30] sm:$0xff]  ;;  %v158_v19 = vmul.f32 %v21_v13, %v21_v13  ;;  %v23_v21 = vld [vmem:[%s523_s0 + $0x38] sm:$0xff]  ;;  %v24_v25 = vld [vmem:[%s523_s0 + $0x40] sm:$0xff] }
   0x4   :  { %v82_v10 = vadd.f32 %v81_v5, %v18_v3  ;;  %v217_v12 = vadd.f32 %v154_v7, %v153_v6  ;;  %v159_v23 = vmul.f32 %v22_v17, %v22_v17  ;;  %v160_v27 = vmul.f32 %v23_v21, %v23_v21  ;;  %v25_v29 = vld [vmem:[%s523_s0 + $0x48] sm:$0xff]  ;;  %v26_v33 = vld [vmem:[%s523_s0 + $0x50] sm:$0xff]  ;;  %v27_v37 = vld [vmem:[%s523_s0 + $0x58] sm:$0xff] }
   0x5   :  { %v161_v31 = vmul.f32 %v24_v25, %v24_v25  ;;  %v162_v35 = vmul.f32 %v25_v29, %v25_v29  ;;  %v163_v39 = vmul.f32 %v26_v33, %v26_v33  ;;  %v28_v41 = vld [vmem:[%s523_s0 + $0x60] sm:$0xff]  ;;  %v164_v43 = vmul.f32 %v27_v37, %v27_v37  ;;  %v29_v45 = vld [vmem:[%s523_s0 + $0x68] sm:$0xff]  ;;  %v30_v49 = vld [vmem:[%s523_s0 + $0x70] sm:$0xff] }
   0x6   :  { %v83_v14 = vadd.f32 %v82_v10, %v19_v4  ;;  %v218_v16 = vadd.f32 %v217_v12, %v155_v8  ;;  %v165_v47 = vmul.f32 %v28_v41, %v28_v41  ;;  %v166_v51 = vmul.f32 %v29_v45, %v29_v45  ;;  %v31_v53 = vld [vmem:[%s523_s0 + $0x78] sm:$0xff]  ;;  %v32_v57 = vld [vmem:[%s523_s0 + $0x80] sm:$0xff]  ;;  %v33_v61 = vld [vmem:[%s523_s0 + $0x88] sm:$0xff] }
   0x7   :  { %v167_v55 = vmul.f32 %v30_v49, %v30_v49  ;;  %v168_v59 = vmul.f32 %v31_v53, %v31_v53  ;;  %v169_v63 = vmul.f32 %v32_v57, %v32_v57  ;;  %v34_v1 = vld [vmem:[%s523_s0 + $0x90] sm:$0xff]  ;;  %v170_v3 = vmul.f32 %v33_v61, %v33_v61  ;;  %v35_v5 = vld [vmem:[%s523_s0 + $0x98] sm:$0xff] }
   0x8   :  { %v84_v18 = vadd.f32 %v83_v14, %v20_v9  ;;  %v219_v20 = vadd.f32 %v218_v16, %v156_v11  ;;  %v171_v7 = vmul.f32 %v34_v1, %v34_v1  ;;  %v36_v9 = vld [vmem:[%s523_s0 + $0xa0] sm:$0xff]  ;;  %v172_v11 = vmul.f32 %v35_v5, %v35_v5 }
   0xa   :  { %v85_v22 = vadd.f32 %v84_v18, %v21_v13  ;;  %v220_v24 = vadd.f32 %v219_v20, %v157_v15  ;;  %v37_v13 = vld [vmem:[%s523_s0 + $0xa8] sm:$0xff]  ;;  %v173_v15 = vmul.f32 %v36_v9, %v36_v9 }
   0xc   :  { %v86_v26 = vadd.f32 %v85_v22, %v22_v17  ;;  %v221_v28 = vadd.f32 %v220_v24, %v158_v19  ;;  %v38_v17 = vld [vmem:[%s523_s0 + $0xb0] sm:$0xff]  ;;  %v174_v19 = vmul.f32 %v37_v13, %v37_v13 }
   0xe   :  { %v87_v30 = vadd.f32 %v86_v26, %v23_v21  ;;  %v222_v32 = vadd.f32 %v221_v28, %v159_v23  ;;  %v39_v21 = vld [vmem:[%s523_s0 + $0xb8] sm:$0xff]  ;;  %v175_v23 = vmul.f32 %v38_v17, %v38_v17 }
  0x10   :  { %v88_v34 = vadd.f32 %v87_v30, %v24_v25  ;;  %v223_v36 = vadd.f32 %v222_v32, %v160_v27  ;;  %v40_v25 = vld [vmem:[%s523_s0 + $0xc0] sm:$0xff]  ;;  %v176_v27 = vmul.f32 %v39_v21, %v39_v21 }
  0x12   :  { %v89_v38 = vadd.f32 %v88_v34, %v25_v29  ;;  %v224_v40 = vadd.f32 %v223_v36, %v161_v31  ;;  %v41_v29 = vld [vmem:[%s523_s0 + $0xc8] sm:$0xff]  ;;  %v177_v31 = vmul.f32 %v40_v25, %v40_v25 }
  0x14   :  { %v90_v42 = vadd.f32 %v89_v38, %v26_v33  ;;  %v225_v44 = vadd.f32 %v224_v40, %v162_v35  ;;  %v42_v33 = vld [vmem:[%s523_s0 + $0xd0] sm:$0xff]  ;;  %v178_v35 = vmul.f32 %v41_v29, %v41_v29 }
  0x16   :  { %v91_v46 = vadd.f32 %v90_v42, %v27_v37  ;;  %v226_v48 = vadd.f32 %v225_v44, %v163_v39  ;;  %v43_v37 = vld [vmem:[%s523_s0 + $0xd8] sm:$0xff]  ;;  %v179_v39 = vmul.f32 %v42_v33, %v42_v33 }
  0x18   :  { %v92_v50 = vadd.f32 %v91_v46, %v28_v41  ;;  %v227_v52 = vadd.f32 %v226_v48, %v164_v43  ;;  %v44_v41 = vld [vmem:[%s523_s0 + $0xe0] sm:$0xff]  ;;  %v180_v43 = vmul.f32 %v43_v37, %v43_v37 }
  0x1a   :  { %v93_v54 = vadd.f32 %v92_v50, %v29_v45  ;;  %v228_v56 = vadd.f32 %v227_v52, %v165_v47  ;;  %v45_v45 = vld [vmem:[%s523_s0 + $0xe8] sm:$0xff]  ;;  %v181_v47 = vmul.f32 %v44_v41, %v44_v41 }
  0x1c   :  { %v94_v58 = vadd.f32 %v93_v54, %v30_v49  ;;  %v229_v60 = vadd.f32 %v228_v56, %v166_v51  ;;  %v46_v49 = vld [vmem:[%s523_s0 + $0xf0] sm:$0xff]  ;;  %v182_v51 = vmul.f32 %v45_v45, %v45_v45 }
  0x1e   :  { %v95_v62 = vadd.f32 %v94_v58, %v31_v53  ;;  %v230_v0 = vadd.f32 %v229_v60, %v167_v55  ;;  %v47_v53 = vld [vmem:[%s523_s0 + $0xf8] sm:$0xff]  ;;  %v183_v55 = vmul.f32 %v46_v49, %v46_v49 }
  0x20   :  { %v96_v2 = vadd.f32 %v95_v62, %v32_v57  ;;  %v231_v4 = vadd.f32 %v230_v0, %v168_v59  ;;  %v48_v57 = vld [vmem:[%s523_s0 + $0x100] sm:$0xff]  ;;  %v184_v59 = vmul.f32 %v47_v53, %v47_v53 }
  0x22   :  { %v97_v6 = vadd.f32 %v96_v2, %v33_v61  ;;  %v232_v8 = vadd.f32 %v231_v4, %v169_v63  ;;  %v49_v61 = vld [vmem:[%s523_s0 + $0x108] sm:$0xff]  ;;  %v185_v63 = vmul.f32 %v48_v57, %v48_v57 }
  0x24   :  { %v98_v10 = vadd.f32 %v97_v6, %v34_v1  ;;  %v233_v12 = vadd.f32 %v232_v8, %v170_v3  ;;  %v50_v1 = vld [vmem:[%s523_s0 + $0x110] sm:$0xff]  ;;  %v186_v3 = vmul.f32 %v49_v61, %v49_v61 }
  0x26   :  { %v99_v14 = vadd.f32 %v98_v10, %v35_v5  ;;  %v234_v16 = vadd.f32 %v233_v12, %v171_v7  ;;  %v51_v5 = vld [vmem:[%s523_s0 + $0x118] sm:$0xff]  ;;  %v187_v7 = vmul.f32 %v50_v1, %v50_v1 }
  0x28   :  { %v100_v18 = vadd.f32 %v99_v14, %v36_v9  ;;  %v235_v20 = vadd.f32 %v234_v16, %v172_v11  ;;  %v52_v9 = vld [vmem:[%s523_s0 + $0x120] sm:$0xff]  ;;  %v188_v11 = vmul.f32 %v51_v5, %v51_v5 }
  0x2a   :  { %v101_v22 = vadd.f32 %v100_v18, %v37_v13  ;;  %v236_v24 = vadd.f32 %v235_v20, %v173_v15  ;;  %v53_v13 = vld [vmem:[%s523_s0 + $0x128] sm:$0xff]  ;;  %v189_v15 = vmul.f32 %v52_v9, %v52_v9 }
  0x2c   :  { %v102_v26 = vadd.f32 %v101_v22, %v38_v17  ;;  %v237_v28 = vadd.f32 %v236_v24, %v174_v19  ;;  %v54_v17 = vld [vmem:[%s523_s0 + $0x130] sm:$0xff]  ;;  %v190_v19 = vmul.f32 %v53_v13, %v53_v13 }
  0x2e   :  { %v103_v30 = vadd.f32 %v102_v26, %v39_v21  ;;  %v238_v32 = vadd.f32 %v237_v28, %v175_v23  ;;  %v55_v21 = vld [vmem:[%s523_s0 + $0x138] sm:$0xff]  ;;  %v191_v23 = vmul.f32 %v54_v17, %v54_v17 }
  0x30   :  { %v104_v34 = vadd.f32 %v103_v30, %v40_v25  ;;  %v239_v36 = vadd.f32 %v238_v32, %v176_v27  ;;  %v56_v25 = vld [vmem:[%s523_s0 + $0x140] sm:$0xff]  ;;  %v192_v27 = vmul.f32 %v55_v21, %v55_v21 }
  0x32   :  { %v105_v38 = vadd.f32 %v104_v34, %v41_v29  ;;  %v240_v40 = vadd.f32 %v239_v36, %v177_v31  ;;  %v57_v29 = vld [vmem:[%s523_s0 + $0x148] sm:$0xff]  ;;  %v193_v31 = vmul.f32 %v56_v25, %v56_v25 }
  0x34   :  { %v106_v42 = vadd.f32 %v105_v38, %v42_v33  ;;  %v241_v44 = vadd.f32 %v240_v40, %v178_v35  ;;  %v58_v33 = vld [vmem:[%s523_s0 + $0x150] sm:$0xff]  ;;  %v194_v35 = vmul.f32 %v57_v29, %v57_v29 }
  0x36   :  { %v107_v46 = vadd.f32 %v106_v42, %v43_v37  ;;  %v242_v48 = vadd.f32 %v241_v44, %v179_v39  ;;  %v59_v37 = vld [vmem:[%s523_s0 + $0x158] sm:$0xff]  ;;  %v195_v39 = vmul.f32 %v58_v33, %v58_v33 }
  0x38   :  { %v108_v50 = vadd.f32 %v107_v46, %v44_v41  ;;  %v243_v52 = vadd.f32 %v242_v48, %v180_v43  ;;  %v60_v41 = vld [vmem:[%s523_s0 + $0x160] sm:$0xff]  ;;  %v196_v43 = vmul.f32 %v59_v37, %v59_v37 }
  0x3a   :  { %v109_v54 = vadd.f32 %v108_v50, %v45_v45  ;;  %v244_v56 = vadd.f32 %v243_v52, %v181_v47  ;;  %v61_v45 = vld [vmem:[%s523_s0 + $0x168] sm:$0xff]  ;;  %v197_v47 = vmul.f32 %v60_v41, %v60_v41 }
  0x3c   :  { %v110_v58 = vadd.f32 %v109_v54, %v46_v49  ;;  %v245_v60 = vadd.f32 %v244_v56, %v182_v51  ;;  %v62_v49 = vld [vmem:[%s523_s0 + $0x170] sm:$0xff]  ;;  %v198_v51 = vmul.f32 %v61_v45, %v61_v45 }
  0x3e   :  { %v111_v62 = vadd.f32 %v110_v58, %v47_v53  ;;  %v246_v0 = vadd.f32 %v245_v60, %v183_v55  ;;  %v63_v53 = vld [vmem:[%s523_s0 + $0x178] sm:$0xff]  ;;  %v199_v55 = vmul.f32 %v62_v49, %v62_v49 }
  0x40   :  { %v112_v2 = vadd.f32 %v111_v62, %v48_v57  ;;  %v247_v4 = vadd.f32 %v246_v0, %v184_v59  ;;  %v64_v57 = vld [vmem:[%s523_s0 + $0x180] sm:$0xff]  ;;  %v200_v59 = vmul.f32 %v63_v53, %v63_v53 }
  0x42   :  { %v113_v6 = vadd.f32 %v112_v2, %v49_v61  ;;  %v248_v8 = vadd.f32 %v247_v4, %v185_v63  ;;  %v65_v61 = vld [vmem:[%s523_s0 + $0x188] sm:$0xff]  ;;  %v201_v63 = vmul.f32 %v64_v57, %v64_v57 }
  0x44   :  { %v114_v10 = vadd.f32 %v113_v6, %v50_v1  ;;  %v249_v12 = vadd.f32 %v248_v8, %v186_v3  ;;  %v66_v1 = vld [vmem:[%s523_s0 + $0x190] sm:$0xff]  ;;  %v202_v3 = vmul.f32 %v65_v61, %v65_v61 }
  0x46   :  { %v115_v14 = vadd.f32 %v114_v10, %v51_v5  ;;  %v250_v16 = vadd.f32 %v249_v12, %v187_v7  ;;  %v67_v5 = vld [vmem:[%s523_s0 + $0x198] sm:$0xff]  ;;  %v203_v7 = vmul.f32 %v66_v1, %v66_v1 }
  0x48   :  { %v116_v18 = vadd.f32 %v115_v14, %v52_v9  ;;  %v251_v20 = vadd.f32 %v250_v16, %v188_v11  ;;  %v68_v9 = vld [vmem:[%s523_s0 + $0x1a0] sm:$0xff]  ;;  %v204_v11 = vmul.f32 %v67_v5, %v67_v5 }
  0x4a   :  { %v117_v22 = vadd.f32 %v116_v18, %v53_v13  ;;  %v252_v24 = vadd.f32 %v251_v20, %v189_v15  ;;  %v69_v13 = vld [vmem:[%s523_s0 + $0x1a8] sm:$0xff]  ;;  %v205_v15 = vmul.f32 %v68_v9, %v68_v9 }
  0x4c   :  { %v118_v26 = vadd.f32 %v117_v22, %v54_v17  ;;  %v253_v28 = vadd.f32 %v252_v24, %v190_v19  ;;  %v70_v17 = vld [vmem:[%s523_s0 + $0x1b0] sm:$0xff]  ;;  %v206_v19 = vmul.f32 %v69_v13, %v69_v13 }
  0x4e   :  { %v119_v30 = vadd.f32 %v118_v26, %v55_v21  ;;  %v254_v32 = vadd.f32 %v253_v28, %v191_v23  ;;  %v71_v21 = vld [vmem:[%s523_s0 + $0x1b8] sm:$0xff]  ;;  %v207_v23 = vmul.f32 %v70_v17, %v70_v17 }
  0x50   :  { %v120_v34 = vadd.f32 %v119_v30, %v56_v25  ;;  %v255_v36 = vadd.f32 %v254_v32, %v192_v27  ;;  %v72_v25 = vld [vmem:[%s523_s0 + $0x1c0] sm:$0xff]  ;;  %v208_v27 = vmul.f32 %v71_v21, %v71_v21 }
  0x52   :  { %v121_v38 = vadd.f32 %v120_v34, %v57_v29  ;;  %v256_v40 = vadd.f32 %v255_v36, %v193_v31  ;;  %v73_v29 = vld [vmem:[%s523_s0 + $0x1c8] sm:$0xff]  ;;  %v209_v31 = vmul.f32 %v72_v25, %v72_v25 }
  0x54   :  { %v122_v42 = vadd.f32 %v121_v38, %v58_v33  ;;  %v257_v44 = vadd.f32 %v256_v40, %v194_v35  ;;  %v74_v33 = vld [vmem:[%s523_s0 + $0x1d0] sm:$0xff]  ;;  %v210_v35 = vmul.f32 %v73_v29, %v73_v29 }
  0x56   :  { %v123_v46 = vadd.f32 %v122_v42, %v59_v37  ;;  %v258_v48 = vadd.f32 %v257_v44, %v195_v39  ;;  %v75_v37 = vld [vmem:[%s523_s0 + $0x1d8] sm:$0xff]  ;;  %v211_v39 = vmul.f32 %v74_v33, %v74_v33 }
  0x58   :  { %v124_v50 = vadd.f32 %v123_v46, %v60_v41  ;;  %v259_v52 = vadd.f32 %v258_v48, %v196_v43  ;;  %v76_v41 = vld [vmem:[%s523_s0 + $0x1e0] sm:$0xff]  ;;  %v212_v43 = vmul.f32 %v75_v37, %v75_v37 }
  0x5a   :  { %v125_v54 = vadd.f32 %v124_v50, %v61_v45  ;;  %v260_v56 = vadd.f32 %v259_v52, %v197_v47  ;;  %v77_v45 = vld [vmem:[%s523_s0 + $0x1e8] sm:$0xff]  ;;  %v213_v47 = vmul.f32 %v76_v41, %v76_v41 }
  0x5c   :  { %v126_v58 = vadd.f32 %v125_v54, %v62_v49  ;;  %v261_v60 = vadd.f32 %v260_v56, %v198_v51  ;;  %v78_v49 = vld [vmem:[%s523_s0 + $0x1f0] sm:$0xff]  ;;  %v214_v51 = vmul.f32 %v77_v45, %v77_v45 }
  0x5e   :  { %v127_v62 = vadd.f32 %v126_v58, %v63_v53  ;;  %v262_v0 = vadd.f32 %v261_v60, %v199_v55  ;;  %v79_v53 = vld [vmem:[%s523_s0 + $0x1f8] sm:$0xff]  ;;  %v215_v55 = vmul.f32 %v78_v49, %v78_v49 }
  0x5f   :  { %v216_v58 = vmul.f32 %v79_v53, %v79_v53 }
  0x60   :  { %v128_v2 = vadd.f32 %v127_v62, %v64_v57  ;;  %v263_v4 = vadd.f32 %v262_v0, %v200_v59 }
  0x62   :  { %v129_v6 = vadd.f32 %v128_v2, %v65_v61  ;;  %v264_v8 = vadd.f32 %v263_v4, %v201_v63 }
  0x64   :  { %v130_v10 = vadd.f32 %v129_v6, %v66_v1  ;;  %v265_v12 = vadd.f32 %v264_v8, %v202_v3 }
  0x66   :  { %v131_v14 = vadd.f32 %v130_v10, %v67_v5  ;;  %v266_v16 = vadd.f32 %v265_v12, %v203_v7  ;;  %v80_v7 = vld [vmem:[%s524_s1] sm:$0x1] }
  0x67   :  { %v152_v12 = vld [vmem:[%s525_s2] sm:$0x1] }
  0x68   :  { %v132_v18 = vadd.f32 %v131_v14, %v68_v9  ;;  %v267_v20 = vadd.f32 %v266_v16, %v204_v11 }
  0x6a   :  { %v133_v22 = vadd.f32 %v132_v18, %v69_v13  ;;  %v268_v24 = vadd.f32 %v267_v20, %v205_v15 }
  0x6c   :  { %v134_v26 = vadd.f32 %v133_v22, %v70_v17  ;;  %v269_v28 = vadd.f32 %v268_v24, %v206_v19 }
  0x6e   :  { %v135_v30 = vadd.f32 %v134_v26, %v71_v21  ;;  %v270_v32 = vadd.f32 %v269_v28, %v207_v23 }
  0x70   :  { %v136_v34 = vadd.f32 %v135_v30, %v72_v25  ;;  %v271_v36 = vadd.f32 %v270_v32, %v208_v27 }
  0x72   :  { %v137_v38 = vadd.f32 %v136_v34, %v73_v29  ;;  %v272_v40 = vadd.f32 %v271_v36, %v209_v31 }
  0x74   :  { %v138_v42 = vadd.f32 %v137_v38, %v74_v33  ;;  %v273_v44 = vadd.f32 %v272_v40, %v210_v35 }
  0x76   :  { %v139_v46 = vadd.f32 %v138_v42, %v75_v37  ;;  %v274_v48 = vadd.f32 %v273_v44, %v211_v39 }
  0x78   :  { %v140_v50 = vadd.f32 %v139_v46, %v76_v41  ;;  %v275_v52 = vadd.f32 %v274_v48, %v212_v43 }
  0x7a   :  { %v141_v54 = vadd.f32 %v140_v50, %v77_v45  ;;  %v276_v56 = vadd.f32 %v275_v52, %v213_v47 }
  0x7c   :  { %v142_v57 = vadd.f32 %v141_v54, %v78_v49  ;;  %v277_v59 = vadd.f32 %v276_v56, %v214_v51 }
  0x7e   :  { %v143_v60 = vadd.f32 %v142_v57, %v79_v53  ;;  %v278_v61 = vadd.f32 %v277_v59, %v215_v55 }
  0x80   :  { %v144_v62 = vrot.slane %v143_v60, 4  ;;  %v279_v63 = vadd.f32 %v278_v61, %v216_v58 }
  0x82   :  { %v145_v0 = vadd.f32 %v144_v62, %v143_v60  ;;  %v280_v1 = vrot.slane %v279_v63, 4 }
  0x84   :  { %v146_v2 = vrot.slane %v145_v0, 2  ;;  %v281_v3 = vadd.f32 %v280_v1, %v279_v63 }
  0x86   :  { %v147_v4 = vadd.f32 %v146_v2, %v145_v0  ;;  %v282_v5 = vrot.slane %v281_v3, 2 }
  0x88   :  { %v148_v6 = vrot.slane %v147_v4, 1  ;;  %v283_v8 = vadd.f32 %v282_v5, %v281_v3 }
  0x8a   :  { %v149_v9 = vadd.f32 %v148_v6, %v147_v4  ;;  %v284_v10 = vrot.slane %v283_v8, 1 }
  0x8c   :  { %v150_v11 = vadd.f32 %v149_v9, %v80_v7  ;;  %v285_v13 = vadd.f32 %v284_v10, %v283_v8 }
  0x8e   :  { %151 = vst [vmem:[%s524_s1] sm:$0x1] %v150_v11  ;;  %v286_v14 = vadd.f32 %v285_v13, %v152_v12 }
  0x90   :  { %287 = vst [vmem:[%s525_s2] sm:$0x1] %v286_v14 }

// kernel: a_call__.42
= control target key start
LH: loop header
LB: loop body
LE: loop exit
PB: predicated region body
PF: predicated region fallthrough
CT: control target
= control target key end

     0   :  { %s893_s0 = inlined_call_operand.vmem [shape: f32[512,128], index: 0, kind: input, shape index: {}]   ;;  %s894_s1 = inlined_call_operand.vmem [shape: f32[1,128], index: 1, kind: input, shape index: {}]   ;;  %s895_s2 = inlined_call_operand.vmem [shape: f32[1,128], index: 2, kind: input, shape index: {}]   ;;  %s896_s3 = inlined_call_operand.vmem [shape: f32[512,128], index: 3, kind: output, shape index: {}]  }
   0x1   :  { %v14_v0 = vld [vmem:[%s893_s0] sm:$0xff]  ;;  %v15_v3 = vld [vmem:[%s893_s0 + $0x8] sm:$0xff]  ;;  %v16_v6 = vld [vmem:[%s893_s0 + $0x10] sm:$0xff] }
   0x2   :  { %v374_v1 = vld [vmem:[%s894_s1] ss:$0 sm:$0xff]  ;;  %v17_v7 = vld [vmem:[%s893_s0 + $0x18] sm:$0xff]  ;;  %v19_v12 = vld [vmem:[%s893_s0 + $0x28] sm:$0xff] }
   0x3   :  { %v379_v2 = vld [vmem:[%s895_s2] ss:$0 sm:$0xff]  ;;  %v82_v4 = vmul.f32 %v374_v1, %v14_v0  ;;  %v83_v5 = vmul.f32 %v374_v1, %v15_v3  ;;  %v84_v9 = vmul.f32 %v374_v1, %v16_v6  ;;  %v85_v10 = vmul.f32 %v374_v1, %v17_v7  ;;  %v20_v13 = vld [vmem:[%s893_s0 + $0x30] sm:$0xff]  ;;  %v21_v14 = vld [vmem:[%s893_s0 + $0x38] sm:$0xff] }
   0x4   :  { %v18_v8 = vld [vmem:[%s893_s0 + $0x20] sm:$0xff]  ;;  %v87_v17 = vmul.f32 %v374_v1, %v19_v12  ;;  %v88_v18 = vmul.f32 %v374_v1, %v20_v13  ;;  %v89_v22 = vmul.f32 %v374_v1, %v21_v14  ;;  %v23_v24 = vld [vmem:[%s893_s0 + $0x48] sm:$0xff]  ;;  %v24_v29 = vld [vmem:[%s893_s0 + $0x50] sm:$0xff] }
   0x5   :  { %v86_v11 = vmul.f32 %v374_v1, %v18_v8  ;;  %v150_v15 = vadd.f32 %v379_v2, %v82_v4  ;;  %v151_v16 = vadd.f32 %v379_v2, %v83_v5  ;;  %v152_v19 = vadd.f32 %v379_v2, %v84_v9  ;;  %v22_v23 = vld [vmem:[%s893_s0 + $0x40] sm:$0xff]  ;;  %v25_v30 = vld [vmem:[%s893_s0 + $0x58] sm:$0xff]  ;;  %v27_v35 = vld [vmem:[%s893_s0 + $0x68] sm:$0xff] }
   0x6   :  { %v153_v20 = vadd.f32 %v379_v2, %v85_v10  ;;  %v155_v27 = vadd.f32 %v379_v2, %v87_v17  ;;  %v156_v28 = vadd.f32 %v379_v2, %v88_v18  ;;  %v26_v31 = vld [vmem:[%s893_s0 + $0x60] sm:$0xff]  ;;  %v157_v34 = vadd.f32 %v379_v2, %v89_v22  ;;  %v28_v36 = vld [vmem:[%s893_s0 + $0x70] sm:$0xff]  ;;  %v29_v41 = vld [vmem:[%s893_s0 + $0x78] sm:$0xff] }
   0x7   :  { %v154_v21 = vadd.f32 %v379_v2, %v86_v11  ;;  %v214_v25 = vmax.f32 %v150_v15, 0.0  ;;  %v215_v26 = vmax.f32 %v151_v16, 0.0  ;;  %v216_v32 = vmax.f32 %v152_v19, 0.0  ;;  %v30_v54 = vld [vmem:[%s893_s0 + $0x80] sm:$0xff]  ;;  %v31_v55 = vld [vmem:[%s893_s0 + $0x88] sm:$0xff]  ;;  %v32_v58 = vld [vmem:[%s893_s0 + $0x90] sm:$0xff] }
   0x8   :  { %v217_v33 = vmax.f32 %v153_v20, 0.0  ;;  %v219_v38 = vmax.f32 %v155_v27, 0.0  ;;  %v90_v39 = vmul.f32 %v374_v1, %v22_v23  ;;  %v91_v40 = vmul.f32 %v374_v1, %v23_v24  ;;  %v33_v59 = vld [vmem:[%s893_s0 + $0x98] sm:$0xff]  ;;  %v34_v62 = vld [vmem:[%s893_s0 + $0xa0] sm:$0xff]  ;;  %v35_v5 = vld [vmem:[%s893_s0 + $0xa8] sm:$0xff] }
   0x9   :  { %278 = vst [vmem:[%s896_s3] sm:$0xff] %v214_v25  ;;  %v218_v37 = vmax.f32 %v154_v21, 0.0  ;;  %v220_v42 = vmax.f32 %v156_v28, 0.0  ;;  %v92_v43 = vmul.f32 %v374_v1, %v24_v29  ;;  %v93_v44 = vmul.f32 %v374_v1, %v25_v30  ;;  %v36_v10 = vld [vmem:[%s893_s0 + $0xb0] sm:$0xff]  ;;  %v37_v14 = vld [vmem:[%s893_s0 + $0xb8] sm:$0xff]  ;;  %v38_v18 = vld [vmem:[%s893_s0 + $0xc0] sm:$0xff] }
   0xa   :  { %279 = vst [vmem:[%s896_s3 + $0x8] sm:$0xff] %v215_v26  ;;  %v94_v45 = vmul.f32 %v374_v1, %v26_v31  ;;  %v158_v46 = vadd.f32 %v379_v2, %v90_v39  ;;  %v159_v47 = vadd.f32 %v379_v2, %v91_v40  ;;  %v95_v48 = vmul.f32 %v374_v1, %v27_v35  ;;  %v39_v22 = vld [vmem:[%s893_s0 + $0xc8] sm:$0xff]  ;;  %v40_v26 = vld [vmem:[%s893_s0 + $0xd0] sm:$0xff]  ;;  %v41_v30 = vld [vmem:[%s893_s0 + $0xd8] sm:$0xff] }
   0xb   :  { %280 = vst [vmem:[%s896_s3 + $0x10] sm:$0xff] %v216_v32  ;;  %v96_v49 = vmul.f32 %v374_v1, %v28_v36  ;;  %v221_v50 = vmax.f32 %v157_v34, 0.0  ;;  %v160_v51 = vadd.f32 %v379_v2, %v92_v43  ;;  %v161_v52 = vadd.f32 %v379_v2, %v93_v44  ;;  %v42_v34 = vld [vmem:[%s893_s0 + $0xe0] sm:$0xff] }
   0xc   :  { %281 = vst [vmem:[%s896_s3 + $0x18] sm:$0xff] %v217_v33  ;;  %v97_v53 = vmul.f32 %v374_v1, %v29_v41  ;;  %v222_v56 = vmax.f32 %v158_v46, 0.0  ;;  %v162_v57 = vadd.f32 %v379_v2, %v94_v45  ;;  %v223_v60 = vmax.f32 %v159_v47, 0.0  ;;  %v45_v46 = vld [vmem:[%s893_s0 + $0xf8] sm:$0xff] }
   0xd   :  { %282 = vst [vmem:[%s896_s3 + $0x20] sm:$0xff] %v218_v37  ;;  %v163_v61 = vadd.f32 %v379_v2, %v95_v48  ;;  %v224_v63 = vmax.f32 %v160_v51, 0.0  ;;  %v164_v0 = vadd.f32 %v379_v2, %v96_v49  ;;  %v98_v3 = vmul.f32 %v374_v1, %v30_v54  ;;  %v47_v54 = vld [vmem:[%s893_s0 + $0x108] sm:$0xff] }
   0xe   :  { %283 = vst [vmem:[%s896_s3 + $0x28] sm:$0xff] %v219_v38  ;;  %v99_v4 = vmul.f32 %v374_v1, %v31_v55  ;;  %v225_v6 = vmax.f32 %v161_v52, 0.0  ;;  %v165_v7 = vadd.f32 %v379_v2, %v97_v53  ;;  %v100_v8 = vmul.f32 %v374_v1, %v32_v58  ;;  %v43_v38 = vld [vmem:[%s893_s0 + $0xe8] sm:$0xff]  ;;  %v48_v58 = vld [vmem:[%s893_s0 + $0x110] sm:$0xff] }
   0xf   :  { %284 = vst [vmem:[%s896_s3 + $0x30] sm:$0xff] %v220_v42  ;;  %v101_v9 = vmul.f32 %v374_v1, %v33_v59  ;;  %v226_v11 = vmax.f32 %v162_v57, 0.0  ;;  %v166_v12 = vadd.f32 %v379_v2, %v98_v3  ;;  %v102_v13 = vmul.f32 %v374_v1, %v34_v62  ;;  %v44_v42 = vld [vmem:[%s893_s0 + $0xf0] sm:$0xff]  ;;  %v49_v62 = vld [vmem:[%s893_s0 + $0x118] sm:$0xff] }
  0x10   :  { %285 = vst [vmem:[%s896_s3 + $0x38] sm:$0xff] %v221_v50  ;;  %v227_v15 = vmax.f32 %v163_v61, 0.0  ;;  %v167_v16 = vadd.f32 %v379_v2, %v99_v4  ;;  %v103_v17 = vmul.f32 %v374_v1, %v35_v5  ;;  %v228_v19 = vmax.f32 %v164_v0, 0.0  ;;  %v46_v50 = vld [vmem:[%s893_s0 + $0x100] sm:$0xff] }
  0x11   :  { %286 = vst [vmem:[%s896_s3 + $0x40] sm:$0xff] %v222_v56  ;;  %v168_v20 = vadd.f32 %v379_v2, %v100_v8  ;;  %v104_v21 = vmul.f32 %v374_v1, %v36_v10  ;;  %v229_v23 = vmax.f32 %v165_v7, 0.0  ;;  %v169_v24 = vadd.f32 %v379_v2, %v101_v9  ;;  %v50_v4 = vld [vmem:[%s893_s0 + $0x120] sm:$0xff]  ;;  %v51_v8 = vld [vmem:[%s893_s0 + $0x128] sm:$0xff] }
  0x12   :  { %287 = vst [vmem:[%s896_s3 + $0x48] sm:$0xff] %v223_v60  ;;  %v105_v25 = vmul.f32 %v374_v1, %v37_v14  ;;  %v230_v27 = vmax.f32 %v166_v12, 0.0  ;;  %v170_v28 = vadd.f32 %v379_v2, %v102_v13  ;;  %v106_v29 = vmul.f32 %v374_v1, %v38_v18  ;;  %v52_v12 = vld [vmem:[%s893_s0 + $0x130] sm:$0xff] }
  0x13   :  { %288 = vst [vmem:[%s896_s3 + $0x50] sm:$0xff] %v224_v63  ;;  %v231_v31 = vmax.f32 %v167_v16, 0.0  ;;  %v171_v32 = vadd.f32 %v379_v2, %v103_v17  ;;  %v107_v33 = vmul.f32 %v374_v1, %v39_v22  ;;  %v232_v35 = vmax.f32 %v168_v20, 0.0  ;;  %v53_v16 = vld [vmem:[%s893_s0 + $0x138] sm:$0xff]  ;;  %v54_v20 = vld [vmem:[%s893_s0 + $0x140] sm:$0xff] }
  0x14   :  { %289 = vst [vmem:[%s896_s3 + $0x58] sm:$0xff] %v225_v6  ;;  %v172_v36 = vadd.f32 %v379_v2, %v104_v21  ;;  %v108_v37 = vmul.f32 %v374_v1, %v40_v26  ;;  %v233_v39 = vmax.f32 %v169_v24, 0.0  ;;  %v173_v40 = vadd.f32 %v379_v2, %v105_v25  ;;  %v55_v24 = vld [vmem:[%s893_s0 + $0x148] sm:$0xff] }
  0x15   :  { %290 = vst [vmem:[%s896_s3 + $0x60] sm:$0xff] %v226_v11  ;;  %v109_v41 = vmul.f32 %v374_v1, %v41_v30  ;;  %v234_v43 = vmax.f32 %v170_v28, 0.0  ;;  %v174_v44 = vadd.f32 %v379_v2, %v106_v29  ;;  %v110_v45 = vmul.f32 %v374_v1, %v42_v34  ;;  %v56_v28 = vld [vmem:[%s893_s0 + $0x150] sm:$0xff] }
  0x16   :  { %291 = vst [vmem:[%s896_s3 + $0x68] sm:$0xff] %v227_v15  ;;  %v235_v47 = vmax.f32 %v171_v32, 0.0  ;;  %v175_v48 = vadd.f32 %v379_v2, %v107_v33  ;;  %v111_v49 = vmul.f32 %v374_v1, %v43_v38  ;;  %v236_v51 = vmax.f32 %v172_v36, 0.0  ;;  %v57_v32 = vld [vmem:[%s893_s0 + $0x158] sm:$0xff]  ;;  %v58_v36 = vld [vmem:[%s893_s0 + $0x160] sm:$0xff] }
  0x17   :  { %292 = vst [vmem:[%s896_s3 + $0x70] sm:$0xff] %v228_v19  ;;  %v176_v52 = vadd.f32 %v379_v2, %v108_v37  ;;  %v112_v53 = vmul.f32 %v374_v1, %v44_v42  ;;  %v237_v55 = vmax.f32 %v173_v40, 0.0  ;;  %v177_v56 = vadd.f32 %v379_v2, %v109_v41  ;;  %v59_v40 = vld [vmem:[%s893_s0 + $0x168] sm:$0xff] }
  0x18   :  { %293 = vst [vmem:[%s896_s3 + $0x78] sm:$0xff] %v229_v23  ;;  %v113_v57 = vmul.f32 %v374_v1, %v45_v46  ;;  %v238_v59 = vmax.f32 %v174_v44, 0.0  ;;  %v178_v60 = vadd.f32 %v379_v2, %v110_v45  ;;  %v114_v61 = vmul.f32 %v374_v1, %v46_v50  ;;  %v60_v44 = vld [vmem:[%s893_s0 + $0x170] sm:$0xff] }
  0x19   :  { %294 = vst [vmem:[%s896_s3 + $0x80] sm:$0xff] %v230_v27  ;;  %v239_v63 = vmax.f32 %v175_v48, 0.0  ;;  %v179_v0 = vadd.f32 %v379_v2, %v111_v49  ;;  %v115_v3 = vmul.f32 %v374_v1, %v47_v54  ;;  %v240_v5 = vmax.f32 %v176_v52, 0.0  ;;  %v61_v48 = vld [vmem:[%s893_s0 + $0x178] sm:$0xff]  ;;  %v62_v52 = vld [vmem:[%s893_s0 + $0x180] sm:$0xff] }
  0x1a   :  { %295 = vst [vmem:[%s896_s3 + $0x88] sm:$0xff] %v231_v31  ;;  %v180_v6 = vadd.f32 %v379_v2, %v112_v53  ;;  %v116_v7 = vmul.f32 %v374_v1, %v48_v58  ;;  %v241_v9 = vmax.f32 %v177_v56, 0.0  ;;  %v181_v10 = vadd.f32 %v379_v2, %v113_v57  ;;  %v63_v56 = vld [vmem:[%s893_s0 + $0x188] sm:$0xff] }
  0x1b   :  { %296 = vst [vmem:[%s896_s3 + $0x90] sm:$0xff] %v232_v35  ;;  %v117_v11 = vmul.f32 %v374_v1, %v49_v62  ;;  %v242_v13 = vmax.f32 %v178_v60, 0.0  ;;  %v182_v14 = vadd.f32 %v379_v2, %v114_v61  ;;  %v118_v15 = vmul.f32 %v374_v1, %v50_v4  ;;  %v64_v60 = vld [vmem:[%s893_s0 + $0x190] sm:$0xff] }
  0x1c   :  { %297 = vst [vmem:[%s896_s3 + $0x98] sm:$0xff] %v233_v39  ;;  %v243_v17 = vmax.f32 %v179_v0, 0.0  ;;  %v183_v18 = vadd.f32 %v379_v2, %v115_v3  ;;  %v119_v19 = vmul.f32 %v374_v1, %v51_v8  ;;  %v244_v21 = vmax.f32 %v180_v6, 0.0  ;;  %v65_v0 = vld [vmem:[%s893_s0 + $0x198] sm:$0xff] }
  0x1d   :  { %298 = vst [vmem:[%s896_s3 + $0xa0] sm:$0xff] %v234_v43  ;;  %v184_v22 = vadd.f32 %v379_v2, %v116_v7  ;;  %v120_v23 = vmul.f32 %v374_v1, %v52_v12  ;;  %v245_v25 = vmax.f32 %v181_v10, 0.0  ;;  %v185_v26 = vadd.f32 %v379_v2, %v117_v11  ;;  %v77_v3 = vld [vmem:[%s893_s0 + $0x1f8] sm:$0xff]  ;;  %v66_v7 = vld [vmem:[%s893_s0 + $0x1a0] sm:$0xff]  ;;  %v67_v11 = vld [vmem:[%s893_s0 + $0x1a8] sm:$0xff] }
  0x1e   :  { %299 = vst [vmem:[%s896_s3 + $0xa8] sm:$0xff] %v235_v47  ;;  %v121_v27 = vmul.f32 %v374_v1, %v53_v16  ;;  %v246_v29 = vmax.f32 %v182_v14, 0.0  ;;  %v186_v30 = vadd.f32 %v379_v2, %v118_v15  ;;  %v122_v31 = vmul.f32 %v374_v1, %v54_v20  ;;  %v68_v15 = vld [vmem:[%s893_s0 + $0x1b0] sm:$0xff]  ;;  %v69_v20 = vld [vmem:[%s893_s0 + $0x1b8] sm:$0xff] }
  0x1f   :  { %300 = vst [vmem:[%s896_s3 + $0xb0] sm:$0xff] %v236_v51  ;;  %v247_v33 = vmax.f32 %v183_v18, 0.0  ;;  %v187_v34 = vadd.f32 %v379_v2, %v119_v19  ;;  %v123_v35 = vmul.f32 %v374_v1, %v55_v24  ;;  %v248_v37 = vmax.f32 %v184_v22, 0.0  ;;  %v70_v24 = vld [vmem:[%s893_s0 + $0x1c0] sm:$0xff] }
  0x20   :  { %301 = vst [vmem:[%s896_s3 + $0xb8] sm:$0xff] %v237_v55  ;;  %v188_v38 = vadd.f32 %v379_v2, %v120_v23  ;;  %v124_v39 = vmul.f32 %v374_v1, %v56_v28  ;;  %v249_v41 = vmax.f32 %v185_v26, 0.0  ;;  %v189_v42 = vadd.f32 %v379_v2, %v121_v27 }
  0x21   :  { %302 = vst [vmem:[%s896_s3 + $0xc0] sm:$0xff] %v238_v59  ;;  %v125_v43 = vmul.f32 %v374_v1, %v57_v32  ;;  %v250_v45 = vmax.f32 %v186_v30, 0.0  ;;  %v190_v46 = vadd.f32 %v379_v2, %v122_v31  ;;  %v126_v47 = vmul.f32 %v374_v1, %v58_v36 }
  0x22   :  { %303 = vst [vmem:[%s896_s3 + $0xc8] sm:$0xff] %v239_v63  ;;  %v251_v49 = vmax.f32 %v187_v34, 0.0  ;;  %v191_v50 = vadd.f32 %v379_v2, %v123_v35  ;;  %v127_v51 = vmul.f32 %v374_v1, %v59_v40  ;;  %v252_v53 = vmax.f32 %v188_v38, 0.0 }
  0x23   :  { %304 = vst [vmem:[%s896_s3 + $0xd0] sm:$0xff] %v240_v5  ;;  %v192_v54 = vadd.f32 %v379_v2, %v124_v39  ;;  %v128_v55 = vmul.f32 %v374_v1, %v60_v44  ;;  %v253_v57 = vmax.f32 %v189_v42, 0.0  ;;  %v193_v58 = vadd.f32 %v379_v2, %v125_v43 }
  0x24   :  { %305 = vst [vmem:[%s896_s3 + $0xd8] sm:$0xff] %v241_v9  ;;  %v129_v59 = vmul.f32 %v374_v1, %v61_v48  ;;  %v254_v61 = vmax.f32 %v190_v46, 0.0  ;;  %v194_v62 = vadd.f32 %v379_v2, %v126_v47  ;;  %v130_v63 = vmul.f32 %v374_v1, %v62_v52 }
  0x25   :  { %306 = vst [vmem:[%s896_s3 + $0xe0] sm:$0xff] %v242_v13  ;;  %v255_v4 = vmax.f32 %v191_v50, 0.0  ;;  %v195_v5 = vadd.f32 %v379_v2, %v127_v51  ;;  %v131_v6 = vmul.f32 %v374_v1, %v63_v56  ;;  %v256_v8 = vmax.f32 %v192_v54, 0.0 }
  0x26   :  { %307 = vst [vmem:[%s896_s3 + $0xe8] sm:$0xff] %v243_v17  ;;  %v196_v9 = vadd.f32 %v379_v2, %v128_v55  ;;  %v132_v10 = vmul.f32 %v374_v1, %v64_v60  ;;  %v257_v12 = vmax.f32 %v193_v58, 0.0  ;;  %v197_v13 = vadd.f32 %v379_v2, %v129_v59 }
  0x27   :  { %308 = vst [vmem:[%s896_s3 + $0xf0] sm:$0xff] %v244_v21  ;;  %v133_v14 = vmul.f32 %v374_v1, %v65_v0  ;;  %v145_v16 = vmul.f32 %v374_v1, %v77_v3  ;;  %v258_v17 = vmax.f32 %v194_v62, 0.0  ;;  %v198_v18 = vadd.f32 %v379_v2, %v130_v63 }
  0x28   :  { %309 = vst [vmem:[%s896_s3 + $0xf8] sm:$0xff] %v245_v25  ;;  %v134_v19 = vmul.f32 %v374_v1, %v66_v7  ;;  %v259_v21 = vmax.f32 %v195_v5, 0.0  ;;  %v199_v22 = vadd.f32 %v379_v2, %v131_v6  ;;  %v135_v23 = vmul.f32 %v374_v1, %v67_v11 }
  0x29   :  { %310 = vst [vmem:[%s896_s3 + $0x100] sm:$0xff] %v246_v29  ;;  %v784_v25 = vadd.f32 %v379_v2, %v145_v16  ;;  %v260_v26 = vmax.f32 %v196_v9, 0.0  ;;  %v200_v27 = vadd.f32 %v379_v2, %v132_v10  ;;  %v136_v28 = vmul.f32 %v374_v1, %v68_v15  ;;  %v71_v29 = vld [vmem:[%s893_s0 + $0x1c8] sm:$0xff] }
  0x2a   :  { %311 = vst [vmem:[%s896_s3 + $0x108] sm:$0xff] %v247_v33  ;;  %v261_v30 = vmax.f32 %v197_v13, 0.0  ;;  %v201_v31 = vadd.f32 %v379_v2, %v133_v14  ;;  %v137_v32 = vmul.f32 %v374_v1, %v69_v20  ;;  %v72_v33 = vld [vmem:[%s893_s0 + $0x1d0] sm:$0xff]  ;;  %v262_v34 = vmax.f32 %v198_v18, 0.0 }
  0x2b   :  { %312 = vst [vmem:[%s896_s3 + $0x110] sm:$0xff] %v248_v37  ;;  %v202_v35 = vadd.f32 %v379_v2, %v134_v19  ;;  %v138_v36 = vmul.f32 %v374_v1, %v70_v24  ;;  %v73_v37 = vld [vmem:[%s893_s0 + $0x1d8] sm:$0xff]  ;;  %v263_v38 = vmax.f32 %v199_v22, 0.0  ;;  %v203_v39 = vadd.f32 %v379_v2, %v135_v23 }
  0x2c   :  { %313 = vst [vmem:[%s896_s3 + $0x118] sm:$0xff] %v249_v41  ;;  %v139_v40 = vmul.f32 %v374_v1, %v71_v29  ;;  %v74_v41 = vld [vmem:[%s893_s0 + $0x1e0] sm:$0xff]  ;;  %v264_v42 = vmax.f32 %v200_v27, 0.0  ;;  %v204_v43 = vadd.f32 %v379_v2, %v136_v28  ;;  %v140_v44 = vmul.f32 %v374_v1, %v72_v33 }
  0x2d   :  { %314 = vst [vmem:[%s896_s3 + $0x120] sm:$0xff] %v250_v45  ;;  %v75_v45 = vld [vmem:[%s893_s0 + $0x1e8] sm:$0xff]  ;;  %v265_v46 = vmax.f32 %v201_v31, 0.0  ;;  %v205_v47 = vadd.f32 %v379_v2, %v137_v32  ;;  %v141_v48 = vmul.f32 %v374_v1, %v73_v37  ;;  %v266_v50 = vmax.f32 %v202_v35, 0.0 }
  0x2e   :  { %315 = vst [vmem:[%s896_s3 + $0x128] sm:$0xff] %v251_v49  ;;  %v76_v49 = vld [vmem:[%s893_s0 + $0x1f0] sm:$0xff]  ;;  %v206_v51 = vadd.f32 %v379_v2, %v138_v36  ;;  %v142_v52 = vmul.f32 %v374_v1, %v74_v41  ;;  %v207_v54 = vadd.f32 %v379_v2, %v139_v40  ;;  %v143_v55 = vmul.f32 %v374_v1, %v75_v45 }
  0x2f   :  { %316 = vst [vmem:[%s896_s3 + $0x130] sm:$0xff] %v252_v53  ;;  %v267_v53 = vmax.f32 %v203_v39, 0.0  ;;  %v268_v56 = vmax.f32 %v204_v43, 0.0  ;;  %v144_v58 = vmul.f32 %v374_v1, %v76_v49  ;;  %v269_v59 = vmax.f32 %v205_v47, 0.0 }
  0x30   :  { %317 = vst [vmem:[%s896_s3 + $0x138] sm:$0xff] %v253_v57  ;;  %v208_v57 = vadd.f32 %v379_v2, %v140_v44  ;;  %v209_v60 = vadd.f32 %v379_v2, %v141_v48  ;;  %v210_v62 = vadd.f32 %v379_v2, %v142_v52  ;;  %v271_v63 = vmax.f32 %v207_v54, 0.0 }
  0x31   :  { %318 = vst [vmem:[%s896_s3 + $0x140] sm:$0xff] %v254_v61  ;;  %v270_v61 = vmax.f32 %v206_v51, 0.0  ;;  %v211_v1 = vadd.f32 %v379_v2, %v143_v55  ;;  %v212_v3 = vadd.f32 %v379_v2, %v144_v58  ;;  %v277_v7 = vmax.f32 %v784_v25, 0.0 }
  0x32   :  { %319 = vst [vmem:[%s896_s3 + $0x148] sm:$0xff] %v255_v4  ;;  %v272_v0 = vmax.f32 %v208_v57, 0.0  ;;  %v273_v4 = vmax.f32 %v209_v60, 0.0  ;;  %v274_v5 = vmax.f32 %v210_v62, 0.0 }
  0x33   :  { %320 = vst [vmem:[%s896_s3 + $0x150] sm:$0xff] %v256_v8  ;;  %v275_v6 = vmax.f32 %v211_v1, 0.0  ;;  %v276_v2 = vmax.f32 %v212_v3, 0.0 }
  0x34   :  { %321 = vst [vmem:[%s896_s3 + $0x158] sm:$0xff] %v257_v12 }
  0x35   :  { %322 = vst [vmem:[%s896_s3 + $0x160] sm:$0xff] %v258_v17 }
  0x36   :  { %323 = vst [vmem:[%s896_s3 + $0x168] sm:$0xff] %v259_v21 }
  0x37   :  { %324 = vst [vmem:[%s896_s3 + $0x170] sm:$0xff] %v260_v26 }
  0x38   :  { %325 = vst [vmem:[%s896_s3 + $0x178] sm:$0xff] %v261_v30 }
  0x39   :  { %326 = vst [vmem:[%s896_s3 + $0x180] sm:$0xff] %v262_v34 }
  0x3a   :  { %327 = vst [vmem:[%s896_s3 + $0x188] sm:$0xff] %v263_v38 }
  0x3b   :  { %328 = vst [vmem:[%s896_s3 + $0x190] sm:$0xff] %v264_v42 }
  0x3c   :  { %329 = vst [vmem:[%s896_s3 + $0x198] sm:$0xff] %v265_v46 }
  0x3d   :  { %330 = vst [vmem:[%s896_s3 + $0x1a0] sm:$0xff] %v266_v50 }
  0x3e   :  { %331 = vst [vmem:[%s896_s3 + $0x1a8] sm:$0xff] %v267_v53 }
  0x3f   :  { %332 = vst [vmem:[%s896_s3 + $0x1b0] sm:$0xff] %v268_v56 }
  0x40   :  { %333 = vst [vmem:[%s896_s3 + $0x1b8] sm:$0xff] %v269_v59 }
  0x41   :  { %334 = vst [vmem:[%s896_s3 + $0x1c0] sm:$0xff] %v270_v61 }
  0x42   :  { %335 = vst [vmem:[%s896_s3 + $0x1c8] sm:$0xff] %v271_v63 }
  0x43   :  { %336 = vst [vmem:[%s896_s3 + $0x1d0] sm:$0xff] %v272_v0 }
  0x44   :  { %337 = vst [vmem:[%s896_s3 + $0x1d8] sm:$0xff] %v273_v4 }
  0x45   :  { %338 = vst [vmem:[%s896_s3 + $0x1e0] sm:$0xff] %v274_v5 }
  0x46   :  { %339 = vst [vmem:[%s896_s3 + $0x1e8] sm:$0xff] %v275_v6 }
  0x47   :  { %340 = vst [vmem:[%s896_s3 + $0x1f0] sm:$0xff] %v276_v2 }
  0x48   :  { %341 = vst [vmem:[%s896_s3 + $0x1f8] sm:$0xff] %v277_v7 }

// kernel: a_call__.47
= control target key start
LH: loop header
LB: loop body
LE: loop exit
PB: predicated region body
PF: predicated region fallthrough
CT: control target
= control target key end

     0   :  { %s483_s9 = smov 0   ;;  %s581_s0 = inlined_call_operand.vmem [shape: f32[2048,128], index: 0, kind: input, shape index: {}]   ;;  %s582_s1 = inlined_call_operand.vmem [shape: f32[1,128], index: 1, kind: output, shape index: {0}]   ;;  %s583_s2 = inlined_call_operand.vmem [shape: f32[1,128], index: 2, kind: output, shape index: {1}]  }
   0x1 LB: > { %s441_s10 = sadd.s32 4294967295, %s465_s9   ;;  %p444_p0 = scmp.ge.s32.totalorder %s465_s9, 1  ;;  %s465_s9 = sphi %s483_s9, %s13_s9  }
   0x2   : > { %p106_p1 = scmp.lt.s32.totalorder %s465_s9, 5 }
   0x4   : > { %p107_p2 = pnand %p444_p0, %p106_p1 }
   0x5   : > { %s445_s11 = sshll.u32 (!%p107_p2), %s441_s10, 6  ;;  %p447_p4 = scmp.ne.s32.totalorder (!%p107_p2), %s441_s10, 0 }
   0x6   : > { %110 = sbr.rel (%p107_p2) target bundleno = 163 (0xa3), region = 24  ;;  %p124_p3 = scmp.lt.s32.totalorder (!%p107_p2), %s445_s11, 255 }
   0xb   : > { %s585_s11 = smov (!%p124_p3, %s445_s11), 255  ;;  %132 = sbr.rel (%p447_p4) target bundleno = 19 (0x13), region = 28 }
   0xc   : > { %s446_s12 = sshll.u32 %s585_s11, 3 }
   0xd   : > { %s494_s15 = scalar_lea.vmem %s581_s0, %s446_s12 }
  0x10   : > { %v467_v0 = vmov 0.0  }
  0x11   : > { %133 = vst [vmem:[%s582_s1] sm:$0x1] %v467_v0 }
  0x12   : > { %134 = vst [vmem:[%s583_s2] sm:$0x1] %v467_v0 }
  0x13 PF: > { %v135_v1 = vld [vmem:[%s494_s15] sm:$0xff]  ;;  %v136_v2 = vld [vmem:[%s494_s15 + $0x8] sm:$0xff]  ;;  %v137_v3 = vld [vmem:[%s494_s15 + $0x10] sm:$0xff] }
  0x14   : > { %v138_v4 = vld [vmem:[%s494_s15 + $0x18] sm:$0xff]  ;;  %v200_v5 = vadd.f32 %v136_v2, %v135_v1  ;;  %v272_v6 = vmul.f32 %v135_v1, %v135_v1  ;;  %v273_v7 = vmul.f32 %v136_v2, %v136_v2  ;;  %v274_v8 = vmul.f32 %v137_v3, %v137_v3  ;;  %v139_v9 = vld [vmem:[%s494_s15 + $0x20] sm:$0xff]  ;;  %v140_v13 = vld [vmem:[%s494_s15 + $0x28] sm:$0xff] }
  0x15   : > { %v275_v11 = vmul.f32 %v138_v4, %v138_v4  ;;  %v276_v15 = vmul.f32 %v139_v9, %v139_v9  ;;  %v141_v17 = vld [vmem:[%s494_s15 + $0x30] sm:$0xff]  ;;  %v277_v19 = vmul.f32 %v140_v13, %v140_v13  ;;  %v142_v21 = vld [vmem:[%s494_s15 + $0x38] sm:$0xff]  ;;  %v143_v25 = vld [vmem:[%s494_s15 + $0x40] sm:$0xff] }
  0x16   : > { %v201_v10 = vadd.f32 %v200_v5, %v137_v3  ;;  %v336_v12 = vadd.f32 %v273_v7, %v272_v6  ;;  %v278_v23 = vmul.f32 %v141_v17, %v141_v17  ;;  %v279_v27 = vmul.f32 %v142_v21, %v142_v21  ;;  %v144_v29 = vld [vmem:[%s494_s15 + $0x48] sm:$0xff]  ;;  %v145_v33 = vld [vmem:[%s494_s15 + $0x50] sm:$0xff]  ;;  %v146_v37 = vld [vmem:[%s494_s15 + $0x58] sm:$0xff] }
  0x17   : > { %v280_v31 = vmul.f32 %v143_v25, %v143_v25  ;;  %v281_v35 = vmul.f32 %v144_v29, %v144_v29  ;;  %v282_v39 = vmul.f32 %v145_v33, %v145_v33  ;;  %v147_v41 = vld [vmem:[%s494_s15 + $0x60] sm:$0xff]  ;;  %v283_v43 = vmul.f32 %v146_v37, %v146_v37  ;;  %v148_v45 = vld [vmem:[%s494_s15 + $0x68] sm:$0xff]  ;;  %v149_v49 = vld [vmem:[%s494_s15 + $0x70] sm:$0xff] }
  0x18   : > { %v202_v14 = vadd.f32 %v201_v10, %v138_v4  ;;  %v337_v16 = vadd.f32 %v336_v12, %v274_v8  ;;  %v284_v47 = vmul.f32 %v147_v41, %v147_v41  ;;  %v285_v51 = vmul.f32 %v148_v45, %v148_v45  ;;  %v150_v53 = vld [vmem:[%s494_s15 + $0x78] sm:$0xff]  ;;  %v151_v57 = vld [vmem:[%s494_s15 + $0x80] sm:$0xff]  ;;  %v152_v61 = vld [vmem:[%s494_s15 + $0x88] sm:$0xff] }
  0x19   : > { %v286_v55 = vmul.f32 %v149_v49, %v149_v49  ;;  %v287_v59 = vmul.f32 %v150_v53, %v150_v53  ;;  %v288_v63 = vmul.f32 %v151_v57, %v151_v57  ;;  %v153_v1 = vld [vmem:[%s494_s15 + $0x90] sm:$0xff]  ;;  %v289_v3 = vmul.f32 %v152_v61, %v152_v61  ;;  %v154_v5 = vld [vmem:[%s494_s15 + $0x98] sm:$0xff] }
  0x1a   : > { %v203_v18 = vadd.f32 %v202_v14, %v139_v9  ;;  %v338_v20 = vadd.f32 %v337_v16, %v275_v11  ;;  %v290_v7 = vmul.f32 %v153_v1, %v153_v1  ;;  %v155_v9 = vld [vmem:[%s494_s15 + $0xa0] sm:$0xff]  ;;  %v291_v11 = vmul.f32 %v154_v5, %v154_v5 }
  0x1c   : > { %v204_v22 = vadd.f32 %v203_v18, %v140_v13  ;;  %v339_v24 = vadd.f32 %v338_v20, %v276_v15  ;;  %v156_v13 = vld [vmem:[%s494_s15 + $0xa8] sm:$0xff]  ;;  %v292_v15 = vmul.f32 %v155_v9, %v155_v9 }
  0x1e   : > { %v205_v26 = vadd.f32 %v204_v22, %v141_v17  ;;  %v340_v28 = vadd.f32 %v339_v24, %v277_v19  ;;  %v157_v17 = vld [vmem:[%s494_s15 + $0xb0] sm:$0xff]  ;;  %v293_v19 = vmul.f32 %v156_v13, %v156_v13 }
  0x20   : > { %v206_v30 = vadd.f32 %v205_v26, %v142_v21  ;;  %v341_v32 = vadd.f32 %v340_v28, %v278_v23  ;;  %v158_v21 = vld [vmem:[%s494_s15 + $0xb8] sm:$0xff]  ;;  %v294_v23 = vmul.f32 %v157_v17, %v157_v17 }
  0x22   : > { %v207_v34 = vadd.f32 %v206_v30, %v143_v25  ;;  %v342_v36 = vadd.f32 %v341_v32, %v279_v27  ;;  %v159_v25 = vld [vmem:[%s494_s15 + $0xc0] sm:$0xff]  ;;  %v295_v27 = vmul.f32 %v158_v21, %v158_v21 }
  0x24   : > { %v208_v38 = vadd.f32 %v207_v34, %v144_v29  ;;  %v343_v40 = vadd.f32 %v342_v36, %v280_v31  ;;  %v160_v29 = vld [vmem:[%s494_s15 + $0xc8] sm:$0xff]  ;;  %v296_v31 = vmul.f32 %v159_v25, %v159_v25 }
  0x26   : > { %v209_v42 = vadd.f32 %v208_v38, %v145_v33  ;;  %v344_v44 = vadd.f32 %v343_v40, %v281_v35  ;;  %v161_v33 = vld [vmem:[%s494_s15 + $0xd0] sm:$0xff]  ;;  %v297_v35 = vmul.f32 %v160_v29, %v160_v29 }
  0x28   : > { %v210_v46 = vadd.f32 %v209_v42, %v146_v37  ;;  %v345_v48 = vadd.f32 %v344_v44, %v282_v39  ;;  %v162_v37 = vld [vmem:[%s494_s15 + $0xd8] sm:$0xff]  ;;  %v298_v39 = vmul.f32 %v161_v33, %v161_v33 }
  0x2a   : > { %v211_v50 = vadd.f32 %v210_v46, %v147_v41  ;;  %v346_v52 = vadd.f32 %v345_v48, %v283_v43  ;;  %v163_v41 = vld [vmem:[%s494_s15 + $0xe0] sm:$0xff]  ;;  %v299_v43 = vmul.f32 %v162_v37, %v162_v37 }
  0x2c   : > { %v212_v54 = vadd.f32 %v211_v50, %v148_v45  ;;  %v347_v56 = vadd.f32 %v346_v52, %v284_v47  ;;  %v164_v45 = vld [vmem:[%s494_s15 + $0xe8] sm:$0xff]  ;;  %v300_v47 = vmul.f32 %v163_v41, %v163_v41 }
  0x2e   : > { %v213_v58 = vadd.f32 %v212_v54, %v149_v49  ;;  %v348_v60 = vadd.f32 %v347_v56, %v285_v51  ;;  %v165_v49 = vld [vmem:[%s494_s15 + $0xf0] sm:$0xff]  ;;  %v301_v51 = vmul.f32 %v164_v45, %v164_v45 }
  0x30   : > { %v214_v62 = vadd.f32 %v213_v58, %v150_v53  ;;  %v349_v0 = vadd.f32 %v348_v60, %v286_v55  ;;  %v166_v53 = vld [vmem:[%s494_s15 + $0xf8] sm:$0xff]  ;;  %v302_v55 = vmul.f32 %v165_v49, %v165_v49 }
  0x32   : > { %v215_v2 = vadd.f32 %v214_v62, %v151_v57  ;;  %v350_v4 = vadd.f32 %v349_v0, %v287_v59  ;;  %v167_v57 = vld [vmem:[%s494_s15 + $0x100] sm:$0xff]  ;;  %v303_v59 = vmul.f32 %v166_v53, %v166_v53 }
  0x34   : > { %v216_v6 = vadd.f32 %v215_v2, %v152_v61  ;;  %v351_v8 = vadd.f32 %v350_v4, %v288_v63  ;;  %v168_v61 = vld [vmem:[%s494_s15 + $0x108] sm:$0xff]  ;;  %v304_v63 = vmul.f32 %v167_v57, %v167_v57 }
  0x36   : > { %v217_v10 = vadd.f32 %v216_v6, %v153_v1  ;;  %v352_v12 = vadd.f32 %v351_v8, %v289_v3  ;;  %v169_v1 = vld [vmem:[%s494_s15 + $0x110] sm:$0xff]  ;;  %v305_v3 = vmul.f32 %v168_v61, %v168_v61 }
  0x38   : > { %v218_v14 = vadd.f32 %v217_v10, %v154_v5  ;;  %v353_v16 = vadd.f32 %v352_v12, %v290_v7  ;;  %v170_v5 = vld [vmem:[%s494_s15 + $0x118] sm:$0xff]  ;;  %v306_v7 = vmul.f32 %v169_v1, %v169_v1 }
  0x3a   : > { %v219_v18 = vadd.f32 %v218_v14, %v155_v9  ;;  %v354_v20 = vadd.f32 %v353_v16, %v291_v11  ;;  %v171_v9 = vld [vmem:[%s494_s15 + $0x120] sm:$0xff]  ;;  %v307_v11 = vmul.f32 %v170_v5, %v170_v5 }
  0x3c   : > { %v220_v22 = vadd.f32 %v219_v18, %v156_v13  ;;  %v355_v24 = vadd.f32 %v354_v20, %v292_v15  ;;  %v172_v13 = vld [vmem:[%s494_s15 + $0x128] sm:$0xff]  ;;  %v308_v15 = vmul.f32 %v171_v9, %v171_v9 }
  0x3e   : > { %v221_v26 = vadd.f32 %v220_v22, %v157_v17  ;;  %v356_v28 = vadd.f32 %v355_v24, %v293_v19  ;;  %v173_v17 = vld [vmem:[%s494_s15 + $0x130] sm:$0xff]  ;;  %v309_v19 = vmul.f32 %v172_v13, %v172_v13 }
  0x40   : > { %v222_v30 = vadd.f32 %v221_v26, %v158_v21  ;;  %v357_v32 = vadd.f32 %v356_v28, %v294_v23  ;;  %v174_v21 = vld [vmem:[%s494_s15 + $0x138] sm:$0xff]  ;;  %v310_v23 = vmul.f32 %v173_v17, %v173_v17 }
  0x42   : > { %v223_v34 = vadd.f32 %v222_v30, %v159_v25  ;;  %v358_v36 = vadd.f32 %v357_v32, %v295_v27  ;;  %v175_v25 = vld [vmem:[%s494_s15 + $0x140] sm:$0xff]  ;;  %v311_v27 = vmul.f32 %v174_v21, %v174_v21 }
  0x44   : > { %v224_v38 = vadd.f32 %v223_v34, %v160_v29  ;;  %v359_v40 = vadd.f32 %v358_v36, %v296_v31  ;;  %v176_v29 = vld [vmem:[%s494_s15 + $0x148] sm:$0xff]  ;;  %v312_v31 = vmul.f32 %v175_v25, %v175_v25 }
  0x46   : > { %v225_v42 = vadd.f32 %v224_v38, %v161_v33  ;;  %v360_v44 = vadd.f32 %v359_v40, %v297_v35  ;;  %v177_v33 = vld [vmem:[%s494_s15 + $0x150] sm:$0xff]  ;;  %v313_v35 = vmul.f32 %v176_v29, %v176_v29 }
  0x48   : > { %v226_v46 = vadd.f32 %v225_v42, %v162_v37  ;;  %v361_v48 = vadd.f32 %v360_v44, %v298_v39  ;;  %v178_v37 = vld [vmem:[%s494_s15 + $0x158] sm:$0xff]  ;;  %v314_v39 = vmul.f32 %v177_v33, %v177_v33 }
  0x4a   : > { %v227_v50 = vadd.f32 %v226_v46, %v163_v41  ;;  %v362_v52 = vadd.f32 %v361_v48, %v299_v43  ;;  %v179_v41 = vld [vmem:[%s494_s15 + $0x160] sm:$0xff]  ;;  %v315_v43 = vmul.f32 %v178_v37, %v178_v37 }
  0x4c   : > { %v228_v54 = vadd.f32 %v227_v50, %v164_v45  ;;  %v363_v56 = vadd.f32 %v362_v52, %v300_v47  ;;  %v180_v45 = vld [vmem:[%s494_s15 + $0x168] sm:$0xff]  ;;  %v316_v47 = vmul.f32 %v179_v41, %v179_v41 }
  0x4e   : > { %v229_v58 = vadd.f32 %v228_v54, %v165_v49  ;;  %v364_v60 = vadd.f32 %v363_v56, %v301_v51  ;;  %v181_v49 = vld [vmem:[%s494_s15 + $0x170] sm:$0xff]  ;;  %v317_v51 = vmul.f32 %v180_v45, %v180_v45 }
  0x50   : > { %v230_v62 = vadd.f32 %v229_v58, %v166_v53  ;;  %v365_v0 = vadd.f32 %v364_v60, %v302_v55  ;;  %v182_v53 = vld [vmem:[%s494_s15 + $0x178] sm:$0xff]  ;;  %v318_v55 = vmul.f32 %v181_v49, %v181_v49 }
  0x52   : > { %v231_v2 = vadd.f32 %v230_v62, %v167_v57  ;;  %v366_v4 = vadd.f32 %v365_v0, %v303_v59  ;;  %v183_v57 = vld [vmem:[%s494_s15 + $0x180] sm:$0xff]  ;;  %v319_v59 = vmul.f32 %v182_v53, %v182_v53 }
  0x54   : > { %v232_v6 = vadd.f32 %v231_v2, %v168_v61  ;;  %v367_v8 = vadd.f32 %v366_v4, %v304_v63  ;;  %v184_v61 = vld [vmem:[%s494_s15 + $0x188] sm:$0xff]  ;;  %v320_v63 = vmul.f32 %v183_v57, %v183_v57 }
  0x56   : > { %v233_v10 = vadd.f32 %v232_v6, %v169_v1  ;;  %v368_v12 = vadd.f32 %v367_v8, %v305_v3  ;;  %v185_v1 = vld [vmem:[%s494_s15 + $0x190] sm:$0xff]  ;;  %v321_v3 = vmul.f32 %v184_v61, %v184_v61 }
  0x58   : > { %v234_v14 = vadd.f32 %v233_v10, %v170_v5  ;;  %v369_v16 = vadd.f32 %v368_v12, %v306_v7  ;;  %v186_v5 = vld [vmem:[%s494_s15 + $0x198] sm:$0xff]  ;;  %v322_v7 = vmul.f32 %v185_v1, %v185_v1 }
  0x5a   : > { %v235_v18 = vadd.f32 %v234_v14, %v171_v9  ;;  %v370_v20 = vadd.f32 %v369_v16, %v307_v11  ;;  %v187_v9 = vld [vmem:[%s494_s15 + $0x1a0] sm:$0xff]  ;;  %v323_v11 = vmul.f32 %v186_v5, %v186_v5 }
  0x5c   : > { %v236_v22 = vadd.f32 %v235_v18, %v172_v13  ;;  %v371_v24 = vadd.f32 %v370_v20, %v308_v15  ;;  %v188_v13 = vld [vmem:[%s494_s15 + $0x1a8] sm:$0xff]  ;;  %v324_v15 = vmul.f32 %v187_v9, %v187_v9 }
  0x5e   : > { %v237_v26 = vadd.f32 %v236_v22, %v173_v17  ;;  %v372_v28 = vadd.f32 %v371_v24, %v309_v19  ;;  %v189_v17 = vld [vmem:[%s494_s15 + $0x1b0] sm:$0xff]  ;;  %v325_v19 = vmul.f32 %v188_v13, %v188_v13 }
  0x60   : > { %v238_v30 = vadd.f32 %v237_v26, %v174_v21  ;;  %v373_v32 = vadd.f32 %v372_v28, %v310_v23  ;;  %v190_v21 = vld [vmem:[%s494_s15 + $0x1b8] sm:$0xff]  ;;  %v326_v23 = vmul.f32 %v189_v17, %v189_v17 }
  0x62   : > { %v239_v34 = vadd.f32 %v238_v30, %v175_v25  ;;  %v374_v36 = vadd.f32 %v373_v32, %v311_v27  ;;  %v191_v25 = vld [vmem:[%s494_s15 + $0x1c0] sm:$0xff]  ;;  %v327_v27 = vmul.f32 %v190_v21, %v190_v21 }
  0x64   : > { %v240_v38 = vadd.f32 %v239_v34, %v176_v29  ;;  %v375_v40 = vadd.f32 %v374_v36, %v312_v31  ;;  %v192_v29 = vld [vmem:[%s494_s15 + $0x1c8] sm:$0xff]  ;;  %v328_v31 = vmul.f32 %v191_v25, %v191_v25 }
  0x66   : > { %v241_v42 = vadd.f32 %v240_v38, %v177_v33  ;;  %v376_v44 = vadd.f32 %v375_v40, %v313_v35  ;;  %v193_v33 = vld [vmem:[%s494_s15 + $0x1d0] sm:$0xff]  ;;  %v329_v35 = vmul.f32 %v192_v29, %v192_v29 }
  0x68   : > { %v242_v46 = vadd.f32 %v241_v42, %v178_v37  ;;  %v377_v48 = vadd.f32 %v376_v44, %v314_v39  ;;  %v194_v37 = vld [vmem:[%s494_s15 + $0x1d8] sm:$0xff]  ;;  %v330_v39 = vmul.f32 %v193_v33, %v193_v33 }
  0x6a   : > { %v243_v50 = vadd.f32 %v242_v46, %v179_v41  ;;  %v378_v52 = vadd.f32 %v377_v48, %v315_v43  ;;  %v195_v41 = vld [vmem:[%s494_s15 + $0x1e0] sm:$0xff]  ;;  %v331_v43 = vmul.f32 %v194_v37, %v194_v37 }
  0x6c   : > { %v244_v54 = vadd.f32 %v243_v50, %v180_v45  ;;  %v379_v56 = vadd.f32 %v378_v52, %v316_v47  ;;  %v196_v45 = vld [vmem:[%s494_s15 + $0x1e8] sm:$0xff]  ;;  %v332_v47 = vmul.f32 %v195_v41, %v195_v41 }
  0x6e   : > { %v245_v58 = vadd.f32 %v244_v54, %v181_v49  ;;  %v380_v60 = vadd.f32 %v379_v56, %v317_v51  ;;  %v197_v49 = vld [vmem:[%s494_s15 + $0x1f0] sm:$0xff]  ;;  %v333_v51 = vmul.f32 %v196_v45, %v196_v45 }
  0x70   : > { %v246_v62 = vadd.f32 %v245_v58, %v182_v53  ;;  %v381_v0 = vadd.f32 %v380_v60, %v318_v55  ;;  %v198_v53 = vld [vmem:[%s494_s15 + $0x1f8] sm:$0xff]  ;;  %v334_v55 = vmul.f32 %v197_v49, %v197_v49 }
  0x71   : > { %v335_v58 = vmul.f32 %v198_v53, %v198_v53 }
  0x72   : > { %v247_v2 = vadd.f32 %v246_v62, %v183_v57  ;;  %v382_v4 = vadd.f32 %v381_v0, %v319_v59 }
  0x74   : > { %v248_v6 = vadd.f32 %v247_v2, %v184_v61  ;;  %v383_v8 = vadd.f32 %v382_v4, %v320_v63 }
  0x76   : > { %v249_v10 = vadd.f32 %v248_v6, %v185_v1  ;;  %v384_v12 = vadd.f32 %v383_v8, %v321_v3 }
  0x78   : > { %v250_v14 = vadd.f32 %v249_v10, %v186_v5  ;;  %v385_v16 = vadd.f32 %v384_v12, %v322_v7  ;;  %v199_v7 = vld [vmem:[%s582_s1] sm:$0x1] }
  0x79   : > { %v271_v12 = vld [vmem:[%s583_s2] sm:$0x1] }
  0x7a   : > { %v251_v18 = vadd.f32 %v250_v14, %v187_v9  ;;  %v386_v20 = vadd.f32 %v385_v16, %v323_v11 }
  0x7c   : > { %v252_v22 = vadd.f32 %v251_v18, %v188_v13  ;;  %v387_v24 = vadd.f32 %v386_v20, %v324_v15 }
  0x7e   : > { %v253_v26 = vadd.f32 %v252_v22, %v189_v17  ;;  %v388_v28 = vadd.f32 %v387_v24, %v325_v19 }
  0x80   : > { %v254_v30 = vadd.f32 %v253_v26, %v190_v21  ;;  %v389_v32 = vadd.f32 %v388_v28, %v326_v23 }
  0x82   : > { %v255_v34 = vadd.f32 %v254_v30, %v191_v25  ;;  %v390_v36 = vadd.f32 %v389_v32, %v327_v27 }
  0x84   : > { %v256_v38 = vadd.f32 %v255_v34, %v192_v29  ;;  %v391_v40 = vadd.f32 %v390_v36, %v328_v31 }
  0x86   : > { %v257_v42 = vadd.f32 %v256_v38, %v193_v33  ;;  %v392_v44 = vadd.f32 %v391_v40, %v329_v35 }
  0x88   : > { %v258_v46 = vadd.f32 %v257_v42, %v194_v37  ;;  %v393_v48 = vadd.f32 %v392_v44, %v330_v39 }
  0x8a   : > { %v259_v50 = vadd.f32 %v258_v46, %v195_v41  ;;  %v394_v52 = vadd.f32 %v393_v48, %v331_v43 }
  0x8c   : > { %v260_v54 = vadd.f32 %v259_v50, %v196_v45  ;;  %v395_v56 = vadd.f32 %v394_v52, %v332_v47 }
  0x8e   : > { %v261_v57 = vadd.f32 %v260_v54, %v197_v49  ;;  %v396_v59 = vadd.f32 %v395_v56, %v333_v51 }
  0x90   : > { %v262_v60 = vadd.f32 %v261_v57, %v198_v53  ;;  %v397_v61 = vadd.f32 %v396_v59, %v334_v55 }
  0x92   : > { %v263_v62 = vrot.slane %v262_v60, 4  ;;  %v398_v63 = vadd.f32 %v397_v61, %v335_v58 }
  0x94   : > { %v264_v0 = vadd.f32 %v263_v62, %v262_v60  ;;  %v399_v1 = vrot.slane %v398_v63, 4 }
  0x96   : > { %v265_v2 = vrot.slane %v264_v0, 2  ;;  %v400_v3 = vadd.f32 %v399_v1, %v398_v63 }
  0x98   : > { %v266_v4 = vadd.f32 %v265_v2, %v264_v0  ;;  %v401_v5 = vrot.slane %v400_v3, 2 }
  0x9a   : > { %v267_v6 = vrot.slane %v266_v4, 1  ;;  %v402_v8 = vadd.f32 %v401_v5, %v400_v3 }
  0x9c   : > { %v268_v9 = vadd.f32 %v267_v6, %v266_v4  ;;  %v403_v10 = vrot.slane %v402_v8, 1 }
  0x9e   : > { %v269_v11 = vadd.f32 %v268_v9, %v199_v7  ;;  %v404_v13 = vadd.f32 %v403_v10, %v402_v8 }
  0xa0   : > { %270 = vst [vmem:[%s582_s1] sm:$0x1] %v269_v11  ;;  %v405_v14 = vadd.f32 %v404_v13, %v271_v12 }
  0xa2   : > { %406 = vst [vmem:[%s583_s2] sm:$0x1] %v405_v14 }
  0xa3 PF: > { %s13_s9 = sadd.s32 1, %s465_s9  }
  0xa4   : > { %p10_p5 = scmp.ge.s32.totalorder %s13_s9, 6  }
  0xa6   :  { %12 = sbr.rel (!%p10_p5) target bundleno = 1 (0x1), region = 62 }

// kernel: a_call__.43
= control target key start
LH: loop header
LB: loop body
LE: loop exit
PB: predicated region body
PF: predicated region fallthrough
CT: control target
= control target key end

     0   :  { %s1446_s1 = inlined_call_operand.vmem [shape: bf16[128,128], index: 1, kind: input, shape index: {}]   ;;  %s1447_s0 = inlined_call_operand.vmem [shape: bf16[512,128], index: 0, kind: input, shape index: {}]   ;;  %s1448_s2 = inlined_call_operand.vmem [shape: f32[512,128], index: 2, kind: output, shape index: {}]  }
   0x1   :  { %v1094_v0 = vld [vmem:[%s1446_s1 + $0x38] sm:$0xff]  ;;  %v1093_v1 = vld [vmem:[%s1446_s1 + $0x30] sm:$0xff]  ;;  %v1092_v2 = vld [vmem:[%s1446_s1 + $0x28] sm:$0xff] }
   0x2   :  { %463 = vmatpush.bf16.msra.mxu0 %v1094_v0  ;;  %1095 = vmatpush.bf16.msra.mxu1 %v1094_v0  ;;  %v1091_v3 = vld [vmem:[%s1446_s1 + $0x20] sm:$0xff]  ;;  %v1090_v4 = vld [vmem:[%s1446_s1 + $0x18] sm:$0xff]  ;;  %v1089_v5 = vld [vmem:[%s1446_s1 + $0x10] sm:$0xff] }
   0x3   :  { %1096 = vmatpush.bf16.msra.mxu2 %v1094_v0  ;;  %1097 = vmatpush.bf16.msra.mxu3 %v1094_v0  ;;  %v1088_v6 = vld [vmem:[%s1446_s1 + $0x8] sm:$0xff]  ;;  %v1087_v7 = vld [vmem:[%s1446_s1] sm:$0xff]  ;;  %v1057_v16 = vld [vmem:[%s1447_s0 + $0x10] sm:$0xff] }
   0x4   :  { %v1055_v8 = vld [vmem:[%s1447_s0] sm:$0xff]  ;;  %v1056_v12 = vld [vmem:[%s1447_s0 + $0x8] sm:$0xff]  ;;  %v1065_v17 = vld [vmem:[%s1447_s0 + $0x50] sm:$0xff] }
   0x5   :  { %v1063_v9 = vld [vmem:[%s1447_s0 + $0x40] sm:$0xff]  ;;  %v1064_v13 = vld [vmem:[%s1447_s0 + $0x48] sm:$0xff]  ;;  %v1073_v18 = vld [vmem:[%s1447_s0 + $0x90] sm:$0xff] }
   0x6   :  { %464 = vmatpush.bf16.msra.mxu0 %v1093_v1  ;;  %1098 = vmatpush.bf16.msra.mxu1 %v1093_v1  ;;  %v1071_v10 = vld [vmem:[%s1447_s0 + $0x80] sm:$0xff]  ;;  %v1072_v14 = vld [vmem:[%s1447_s0 + $0x88] sm:$0xff]  ;;  %v1081_v19 = vld [vmem:[%s1447_s0 + $0xd0] sm:$0xff] }
   0x7   :  { %1099 = vmatpush.bf16.msra.mxu2 %v1093_v1  ;;  %1100 = vmatpush.bf16.msra.mxu3 %v1093_v1  ;;  %v1079_v11 = vld [vmem:[%s1447_s0 + $0xc0] sm:$0xff]  ;;  %v1080_v15 = vld [vmem:[%s1447_s0 + $0xc8] sm:$0xff]  ;;  %v1058_v20 = vld [vmem:[%s1447_s0 + $0x18] sm:$0xff] }
   0x8   :  { %v1066_v21 = vld [vmem:[%s1447_s0 + $0x58] sm:$0xff]  ;;  %v1059_v24 = vld [vmem:[%s1447_s0 + $0x20] sm:$0xff]  ;;  %v1060_v28 = vld [vmem:[%s1447_s0 + $0x28] sm:$0xff] }
   0x9   :  { %v1074_v22 = vld [vmem:[%s1447_s0 + $0x98] sm:$0xff]  ;;  %v1067_v25 = vld [vmem:[%s1447_s0 + $0x60] sm:$0xff]  ;;  %v1068_v29 = vld [vmem:[%s1447_s0 + $0x68] sm:$0xff] }
   0xa   :  { %465 = vmatpush.bf16.msra.mxu0 %v1092_v2  ;;  %1101 = vmatpush.bf16.msra.mxu1 %v1092_v2  ;;  %v1082_v23 = vld [vmem:[%s1447_s0 + $0xd8] sm:$0xff]  ;;  %v1075_v26 = vld [vmem:[%s1447_s0 + $0xa0] sm:$0xff]  ;;  %v1076_v30 = vld [vmem:[%s1447_s0 + $0xa8] sm:$0xff] }
   0xb   :  { %1102 = vmatpush.bf16.msra.mxu2 %v1092_v2  ;;  %1103 = vmatpush.bf16.msra.mxu3 %v1092_v2  ;;  %v1083_v27 = vld [vmem:[%s1447_s0 + $0xe0] sm:$0xff]  ;;  %v1084_v31 = vld [vmem:[%s1447_s0 + $0xe8] sm:$0xff]  ;;  %v1061_v32 = vld [vmem:[%s1447_s0 + $0x30] sm:$0xff] }
   0xc   :  { %v1069_v33 = vld [vmem:[%s1447_s0 + $0x70] sm:$0xff]  ;;  %v1062_v36 = vld [vmem:[%s1447_s0 + $0x38] sm:$0xff] }
   0xd   :  { %v1077_v34 = vld [vmem:[%s1447_s0 + $0xb0] sm:$0xff]  ;;  %v1070_v37 = vld [vmem:[%s1447_s0 + $0x78] sm:$0xff] }
   0xe   :  { %466 = vmatpush.bf16.msra.mxu0 %v1091_v3  ;;  %1104 = vmatpush.bf16.msra.mxu1 %v1091_v3  ;;  %v1085_v35 = vld [vmem:[%s1447_s0 + $0xf0] sm:$0xff]  ;;  %v1078_v38 = vld [vmem:[%s1447_s0 + $0xb8] sm:$0xff] }
   0xf   :  { %1105 = vmatpush.bf16.msra.mxu2 %v1091_v3  ;;  %1106 = vmatpush.bf16.msra.mxu3 %v1091_v3  ;;  %v1086_v39 = vld [vmem:[%s1447_s0 + $0xf8] sm:$0xff] }
  0x12   :  { %467 = vmatpush.bf16.msra.mxu0 %v1090_v4  ;;  %1107 = vmatpush.bf16.msra.mxu1 %v1090_v4 }
  0x13   :  { %1108 = vmatpush.bf16.msra.mxu2 %v1090_v4  ;;  %1109 = vmatpush.bf16.msra.mxu3 %v1090_v4 }
  0x16   :  { %468 = vmatpush.bf16.msra.mxu0 %v1089_v5  ;;  %1110 = vmatpush.bf16.msra.mxu1 %v1089_v5 }
  0x17   :  { %1111 = vmatpush.bf16.msra.mxu2 %v1089_v5  ;;  %1112 = vmatpush.bf16.msra.mxu3 %v1089_v5 }
  0x1a   :  { %469 = vmatpush.bf16.msra.mxu0 %v1088_v6  ;;  %1113 = vmatpush.bf16.msra.mxu1 %v1088_v6 }
  0x1b   :  { %1114 = vmatpush.bf16.msra.mxu2 %v1088_v6  ;;  %1115 = vmatpush.bf16.msra.mxu3 %v1088_v6 }
  0x1e   :  { %470 = vmatpush.bf16.msra.mxu0 %v1087_v7  ;;  %1116 = vmatpush.bf16.msra.mxu1 %v1087_v7 }
  0x1f   :  { %1117 = vmatpush.bf16.msra.mxu2 %v1087_v7  ;;  %1118 = vmatpush.bf16.msra.mxu3 %v1087_v7 }
  0x21   :  { %471 = vmatmul.bf16.vlgmr.msra.gmra.mxu0 %v1055_v8  ;;  %511 = vmatmul.bf16.vlgmr.msra.gmra.mxu1 %v1063_v9 }
  0x22   :  { %551 = vmatmul.bf16.vlgmr.msra.gmra.mxu2 %v1071_v10  ;;  %591 = vmatmul.bf16.vlgmr.msra.gmra.mxu3 %v1079_v11 }
  0x31   :  { %476 = vmatmul.bf16.gmra.mxu0 %v1056_v12  ;;  %516 = vmatmul.bf16.gmra.mxu1 %v1064_v13 }
  0x32   :  { %556 = vmatmul.bf16.gmra.mxu2 %v1072_v14  ;;  %596 = vmatmul.bf16.gmra.mxu3 %v1080_v15 }
  0x41   :  { %481 = vmatmul.bf16.gmra.mxu0 %v1057_v16  ;;  %521 = vmatmul.bf16.gmra.mxu1 %v1065_v17 }
  0x42   :  { %561 = vmatmul.bf16.gmra.mxu2 %v1073_v18  ;;  %601 = vmatmul.bf16.gmra.mxu3 %v1081_v19 }
  0x51   :  { %486 = vmatmul.bf16.gmra.mxu0 %v1058_v20  ;;  %526 = vmatmul.bf16.gmra.mxu1 %v1066_v21 }
  0x52   :  { %566 = vmatmul.bf16.gmra.mxu2 %v1074_v22  ;;  %606 = vmatmul.bf16.gmra.mxu3 %v1082_v23 }
  0x61   :  { %491 = vmatmul.bf16.gmra.mxu0 %v1059_v24  ;;  %531 = vmatmul.bf16.gmra.mxu1 %v1067_v25 }
  0x62   :  { %571 = vmatmul.bf16.gmra.mxu2 %v1075_v26  ;;  %611 = vmatmul.bf16.gmra.mxu3 %v1083_v27 }
  0x71   :  { %496 = vmatmul.bf16.gmra.mxu0 %v1060_v28  ;;  %536 = vmatmul.bf16.gmra.mxu1 %v1068_v29 }
  0x72   :  { %576 = vmatmul.bf16.gmra.mxu2 %v1076_v30  ;;  %616 = vmatmul.bf16.gmra.mxu3 %v1084_v31 }
  0x81   :  { %501 = vmatmul.bf16.gmra.mxu0 %v1061_v32  ;;  %541 = vmatmul.bf16.gmra.mxu1 %v1069_v33 }
  0x82   :  { %581 = vmatmul.bf16.gmra.mxu2 %v1077_v34  ;;  %621 = vmatmul.bf16.gmra.mxu3 %v1085_v35 }
  0x91   :  { %506 = vmatmul.bf16.gmra.mxu0 %v1062_v36  ;;  %546 = vmatmul.bf16.gmra.mxu1 %v1070_v37 }
  0x92   :  { %586 = vmatmul.bf16.gmra.mxu2 %v1078_v38  ;;  %626 = vmatmul.bf16.gmra.mxu3 %v1086_v39 }
  0x9e   :  { %v472_v40 = vpop.f32.mrf.mxu0  ;;  %v512_v41 = vpop.f32.mrf.mxu1 }
  0x9f   :  { %827 = vst [vmem:[%s1448_s2] sm:$0xff] %v472_v40 }
  0xa0   :  { %843 = vst [vmem:[%s1448_s2 + $0x80] sm:$0xff] %v512_v41 }
  0xa5   :  { %v552_v42 = vpop.f32.mrf.mxu2  ;;  %v592_v43 = vpop.f32.mrf.mxu3 }
  0xa6   :  { %859 = vst [vmem:[%s1448_s2 + $0x100] sm:$0xff] %v552_v42  ;;  %v474_v44 = vpop.f32.mrf.mxu0  ;;  %v514_v45 = vpop.f32.mrf.mxu1 }
  0xa7   :  { %875 = vst [vmem:[%s1448_s2 + $0x180] sm:$0xff] %v592_v43 }
  0xa8   :  { %828 = vst [vmem:[%s1448_s2 + $0x8] sm:$0xff] %v474_v44 }
  0xa9   :  { %844 = vst [vmem:[%s1448_s2 + $0x88] sm:$0xff] %v514_v45 }
  0xad   :  { %v554_v46 = vpop.f32.mrf.mxu2  ;;  %v594_v47 = vpop.f32.mrf.mxu3 }
  0xae   :  { %860 = vst [vmem:[%s1448_s2 + $0x108] sm:$0xff] %v554_v46  ;;  %v477_v48 = vpop.f32.mrf.mxu0  ;;  %v517_v49 = vpop.f32.mrf.mxu1 }
  0xaf   :  { %876 = vst [vmem:[%s1448_s2 + $0x188] sm:$0xff] %v594_v47 }
  0xb0   :  { %829 = vst [vmem:[%s1448_s2 + $0x10] sm:$0xff] %v477_v48 }
  0xb1   :  { %845 = vst [vmem:[%s1448_s2 + $0x90] sm:$0xff] %v517_v49 }
  0xb5   :  { %v557_v50 = vpop.f32.mrf.mxu2  ;;  %v597_v51 = vpop.f32.mrf.mxu3 }
  0xb6   :  { %861 = vst [vmem:[%s1448_s2 + $0x110] sm:$0xff] %v557_v50  ;;  %v479_v52 = vpop.f32.mrf.mxu0  ;;  %v519_v53 = vpop.f32.mrf.mxu1 }
  0xb7   :  { %877 = vst [vmem:[%s1448_s2 + $0x190] sm:$0xff] %v597_v51 }
  0xb8   :  { %830 = vst [vmem:[%s1448_s2 + $0x18] sm:$0xff] %v479_v52 }
  0xb9   :  { %846 = vst [vmem:[%s1448_s2 + $0x98] sm:$0xff] %v519_v53 }
  0xbd   :  { %v559_v54 = vpop.f32.mrf.mxu2  ;;  %v599_v55 = vpop.f32.mrf.mxu3 }
  0xbe   :  { %862 = vst [vmem:[%s1448_s2 + $0x118] sm:$0xff] %v559_v54  ;;  %v482_v56 = vpop.f32.mrf.mxu0  ;;  %v522_v57 = vpop.f32.mrf.mxu1 }
  0xbf   :  { %878 = vst [vmem:[%s1448_s2 + $0x198] sm:$0xff] %v599_v55 }
  0xc0   :  { %831 = vst [vmem:[%s1448_s2 + $0x20] sm:$0xff] %v482_v56 }
  0xc1   :  { %847 = vst [vmem:[%s1448_s2 + $0xa0] sm:$0xff] %v522_v57 }
  0xc5   :  { %v562_v58 = vpop.f32.mrf.mxu2  ;;  %v602_v59 = vpop.f32.mrf.mxu3 }
  0xc6   :  { %863 = vst [vmem:[%s1448_s2 + $0x120] sm:$0xff] %v562_v58  ;;  %v484_v60 = vpop.f32.mrf.mxu0  ;;  %v524_v61 = vpop.f32.mrf.mxu1 }
  0xc7   :  { %879 = vst [vmem:[%s1448_s2 + $0x1a0] sm:$0xff] %v602_v59 }
  0xc8   :  { %832 = vst [vmem:[%s1448_s2 + $0x28] sm:$0xff] %v484_v60 }
  0xc9   :  { %848 = vst [vmem:[%s1448_s2 + $0xa8] sm:$0xff] %v524_v61 }
  0xcd   :  { %v564_v62 = vpop.f32.mrf.mxu2  ;;  %v604_v63 = vpop.f32.mrf.mxu3 }
  0xce   :  { %864 = vst [vmem:[%s1448_s2 + $0x128] sm:$0xff] %v564_v62  ;;  %v487_v0 = vpop.f32.mrf.mxu0  ;;  %v527_v1 = vpop.f32.mrf.mxu1 }
  0xcf   :  { %880 = vst [vmem:[%s1448_s2 + $0x1a8] sm:$0xff] %v604_v63 }
  0xd0   :  { %833 = vst [vmem:[%s1448_s2 + $0x30] sm:$0xff] %v487_v0 }
  0xd1   :  { %849 = vst [vmem:[%s1448_s2 + $0xb0] sm:$0xff] %v527_v1 }
  0xd5   :  { %v567_v2 = vpop.f32.mrf.mxu2  ;;  %v607_v3 = vpop.f32.mrf.mxu3 }
  0xd6   :  { %865 = vst [vmem:[%s1448_s2 + $0x130] sm:$0xff] %v567_v2  ;;  %v489_v4 = vpop.f32.mrf.mxu0  ;;  %v529_v5 = vpop.f32.mrf.mxu1 }
  0xd7   :  { %881 = vst [vmem:[%s1448_s2 + $0x1b0] sm:$0xff] %v607_v3 }
  0xd8   :  { %834 = vst [vmem:[%s1448_s2 + $0x38] sm:$0xff] %v489_v4 }
  0xd9   :  { %850 = vst [vmem:[%s1448_s2 + $0xb8] sm:$0xff] %v529_v5 }
  0xdd   :  { %v569_v6 = vpop.f32.mrf.mxu2  ;;  %v609_v7 = vpop.f32.mrf.mxu3 }
  0xde   :  { %866 = vst [vmem:[%s1448_s2 + $0x138] sm:$0xff] %v569_v6  ;;  %v492_v8 = vpop.f32.mrf.mxu0  ;;  %v532_v9 = vpop.f32.mrf.mxu1 }
  0xdf   :  { %882 = vst [vmem:[%s1448_s2 + $0x1b8] sm:$0xff] %v609_v7 }
  0xe0   :  { %835 = vst [vmem:[%s1448_s2 + $0x40] sm:$0xff] %v492_v8 }
  0xe1   :  { %851 = vst [vmem:[%s1448_s2 + $0xc0] sm:$0xff] %v532_v9 }
  0xe5   :  { %v572_v10 = vpop.f32.mrf.mxu2  ;;  %v612_v11 = vpop.f32.mrf.mxu3 }
  0xe6   :  { %867 = vst [vmem:[%s1448_s2 + $0x140] sm:$0xff] %v572_v10  ;;  %v494_v12 = vpop.f32.mrf.mxu0  ;;  %v534_v13 = vpop.f32.mrf.mxu1 }
  0xe7   :  { %883 = vst [vmem:[%s1448_s2 + $0x1c0] sm:$0xff] %v612_v11 }
  0xe8   :  { %836 = vst [vmem:[%s1448_s2 + $0x48] sm:$0xff] %v494_v12 }
  0xe9   :  { %852 = vst [vmem:[%s1448_s2 + $0xc8] sm:$0xff] %v534_v13 }
  0xed   :  { %v574_v14 = vpop.f32.mrf.mxu2  ;;  %v614_v15 = vpop.f32.mrf.mxu3 }
  0xee   :  { %868 = vst [vmem:[%s1448_s2 + $0x148] sm:$0xff] %v574_v14  ;;  %v497_v16 = vpop.f32.mrf.mxu0  ;;  %v537_v17 = vpop.f32.mrf.mxu1 }
  0xef   :  { %884 = vst [vmem:[%s1448_s2 + $0x1c8] sm:$0xff] %v614_v15 }
  0xf0   :  { %837 = vst [vmem:[%s1448_s2 + $0x50] sm:$0xff] %v497_v16 }
  0xf1   :  { %853 = vst [vmem:[%s1448_s2 + $0xd0] sm:$0xff] %v537_v17 }
  0xf5   :  { %v577_v18 = vpop.f32.mrf.mxu2  ;;  %v617_v19 = vpop.f32.mrf.mxu3 }
  0xf6   :  { %869 = vst [vmem:[%s1448_s2 + $0x150] sm:$0xff] %v577_v18  ;;  %v499_v20 = vpop.f32.mrf.mxu0  ;;  %v539_v21 = vpop.f32.mrf.mxu1 }
  0xf7   :  { %885 = vst [vmem:[%s1448_s2 + $0x1d0] sm:$0xff] %v617_v19 }
  0xf8   :  { %838 = vst [vmem:[%s1448_s2 + $0x58] sm:$0xff] %v499_v20 }
  0xf9   :  { %854 = vst [vmem:[%s1448_s2 + $0xd8] sm:$0xff] %v539_v21 }
  0xfd   :  { %v579_v22 = vpop.f32.mrf.mxu2  ;;  %v619_v23 = vpop.f32.mrf.mxu3 }
  0xfe   :  { %870 = vst [vmem:[%s1448_s2 + $0x158] sm:$0xff] %v579_v22  ;;  %v502_v24 = vpop.f32.mrf.mxu0  ;;  %v542_v25 = vpop.f32.mrf.mxu1 }
  0xff   :  { %886 = vst [vmem:[%s1448_s2 + $0x1d8] sm:$0xff] %v619_v23 }
 0x100   :  { %839 = vst [vmem:[%s1448_s2 + $0x60] sm:$0xff] %v502_v24 }
 0x101   :  { %855 = vst [vmem:[%s1448_s2 + $0xe0] sm:$0xff] %v542_v25 }
 0x105   :  { %v582_v26 = vpop.f32.mrf.mxu2  ;;  %v622_v27 = vpop.f32.mrf.mxu3 }
 0x106   :  { %871 = vst [vmem:[%s1448_s2 + $0x160] sm:$0xff] %v582_v26  ;;  %v504_v28 = vpop.f32.mrf.mxu0  ;;  %v544_v29 = vpop.f32.mrf.mxu1 }
 0x107   :  { %887 = vst [vmem:[%s1448_s2 + $0x1e0] sm:$0xff] %v622_v27 }
 0x108   :  { %840 = vst [vmem:[%s1448_s2 + $0x68] sm:$0xff] %v504_v28 }
 0x109   :  { %856 = vst [vmem:[%s1448_s2 + $0xe8] sm:$0xff] %v544_v29 }
 0x10d   :  { %v584_v30 = vpop.f32.mrf.mxu2  ;;  %v624_v31 = vpop.f32.mrf.mxu3 }
 0x10e   :  { %872 = vst [vmem:[%s1448_s2 + $0x168] sm:$0xff] %v584_v30  ;;  %v507_v32 = vpop.f32.mrf.mxu0  ;;  %v547_v33 = vpop.f32.mrf.mxu1 }
 0x10f   :  { %888 = vst [vmem:[%s1448_s2 + $0x1e8] sm:$0xff] %v624_v31 }
 0x110   :  { %841 = vst [vmem:[%s1448_s2 + $0x70] sm:$0xff] %v507_v32 }
 0x111   :  { %857 = vst [vmem:[%s1448_s2 + $0xf0] sm:$0xff] %v547_v33 }
 0x115   :  { %v587_v34 = vpop.f32.mrf.mxu2  ;;  %v627_v35 = vpop.f32.mrf.mxu3 }
 0x116   :  { %873 = vst [vmem:[%s1448_s2 + $0x170] sm:$0xff] %v587_v34  ;;  %v509_v36 = vpop.f32.mrf.mxu0  ;;  %v549_v37 = vpop.f32.mrf.mxu1 }
 0x117   :  { %889 = vst [vmem:[%s1448_s2 + $0x1f0] sm:$0xff] %v627_v35 }
 0x118   :  { %842 = vst [vmem:[%s1448_s2 + $0x78] sm:$0xff] %v509_v36 }
 0x119   :  { %858 = vst [vmem:[%s1448_s2 + $0xf8] sm:$0xff] %v549_v37 }
 0x11d   :  { %v589_v38 = vpop.f32.mrf.mxu2  ;;  %v629_v39 = vpop.f32.mrf.mxu3 }
 0x11e   :  { %874 = vst [vmem:[%s1448_s2 + $0x178] sm:$0xff] %v589_v38 }
 0x11f   :  { %890 = vst [vmem:[%s1448_s2 + $0x1f8] sm:$0xff] %v629_v39 }

// kernel: a_call__.48
= control target key start
LH: loop header
LB: loop body
LE: loop exit
PB: predicated region body
PF: predicated region fallthrough
CT: control target
= control target key end

     0   :  { %s607_s12 = smov 0   ;;  %s897_s0 = inlined_call_operand.vmem [shape: f32[2048,128], index: 0, kind: input, shape index: {}]   ;;  %s898_s1 = inlined_call_operand.vmem [shape: f32[1,128], index: 1, kind: input, shape index: {}]   ;;  %s899_s2 = inlined_call_operand.vmem [shape: f32[1,128], index: 2, kind: input, shape index: {}]   ;;  %s900_s3 = inlined_call_operand.vmem [shape: f32[2048,128], index: 3, kind: output, shape index: {}]  }
   0x1 LB: > { %s558_s13 = sadd.s32 4294967295, %s585_s12   ;;  %p562_p0 = scmp.ge.s32.totalorder %s585_s12, 1  ;;  %s585_s12 = sphi %s607_s12, %s13_s12  }
   0x2   : > { %p138_p1 = scmp.lt.s32.totalorder %s585_s12, 5 }
   0x4   : > { %p139_p2 = pnand %p562_p0, %p138_p1 }
   0x5   : > { %s563_s14 = sshll.u32 (!%p139_p2), %s558_s13, 6 }
   0x6   : > { %142 = sbr.rel (%p139_p2) target bundleno = 85 (0x55), region = 32  ;;  %p163_p3 = scmp.lt.s32.totalorder (!%p139_p2), %s563_s14, 255 }
   0xb   : > { %s902_s14 = smov (!%p163_p3, %s563_s14), 255  ;;  %v618_v0 = vld [vmem:[%s898_s1] ss:$0 sm:$0xff] }
   0xc   : > { %s564_s17 = sshll.u32 %s902_s14, 3  ;;  %v628_v1 = vld [vmem:[%s899_s2] ss:$0 sm:$0xff] }
   0xd   : > { %s623_s20 = scalar_lea.vmem %s897_s0, %s564_s17  ;;  %s651_s25 = scalar_lea.vmem %s900_s3, %s564_s17 }
   0xe   : > { %v174_v2 = vld [vmem:[%s623_s20] sm:$0xff]  ;;  %v175_v3 = vld [vmem:[%s623_s20 + $0x8] sm:$0xff]  ;;  %v176_v4 = vld [vmem:[%s623_s20 + $0x10] sm:$0xff] }
   0xf   : > { %v242_v5 = vmul.f32 %v618_v0, %v174_v2  ;;  %v243_v6 = vmul.f32 %v618_v0, %v175_v3  ;;  %v244_v7 = vmul.f32 %v618_v0, %v176_v4  ;;  %v177_v8 = vld [vmem:[%s623_s20 + $0x18] sm:$0xff]  ;;  %v178_v9 = vld [vmem:[%s623_s20 + $0x20] sm:$0xff]  ;;  %v179_v10 = vld [vmem:[%s623_s20 + $0x28] sm:$0xff] }
  0x10   : > { %v245_v11 = vmul.f32 %v618_v0, %v177_v8  ;;  %v246_v12 = vmul.f32 %v618_v0, %v178_v9  ;;  %v247_v13 = vmul.f32 %v618_v0, %v179_v10  ;;  %v180_v14 = vld [vmem:[%s623_s20 + $0x30] sm:$0xff]  ;;  %v181_v15 = vld [vmem:[%s623_s20 + $0x38] sm:$0xff]  ;;  %v182_v24 = vld [vmem:[%s623_s20 + $0x40] sm:$0xff] }
  0x11   : > { %v310_v16 = vadd.f32 %v628_v1, %v242_v5  ;;  %v311_v17 = vadd.f32 %v628_v1, %v243_v6  ;;  %v312_v18 = vadd.f32 %v628_v1, %v244_v7  ;;  %v248_v19 = vmul.f32 %v618_v0, %v180_v14  ;;  %v183_v25 = vld [vmem:[%s623_s20 + $0x48] sm:$0xff]  ;;  %v184_v26 = vld [vmem:[%s623_s20 + $0x50] sm:$0xff]  ;;  %v185_v31 = vld [vmem:[%s623_s20 + $0x58] sm:$0xff] }
  0x12   : > { %v313_v20 = vadd.f32 %v628_v1, %v245_v11  ;;  %v314_v21 = vadd.f32 %v628_v1, %v246_v12  ;;  %v315_v22 = vadd.f32 %v628_v1, %v247_v13  ;;  %v249_v23 = vmul.f32 %v618_v0, %v181_v15  ;;  %v186_v32 = vld [vmem:[%s623_s20 + $0x60] sm:$0xff]  ;;  %v187_v33 = vld [vmem:[%s623_s20 + $0x68] sm:$0xff]  ;;  %v188_v37 = vld [vmem:[%s623_s20 + $0x70] sm:$0xff] }
  0x13   : > { %v374_v27 = vmax.f32 %v310_v16, 0.0  ;;  %v375_v28 = vmax.f32 %v311_v17, 0.0  ;;  %v376_v29 = vmax.f32 %v312_v18, 0.0  ;;  %v316_v30 = vadd.f32 %v628_v1, %v248_v19  ;;  %v189_v42 = vld [vmem:[%s623_s20 + $0x78] sm:$0xff]  ;;  %v190_v54 = vld [vmem:[%s623_s20 + $0x80] sm:$0xff]  ;;  %v191_v55 = vld [vmem:[%s623_s20 + $0x88] sm:$0xff] }
  0x14   : > { %v377_v34 = vmax.f32 %v313_v20, 0.0  ;;  %v378_v35 = vmax.f32 %v314_v21, 0.0  ;;  %v317_v36 = vadd.f32 %v628_v1, %v249_v23  ;;  %v379_v38 = vmax.f32 %v315_v22, 0.0  ;;  %v192_v56 = vld [vmem:[%s623_s20 + $0x90] sm:$0xff]  ;;  %v193_v59 = vld [vmem:[%s623_s20 + $0x98] sm:$0xff]  ;;  %v194_v63 = vld [vmem:[%s623_s20 + $0xa0] sm:$0xff] }
  0x15   : > { %438 = vst [vmem:[%s651_s25] sm:$0xff] %v374_v27  ;;  %v250_v39 = vmul.f32 %v618_v0, %v182_v24  ;;  %v251_v40 = vmul.f32 %v618_v0, %v183_v25  ;;  %v252_v41 = vmul.f32 %v618_v0, %v184_v26  ;;  %v380_v43 = vmax.f32 %v316_v30, 0.0  ;;  %v195_v6 = vld [vmem:[%s623_s20 + $0xa8] sm:$0xff]  ;;  %v196_v10 = vld [vmem:[%s623_s20 + $0xb0] sm:$0xff]  ;;  %v197_v14 = vld [vmem:[%s623_s20 + $0xb8] sm:$0xff] }
  0x16   : > { %439 = vst [vmem:[%s651_s25 + $0x8] sm:$0xff] %v375_v28  ;;  %v253_v44 = vmul.f32 %v618_v0, %v185_v31  ;;  %v254_v45 = vmul.f32 %v618_v0, %v186_v32  ;;  %v255_v46 = vmul.f32 %v618_v0, %v187_v33  ;;  %v256_v50 = vmul.f32 %v618_v0, %v188_v37  ;;  %v198_v18 = vld [vmem:[%s623_s20 + $0xc0] sm:$0xff]  ;;  %v199_v22 = vld [vmem:[%s623_s20 + $0xc8] sm:$0xff]  ;;  %v200_v26 = vld [vmem:[%s623_s20 + $0xd0] sm:$0xff] }
  0x17   : > { %440 = vst [vmem:[%s651_s25 + $0x10] sm:$0xff] %v376_v29  ;;  %v318_v47 = vadd.f32 %v628_v1, %v250_v39  ;;  %v319_v48 = vadd.f32 %v628_v1, %v251_v40  ;;  %v320_v49 = vadd.f32 %v628_v1, %v252_v41  ;;  %v381_v51 = vmax.f32 %v317_v36, 0.0  ;;  %v201_v30 = vld [vmem:[%s623_s20 + $0xd8] sm:$0xff] }
  0x18   : > { %441 = vst [vmem:[%s651_s25 + $0x18] sm:$0xff] %v377_v34  ;;  %v321_v52 = vadd.f32 %v628_v1, %v253_v44  ;;  %v257_v53 = vmul.f32 %v618_v0, %v189_v42  ;;  %v322_v58 = vadd.f32 %v628_v1, %v254_v45  ;;  %v323_v62 = vadd.f32 %v628_v1, %v255_v46  ;;  %v202_v34 = vld [vmem:[%s623_s20 + $0xe0] sm:$0xff]  ;;  %v204_v42 = vld [vmem:[%s623_s20 + $0xf0] sm:$0xff]  ;;  %v205_v46 = vld [vmem:[%s623_s20 + $0xf8] sm:$0xff] }
  0x19   : > { %442 = vst [vmem:[%s651_s25 + $0x20] sm:$0xff] %v378_v35  ;;  %v382_v57 = vmax.f32 %v318_v47, 0.0  ;;  %v383_v60 = vmax.f32 %v319_v48, 0.0  ;;  %v384_v61 = vmax.f32 %v320_v49, 0.0  ;;  %v324_v2 = vadd.f32 %v628_v1, %v256_v50  ;;  %v206_v50 = vld [vmem:[%s623_s20 + $0x100] sm:$0xff] }
  0x1a   : > { %443 = vst [vmem:[%s651_s25 + $0x28] sm:$0xff] %v379_v38  ;;  %v258_v3 = vmul.f32 %v618_v0, %v190_v54  ;;  %v259_v4 = vmul.f32 %v618_v0, %v191_v55  ;;  %v260_v5 = vmul.f32 %v618_v0, %v192_v56  ;;  %v385_v7 = vmax.f32 %v321_v52, 0.0  ;;  %v203_v38 = vld [vmem:[%s623_s20 + $0xe8] sm:$0xff] }
  0x1b   : > { %444 = vst [vmem:[%s651_s25 + $0x30] sm:$0xff] %v380_v43  ;;  %v325_v8 = vadd.f32 %v628_v1, %v257_v53  ;;  %v261_v9 = vmul.f32 %v618_v0, %v193_v59  ;;  %v386_v11 = vmax.f32 %v322_v58, 0.0  ;;  %v262_v13 = vmul.f32 %v618_v0, %v194_v63  ;;  %v207_v54 = vld [vmem:[%s623_s20 + $0x108] sm:$0xff]  ;;  %v208_v58 = vld [vmem:[%s623_s20 + $0x110] sm:$0xff] }
  0x1c   : > { %445 = vst [vmem:[%s651_s25 + $0x38] sm:$0xff] %v381_v51  ;;  %v326_v12 = vadd.f32 %v628_v1, %v258_v3  ;;  %v387_v15 = vmax.f32 %v323_v62, 0.0  ;;  %v327_v16 = vadd.f32 %v628_v1, %v259_v4  ;;  %v263_v17 = vmul.f32 %v618_v0, %v195_v6  ;;  %v209_v62 = vld [vmem:[%s623_s20 + $0x118] sm:$0xff]  ;;  %v210_v4 = vld [vmem:[%s623_s20 + $0x120] sm:$0xff] }
  0x1d   : > { %446 = vst [vmem:[%s651_s25 + $0x40] sm:$0xff] %v382_v57  ;;  %v388_v19 = vmax.f32 %v324_v2, 0.0  ;;  %v328_v20 = vadd.f32 %v628_v1, %v260_v5  ;;  %v264_v21 = vmul.f32 %v618_v0, %v196_v10  ;;  %v389_v23 = vmax.f32 %v325_v8, 0.0  ;;  %v211_v8 = vld [vmem:[%s623_s20 + $0x128] sm:$0xff] }
  0x1e   : > { %447 = vst [vmem:[%s651_s25 + $0x48] sm:$0xff] %v383_v60  ;;  %v329_v24 = vadd.f32 %v628_v1, %v261_v9  ;;  %v265_v25 = vmul.f32 %v618_v0, %v197_v14  ;;  %v390_v27 = vmax.f32 %v326_v12, 0.0  ;;  %v330_v28 = vadd.f32 %v628_v1, %v262_v13  ;;  %v212_v12 = vld [vmem:[%s623_s20 + $0x130] sm:$0xff] }
  0x1f   : > { %448 = vst [vmem:[%s651_s25 + $0x50] sm:$0xff] %v384_v61  ;;  %v266_v29 = vmul.f32 %v618_v0, %v198_v18  ;;  %v391_v31 = vmax.f32 %v327_v16, 0.0  ;;  %v331_v32 = vadd.f32 %v628_v1, %v263_v17  ;;  %v267_v33 = vmul.f32 %v618_v0, %v199_v22  ;;  %v213_v16 = vld [vmem:[%s623_s20 + $0x138] sm:$0xff] }
  0x20   : > { %449 = vst [vmem:[%s651_s25 + $0x58] sm:$0xff] %v385_v7  ;;  %v392_v35 = vmax.f32 %v328_v20, 0.0  ;;  %v332_v36 = vadd.f32 %v628_v1, %v264_v21  ;;  %v268_v37 = vmul.f32 %v618_v0, %v200_v26  ;;  %v393_v39 = vmax.f32 %v329_v24, 0.0  ;;  %v214_v20 = vld [vmem:[%s623_s20 + $0x140] sm:$0xff]  ;;  %v215_v24 = vld [vmem:[%s623_s20 + $0x148] sm:$0xff] }
  0x21   : > { %450 = vst [vmem:[%s651_s25 + $0x60] sm:$0xff] %v386_v11  ;;  %v333_v40 = vadd.f32 %v628_v1, %v265_v25  ;;  %v269_v41 = vmul.f32 %v618_v0, %v201_v30  ;;  %v394_v43 = vmax.f32 %v330_v28, 0.0  ;;  %v334_v44 = vadd.f32 %v628_v1, %v266_v29  ;;  %v216_v28 = vld [vmem:[%s623_s20 + $0x150] sm:$0xff] }
  0x22   : > { %451 = vst [vmem:[%s651_s25 + $0x68] sm:$0xff] %v387_v15  ;;  %v270_v45 = vmul.f32 %v618_v0, %v202_v34  ;;  %v395_v47 = vmax.f32 %v331_v32, 0.0  ;;  %v335_v48 = vadd.f32 %v628_v1, %v267_v33  ;;  %v271_v49 = vmul.f32 %v618_v0, %v203_v38  ;;  %v217_v32 = vld [vmem:[%s623_s20 + $0x158] sm:$0xff] }
  0x23   : > { %452 = vst [vmem:[%s651_s25 + $0x70] sm:$0xff] %v388_v19  ;;  %v396_v51 = vmax.f32 %v332_v36, 0.0  ;;  %v336_v52 = vadd.f32 %v628_v1, %v268_v37  ;;  %v272_v53 = vmul.f32 %v618_v0, %v204_v42  ;;  %v397_v55 = vmax.f32 %v333_v40, 0.0  ;;  %v218_v36 = vld [vmem:[%s623_s20 + $0x160] sm:$0xff]  ;;  %v219_v40 = vld [vmem:[%s623_s20 + $0x168] sm:$0xff] }
  0x24   : > { %453 = vst [vmem:[%s651_s25 + $0x78] sm:$0xff] %v389_v23  ;;  %v337_v56 = vadd.f32 %v628_v1, %v269_v41  ;;  %v273_v57 = vmul.f32 %v618_v0, %v205_v46  ;;  %v398_v59 = vmax.f32 %v334_v44, 0.0  ;;  %v338_v60 = vadd.f32 %v628_v1, %v270_v45  ;;  %v220_v44 = vld [vmem:[%s623_s20 + $0x170] sm:$0xff] }
  0x25   : > { %454 = vst [vmem:[%s651_s25 + $0x80] sm:$0xff] %v390_v27  ;;  %v274_v61 = vmul.f32 %v618_v0, %v206_v50  ;;  %v399_v63 = vmax.f32 %v335_v48, 0.0  ;;  %v339_v2 = vadd.f32 %v628_v1, %v271_v49  ;;  %v275_v3 = vmul.f32 %v618_v0, %v207_v54  ;;  %v221_v48 = vld [vmem:[%s623_s20 + $0x178] sm:$0xff] }
  0x26   : > { %455 = vst [vmem:[%s651_s25 + $0x88] sm:$0xff] %v391_v31  ;;  %v400_v5 = vmax.f32 %v336_v52, 0.0  ;;  %v340_v6 = vadd.f32 %v628_v1, %v272_v53  ;;  %v276_v7 = vmul.f32 %v618_v0, %v208_v58  ;;  %v401_v9 = vmax.f32 %v337_v56, 0.0  ;;  %v222_v52 = vld [vmem:[%s623_s20 + $0x180] sm:$0xff]  ;;  %v223_v56 = vld [vmem:[%s623_s20 + $0x188] sm:$0xff] }
  0x27   : > { %456 = vst [vmem:[%s651_s25 + $0x90] sm:$0xff] %v392_v35  ;;  %v341_v10 = vadd.f32 %v628_v1, %v273_v57  ;;  %v277_v11 = vmul.f32 %v618_v0, %v209_v62  ;;  %v402_v13 = vmax.f32 %v338_v60, 0.0  ;;  %v342_v14 = vadd.f32 %v628_v1, %v274_v61  ;;  %v224_v60 = vld [vmem:[%s623_s20 + $0x190] sm:$0xff] }
  0x28   : > { %457 = vst [vmem:[%s651_s25 + $0x98] sm:$0xff] %v393_v39  ;;  %v278_v15 = vmul.f32 %v618_v0, %v210_v4  ;;  %v403_v17 = vmax.f32 %v339_v2, 0.0  ;;  %v343_v18 = vadd.f32 %v628_v1, %v275_v3  ;;  %v279_v19 = vmul.f32 %v618_v0, %v211_v8  ;;  %v225_v2 = vld [vmem:[%s623_s20 + $0x198] sm:$0xff] }
  0x29   : > { %458 = vst [vmem:[%s651_s25 + $0xa0] sm:$0xff] %v394_v43  ;;  %v404_v21 = vmax.f32 %v340_v6, 0.0  ;;  %v344_v22 = vadd.f32 %v628_v1, %v276_v7  ;;  %v280_v23 = vmul.f32 %v618_v0, %v212_v12  ;;  %v405_v25 = vmax.f32 %v341_v10, 0.0  ;;  %v237_v3 = vld [vmem:[%s623_s20 + $0x1f8] sm:$0xff]  ;;  %v226_v7 = vld [vmem:[%s623_s20 + $0x1a0] sm:$0xff] }
  0x2a   : > { %459 = vst [vmem:[%s651_s25 + $0xa8] sm:$0xff] %v395_v47  ;;  %v345_v26 = vadd.f32 %v628_v1, %v277_v11  ;;  %v281_v27 = vmul.f32 %v618_v0, %v213_v16  ;;  %v406_v29 = vmax.f32 %v342_v14, 0.0  ;;  %v346_v30 = vadd.f32 %v628_v1, %v278_v15  ;;  %v227_v11 = vld [vmem:[%s623_s20 + $0x1a8] sm:$0xff]  ;;  %v228_v15 = vld [vmem:[%s623_s20 + $0x1b0] sm:$0xff] }
  0x2b   : > { %460 = vst [vmem:[%s651_s25 + $0xb0] sm:$0xff] %v396_v51  ;;  %v282_v31 = vmul.f32 %v618_v0, %v214_v20  ;;  %v407_v33 = vmax.f32 %v343_v18, 0.0  ;;  %v347_v34 = vadd.f32 %v628_v1, %v279_v19  ;;  %v283_v35 = vmul.f32 %v618_v0, %v215_v24  ;;  %v229_v20 = vld [vmem:[%s623_s20 + $0x1b8] sm:$0xff]  ;;  %v230_v24 = vld [vmem:[%s623_s20 + $0x1c0] sm:$0xff] }
  0x2c   : > { %461 = vst [vmem:[%s651_s25 + $0xb8] sm:$0xff] %v397_v55  ;;  %v408_v37 = vmax.f32 %v344_v22, 0.0  ;;  %v348_v38 = vadd.f32 %v628_v1, %v280_v23  ;;  %v284_v39 = vmul.f32 %v618_v0, %v216_v28  ;;  %v409_v41 = vmax.f32 %v345_v26, 0.0 }
  0x2d   : > { %462 = vst [vmem:[%s651_s25 + $0xc0] sm:$0xff] %v398_v59  ;;  %v349_v42 = vadd.f32 %v628_v1, %v281_v27  ;;  %v285_v43 = vmul.f32 %v618_v0, %v217_v32  ;;  %v410_v45 = vmax.f32 %v346_v30, 0.0  ;;  %v350_v46 = vadd.f32 %v628_v1, %v282_v31 }
  0x2e   : > { %463 = vst [vmem:[%s651_s25 + $0xc8] sm:$0xff] %v399_v63  ;;  %v286_v47 = vmul.f32 %v618_v0, %v218_v36  ;;  %v411_v49 = vmax.f32 %v347_v34, 0.0  ;;  %v351_v50 = vadd.f32 %v628_v1, %v283_v35  ;;  %v287_v51 = vmul.f32 %v618_v0, %v219_v40 }
  0x2f   : > { %464 = vst [vmem:[%s651_s25 + $0xd0] sm:$0xff] %v400_v5  ;;  %v412_v53 = vmax.f32 %v348_v38, 0.0  ;;  %v352_v54 = vadd.f32 %v628_v1, %v284_v39  ;;  %v288_v55 = vmul.f32 %v618_v0, %v220_v44  ;;  %v413_v57 = vmax.f32 %v349_v42, 0.0 }
  0x30   : > { %465 = vst [vmem:[%s651_s25 + $0xd8] sm:$0xff] %v401_v9  ;;  %v353_v58 = vadd.f32 %v628_v1, %v285_v43  ;;  %v289_v59 = vmul.f32 %v618_v0, %v221_v48  ;;  %v414_v61 = vmax.f32 %v350_v46, 0.0  ;;  %v354_v62 = vadd.f32 %v628_v1, %v286_v47 }
  0x31   : > { %466 = vst [vmem:[%s651_s25 + $0xe0] sm:$0xff] %v402_v13  ;;  %v290_v63 = vmul.f32 %v618_v0, %v222_v52  ;;  %v415_v4 = vmax.f32 %v351_v50, 0.0  ;;  %v355_v5 = vadd.f32 %v628_v1, %v287_v51  ;;  %v291_v6 = vmul.f32 %v618_v0, %v223_v56 }
  0x32   : > { %467 = vst [vmem:[%s651_s25 + $0xe8] sm:$0xff] %v403_v17  ;;  %v416_v8 = vmax.f32 %v352_v54, 0.0  ;;  %v356_v9 = vadd.f32 %v628_v1, %v288_v55  ;;  %v292_v10 = vmul.f32 %v618_v0, %v224_v60  ;;  %v417_v12 = vmax.f32 %v353_v58, 0.0 }
  0x33   : > { %468 = vst [vmem:[%s651_s25 + $0xf0] sm:$0xff] %v404_v21  ;;  %v357_v13 = vadd.f32 %v628_v1, %v289_v59  ;;  %v293_v14 = vmul.f32 %v618_v0, %v225_v2  ;;  %v305_v16 = vmul.f32 %v618_v0, %v237_v3  ;;  %v418_v17 = vmax.f32 %v354_v62, 0.0 }
  0x34   : > { %469 = vst [vmem:[%s651_s25 + $0xf8] sm:$0xff] %v405_v25  ;;  %v358_v18 = vadd.f32 %v628_v1, %v290_v63  ;;  %v294_v19 = vmul.f32 %v618_v0, %v226_v7  ;;  %v419_v21 = vmax.f32 %v355_v5, 0.0  ;;  %v359_v22 = vadd.f32 %v628_v1, %v291_v6 }
  0x35   : > { %470 = vst [vmem:[%s651_s25 + $0x100] sm:$0xff] %v406_v29  ;;  %v295_v23 = vmul.f32 %v618_v0, %v227_v11  ;;  %v841_v25 = vadd.f32 %v628_v1, %v305_v16  ;;  %v420_v26 = vmax.f32 %v356_v9, 0.0  ;;  %v360_v27 = vadd.f32 %v628_v1, %v292_v10  ;;  %v231_v29 = vld [vmem:[%s623_s20 + $0x1c8] sm:$0xff] }
  0x36   : > { %471 = vst [vmem:[%s651_s25 + $0x108] sm:$0xff] %v407_v33  ;;  %v296_v28 = vmul.f32 %v618_v0, %v228_v15  ;;  %v421_v30 = vmax.f32 %v357_v13, 0.0  ;;  %v361_v31 = vadd.f32 %v628_v1, %v293_v14  ;;  %v297_v32 = vmul.f32 %v618_v0, %v229_v20  ;;  %v232_v33 = vld [vmem:[%s623_s20 + $0x1d0] sm:$0xff] }
  0x37   : > { %472 = vst [vmem:[%s651_s25 + $0x110] sm:$0xff] %v408_v37  ;;  %v422_v34 = vmax.f32 %v358_v18, 0.0  ;;  %v362_v35 = vadd.f32 %v628_v1, %v294_v19  ;;  %v298_v36 = vmul.f32 %v618_v0, %v230_v24  ;;  %v233_v37 = vld [vmem:[%s623_s20 + $0x1d8] sm:$0xff]  ;;  %v423_v38 = vmax.f32 %v359_v22, 0.0 }
  0x38   : > { %473 = vst [vmem:[%s651_s25 + $0x118] sm:$0xff] %v409_v41  ;;  %v363_v39 = vadd.f32 %v628_v1, %v295_v23  ;;  %v299_v40 = vmul.f32 %v618_v0, %v231_v29  ;;  %v234_v41 = vld [vmem:[%s623_s20 + $0x1e0] sm:$0xff]  ;;  %v424_v42 = vmax.f32 %v360_v27, 0.0  ;;  %v364_v43 = vadd.f32 %v628_v1, %v296_v28 }
  0x39   : > { %474 = vst [vmem:[%s651_s25 + $0x120] sm:$0xff] %v410_v45  ;;  %v300_v44 = vmul.f32 %v618_v0, %v232_v33  ;;  %v235_v45 = vld [vmem:[%s623_s20 + $0x1e8] sm:$0xff]  ;;  %v425_v46 = vmax.f32 %v361_v31, 0.0  ;;  %v365_v47 = vadd.f32 %v628_v1, %v297_v32  ;;  %v301_v48 = vmul.f32 %v618_v0, %v233_v37 }
  0x3a   : > { %475 = vst [vmem:[%s651_s25 + $0x128] sm:$0xff] %v411_v49  ;;  %v236_v49 = vld [vmem:[%s623_s20 + $0x1f0] sm:$0xff]  ;;  %v426_v50 = vmax.f32 %v362_v35, 0.0  ;;  %v366_v51 = vadd.f32 %v628_v1, %v298_v36  ;;  %v302_v52 = vmul.f32 %v618_v0, %v234_v41  ;;  %v367_v54 = vadd.f32 %v628_v1, %v299_v40 }
  0x3b   : > { %476 = vst [vmem:[%s651_s25 + $0x130] sm:$0xff] %v412_v53  ;;  %v427_v53 = vmax.f32 %v363_v39, 0.0  ;;  %v303_v55 = vmul.f32 %v618_v0, %v235_v45  ;;  %v428_v56 = vmax.f32 %v364_v43, 0.0  ;;  %v304_v58 = vmul.f32 %v618_v0, %v236_v49 }
  0x3c   : > { %477 = vst [vmem:[%s651_s25 + $0x138] sm:$0xff] %v413_v57  ;;  %v368_v57 = vadd.f32 %v628_v1, %v300_v44  ;;  %v429_v59 = vmax.f32 %v365_v47, 0.0  ;;  %v369_v60 = vadd.f32 %v628_v1, %v301_v48  ;;  %v370_v62 = vadd.f32 %v628_v1, %v302_v52 }
  0x3d   : > { %478 = vst [vmem:[%s651_s25 + $0x140] sm:$0xff] %v414_v61  ;;  %v430_v61 = vmax.f32 %v366_v51, 0.0  ;;  %v431_v63 = vmax.f32 %v367_v54, 0.0  ;;  %v371_v2 = vadd.f32 %v628_v1, %v303_v55  ;;  %v372_v3 = vadd.f32 %v628_v1, %v304_v58 }
  0x3e   : > { %479 = vst [vmem:[%s651_s25 + $0x148] sm:$0xff] %v415_v4  ;;  %v432_v0 = vmax.f32 %v368_v57, 0.0  ;;  %v433_v4 = vmax.f32 %v369_v60, 0.0  ;;  %v434_v5 = vmax.f32 %v370_v62, 0.0 }
  0x3f   : > { %480 = vst [vmem:[%s651_s25 + $0x150] sm:$0xff] %v416_v8  ;;  %v435_v6 = vmax.f32 %v371_v2, 0.0  ;;  %v436_v7 = vmax.f32 %v372_v3, 0.0  ;;  %v437_v8 = vmax.f32 %v841_v25, 0.0 }
  0x40   : > { %481 = vst [vmem:[%s651_s25 + $0x158] sm:$0xff] %v417_v12 }
  0x41   : > { %482 = vst [vmem:[%s651_s25 + $0x160] sm:$0xff] %v418_v17 }
  0x42   : > { %483 = vst [vmem:[%s651_s25 + $0x168] sm:$0xff] %v419_v21 }
  0x43   : > { %484 = vst [vmem:[%s651_s25 + $0x170] sm:$0xff] %v420_v26 }
  0x44   : > { %485 = vst [vmem:[%s651_s25 + $0x178] sm:$0xff] %v421_v30 }
  0x45   : > { %486 = vst [vmem:[%s651_s25 + $0x180] sm:$0xff] %v422_v34 }
  0x46   : > { %487 = vst [vmem:[%s651_s25 + $0x188] sm:$0xff] %v423_v38 }
  0x47   : > { %488 = vst [vmem:[%s651_s25 + $0x190] sm:$0xff] %v424_v42 }
  0x48   : > { %489 = vst [vmem:[%s651_s25 + $0x198] sm:$0xff] %v425_v46 }
  0x49   : > { %490 = vst [vmem:[%s651_s25 + $0x1a0] sm:$0xff] %v426_v50 }
  0x4a   : > { %491 = vst [vmem:[%s651_s25 + $0x1a8] sm:$0xff] %v427_v53 }
  0x4b   : > { %492 = vst [vmem:[%s651_s25 + $0x1b0] sm:$0xff] %v428_v56 }
  0x4c   : > { %493 = vst [vmem:[%s651_s25 + $0x1b8] sm:$0xff] %v429_v59 }
  0x4d   : > { %494 = vst [vmem:[%s651_s25 + $0x1c0] sm:$0xff] %v430_v61 }
  0x4e   : > { %495 = vst [vmem:[%s651_s25 + $0x1c8] sm:$0xff] %v431_v63 }
  0x4f   : > { %496 = vst [vmem:[%s651_s25 + $0x1d0] sm:$0xff] %v432_v0 }
  0x50   : > { %497 = vst [vmem:[%s651_s25 + $0x1d8] sm:$0xff] %v433_v4 }
  0x51   : > { %498 = vst [vmem:[%s651_s25 + $0x1e0] sm:$0xff] %v434_v5 }
  0x52   : > { %499 = vst [vmem:[%s651_s25 + $0x1e8] sm:$0xff] %v435_v6 }
  0x53   : > { %500 = vst [vmem:[%s651_s25 + $0x1f0] sm:$0xff] %v436_v7 }
  0x54   : > { %501 = vst [vmem:[%s651_s25 + $0x1f8] sm:$0xff] %v437_v8 }
  0x55 PF: > { %s13_s12 = sadd.s32 1, %s585_s12  }
  0x56   : > { %p10_p4 = scmp.ge.s32.totalorder %s13_s12, 6  }
  0x58   :  { %12 = sbr.rel (!%p10_p4) target bundleno = 1 (0x1), region = 62 }

// kernel: a_call__.49
= control target key start
LH: loop header
LB: loop body
LE: loop exit
PB: predicated region body
PF: predicated region fallthrough
CT: control target
= control target key end

     0   :  { %s1496_s9 = smov 0   ;;  %s1498_s10 = smov 0   ;;  %s1660_s0 = inlined_call_operand.vmem [shape: bf16[2048,128], index: 0, kind: input, shape index: {}]   ;;  %s1661_s1 = inlined_call_operand.vmem [shape: bf16[128,128], index: 1, kind: input, shape index: {}]   ;;  %s1662_s2 = inlined_call_operand.vmem [shape: f32[2048,128], index: 2, kind: output, shape index: {}]  }
   0x1   :  { %s1500_s11 = smov 0  }
   0x2 LB: > { %s31_s12 = sadd.s32 1, %s1475_s10  ;;  %p1202_p0 = scmp.ge.s32.totalorder %s1479_s11, 1  ;;  %s1479_s11 = sphi %s1500_s11, %s12_s11   ;;  %s1475_s10 = sphi %s1498_s10, %s1664_s10   ;;  %s1471_s9 = sphi %s1496_s9, %s1663_s9  }
   0x3   : > { %p33_p1 = scmp.ge.s32.totalorder %s31_s12, 4  ;;  %p155_p2 = scmp.lt.s32.totalorder %s1479_s11, 5 }
   0x5   : > { %s1666_s12 = smov (%p33_p1, %s31_s12), 0  ;;  %p156_p3 = pnand %p1202_p0, %p155_p2 }
   0x6   : > { %s1203_s21 = sshll.u32 (!%p156_p3), %s1471_s9, 6 }
   0x7   : > { %159 = sbr.rel (%p156_p3) target bundleno = 299 (0x12b), region = 28  ;;  %p192_p4 = scmp.lt.s32.totalorder (!%p156_p3), %s1203_s21, 255 }
   0xc   : > { %v1408_v0 = vld [vmem:[%s1661_s1 + $0x38] sm:$0xff]  ;;  %v1407_v1 = vld [vmem:[%s1661_s1 + $0x30] sm:$0xff]  ;;  %v1406_v2 = vld [vmem:[%s1661_s1 + $0x28] sm:$0xff]  ;;  %s1668_s21 = smov (!%p192_p4, %s1203_s21), 255 }
   0xd   : > { %670 = vmatpush.bf16.msra.mxu0 %v1408_v0  ;;  %1409 = vmatpush.bf16.msra.mxu1 %v1408_v0  ;;  %v1405_v3 = vld [vmem:[%s1661_s1 + $0x20] sm:$0xff]  ;;  %v1404_v4 = vld [vmem:[%s1661_s1 + $0x18] sm:$0xff]  ;;  %v1403_v5 = vld [vmem:[%s1661_s1 + $0x10] sm:$0xff]  ;;  %s1204_s28 = sshll.u32 %s1668_s21, 2  ;;  %s1206_s6 = sshll.u32 %s1668_s21, 3 }
   0xe   : > { %1410 = vmatpush.bf16.msra.mxu2 %v1408_v0  ;;  %1411 = vmatpush.bf16.msra.mxu3 %v1408_v0  ;;  %v1402_v6 = vld [vmem:[%s1661_s1 + $0x8] sm:$0xff]  ;;  %v1401_v7 = vld [vmem:[%s1661_s1] sm:$0xff]  ;;  %s1547_s5 = scalar_lea.vmem %s1660_s0, %s1204_s28  ;;  %s1585_s9 = scalar_lea.vmem %s1662_s2, %s1206_s6 }
   0xf   : > { %v1369_v8 = vld [vmem:[%s1547_s5] sm:$0xff]  ;;  %v1370_v12 = vld [vmem:[%s1547_s5 + $0x8] sm:$0xff]  ;;  %v1371_v16 = vld [vmem:[%s1547_s5 + $0x10] sm:$0xff] }
  0x10   : > { %v1377_v9 = vld [vmem:[%s1547_s5 + $0x40] sm:$0xff]  ;;  %v1378_v13 = vld [vmem:[%s1547_s5 + $0x48] sm:$0xff]  ;;  %v1379_v17 = vld [vmem:[%s1547_s5 + $0x50] sm:$0xff] }
  0x11   : > { %671 = vmatpush.bf16.msra.mxu0 %v1407_v1  ;;  %1412 = vmatpush.bf16.msra.mxu1 %v1407_v1  ;;  %v1385_v10 = vld [vmem:[%s1547_s5 + $0x80] sm:$0xff]  ;;  %v1386_v14 = vld [vmem:[%s1547_s5 + $0x88] sm:$0xff]  ;;  %v1387_v18 = vld [vmem:[%s1547_s5 + $0x90] sm:$0xff] }
  0x12   : > { %1413 = vmatpush.bf16.msra.mxu2 %v1407_v1  ;;  %1414 = vmatpush.bf16.msra.mxu3 %v1407_v1  ;;  %v1393_v11 = vld [vmem:[%s1547_s5 + $0xc0] sm:$0xff]  ;;  %v1394_v15 = vld [vmem:[%s1547_s5 + $0xc8] sm:$0xff]  ;;  %v1395_v19 = vld [vmem:[%s1547_s5 + $0xd0] sm:$0xff] }
  0x13   : > { %v1372_v20 = vld [vmem:[%s1547_s5 + $0x18] sm:$0xff]  ;;  %v1373_v24 = vld [vmem:[%s1547_s5 + $0x20] sm:$0xff]  ;;  %v1374_v28 = vld [vmem:[%s1547_s5 + $0x28] sm:$0xff] }
  0x14   : > { %v1380_v21 = vld [vmem:[%s1547_s5 + $0x58] sm:$0xff]  ;;  %v1381_v25 = vld [vmem:[%s1547_s5 + $0x60] sm:$0xff]  ;;  %v1382_v29 = vld [vmem:[%s1547_s5 + $0x68] sm:$0xff] }
  0x15   : > { %672 = vmatpush.bf16.msra.mxu0 %v1406_v2  ;;  %1415 = vmatpush.bf16.msra.mxu1 %v1406_v2  ;;  %v1388_v22 = vld [vmem:[%s1547_s5 + $0x98] sm:$0xff]  ;;  %v1389_v26 = vld [vmem:[%s1547_s5 + $0xa0] sm:$0xff]  ;;  %v1390_v30 = vld [vmem:[%s1547_s5 + $0xa8] sm:$0xff] }
  0x16   : > { %1416 = vmatpush.bf16.msra.mxu2 %v1406_v2  ;;  %1417 = vmatpush.bf16.msra.mxu3 %v1406_v2  ;;  %v1396_v23 = vld [vmem:[%s1547_s5 + $0xd8] sm:$0xff]  ;;  %v1397_v27 = vld [vmem:[%s1547_s5 + $0xe0] sm:$0xff]  ;;  %v1398_v31 = vld [vmem:[%s1547_s5 + $0xe8] sm:$0xff] }
  0x17   : > { %v1375_v32 = vld [vmem:[%s1547_s5 + $0x30] sm:$0xff]  ;;  %v1376_v36 = vld [vmem:[%s1547_s5 + $0x38] sm:$0xff] }
  0x18   : > { %v1383_v33 = vld [vmem:[%s1547_s5 + $0x70] sm:$0xff]  ;;  %v1384_v37 = vld [vmem:[%s1547_s5 + $0x78] sm:$0xff] }
  0x19   : > { %673 = vmatpush.bf16.msra.mxu0 %v1405_v3  ;;  %1418 = vmatpush.bf16.msra.mxu1 %v1405_v3  ;;  %v1391_v34 = vld [vmem:[%s1547_s5 + $0xb0] sm:$0xff]  ;;  %v1392_v38 = vld [vmem:[%s1547_s5 + $0xb8] sm:$0xff] }
  0x1a   : > { %1419 = vmatpush.bf16.msra.mxu2 %v1405_v3  ;;  %1420 = vmatpush.bf16.msra.mxu3 %v1405_v3  ;;  %v1399_v35 = vld [vmem:[%s1547_s5 + $0xf0] sm:$0xff]  ;;  %v1400_v39 = vld [vmem:[%s1547_s5 + $0xf8] sm:$0xff] }
  0x1d   : > { %674 = vmatpush.bf16.msra.mxu0 %v1404_v4  ;;  %1421 = vmatpush.bf16.msra.mxu1 %v1404_v4 }
  0x1e   : > { %1422 = vmatpush.bf16.msra.mxu2 %v1404_v4  ;;  %1423 = vmatpush.bf16.msra.mxu3 %v1404_v4 }
  0x21   : > { %675 = vmatpush.bf16.msra.mxu0 %v1403_v5  ;;  %1424 = vmatpush.bf16.msra.mxu1 %v1403_v5 }
  0x22   : > { %1425 = vmatpush.bf16.msra.mxu2 %v1403_v5  ;;  %1426 = vmatpush.bf16.msra.mxu3 %v1403_v5 }
  0x25   : > { %676 = vmatpush.bf16.msra.mxu0 %v1402_v6  ;;  %1427 = vmatpush.bf16.msra.mxu1 %v1402_v6 }
  0x26   : > { %1428 = vmatpush.bf16.msra.mxu2 %v1402_v6  ;;  %1429 = vmatpush.bf16.msra.mxu3 %v1402_v6 }
  0x29   : > { %677 = vmatpush.bf16.msra.mxu0 %v1401_v7  ;;  %1430 = vmatpush.bf16.msra.mxu1 %v1401_v7 }
  0x2a   : > { %1431 = vmatpush.bf16.msra.mxu2 %v1401_v7  ;;  %1432 = vmatpush.bf16.msra.mxu3 %v1401_v7 }
  0x2c   : > { %678 = vmatmul.bf16.vlgmr.msra.gmra.mxu0 %v1369_v8  ;;  %718 = vmatmul.bf16.vlgmr.msra.gmra.mxu1 %v1377_v9 }
  0x2d   : > { %758 = vmatmul.bf16.vlgmr.msra.gmra.mxu2 %v1385_v10  ;;  %798 = vmatmul.bf16.vlgmr.msra.gmra.mxu3 %v1393_v11 }
  0x3c   : > { %683 = vmatmul.bf16.gmra.mxu0 %v1370_v12  ;;  %723 = vmatmul.bf16.gmra.mxu1 %v1378_v13 }
  0x3d   : > { %763 = vmatmul.bf16.gmra.mxu2 %v1386_v14  ;;  %803 = vmatmul.bf16.gmra.mxu3 %v1394_v15 }
  0x4c   : > { %688 = vmatmul.bf16.gmra.mxu0 %v1371_v16  ;;  %728 = vmatmul.bf16.gmra.mxu1 %v1379_v17 }
  0x4d   : > { %768 = vmatmul.bf16.gmra.mxu2 %v1387_v18  ;;  %808 = vmatmul.bf16.gmra.mxu3 %v1395_v19 }
  0x5c   : > { %693 = vmatmul.bf16.gmra.mxu0 %v1372_v20  ;;  %733 = vmatmul.bf16.gmra.mxu1 %v1380_v21 }
  0x5d   : > { %773 = vmatmul.bf16.gmra.mxu2 %v1388_v22  ;;  %813 = vmatmul.bf16.gmra.mxu3 %v1396_v23 }
  0x6c   : > { %698 = vmatmul.bf16.gmra.mxu0 %v1373_v24  ;;  %738 = vmatmul.bf16.gmra.mxu1 %v1381_v25 }
  0x6d   : > { %778 = vmatmul.bf16.gmra.mxu2 %v1389_v26  ;;  %818 = vmatmul.bf16.gmra.mxu3 %v1397_v27 }
  0x7c   : > { %703 = vmatmul.bf16.gmra.mxu0 %v1374_v28  ;;  %743 = vmatmul.bf16.gmra.mxu1 %v1382_v29 }
  0x7d   : > { %783 = vmatmul.bf16.gmra.mxu2 %v1390_v30  ;;  %823 = vmatmul.bf16.gmra.mxu3 %v1398_v31 }
  0x8c   : > { %708 = vmatmul.bf16.gmra.mxu0 %v1375_v32  ;;  %748 = vmatmul.bf16.gmra.mxu1 %v1383_v33 }
  0x8d   : > { %788 = vmatmul.bf16.gmra.mxu2 %v1391_v34  ;;  %828 = vmatmul.bf16.gmra.mxu3 %v1399_v35 }
  0x9c   : > { %713 = vmatmul.bf16.gmra.mxu0 %v1376_v36  ;;  %753 = vmatmul.bf16.gmra.mxu1 %v1384_v37 }
  0x9d   : > { %793 = vmatmul.bf16.gmra.mxu2 %v1392_v38  ;;  %833 = vmatmul.bf16.gmra.mxu3 %v1400_v39 }
  0xa9   : > { %v679_v40 = vpop.f32.mrf.mxu0  ;;  %v719_v41 = vpop.f32.mrf.mxu1 }
  0xaa   : > { %1034 = vst [vmem:[%s1585_s9] sm:$0xff] %v679_v40 }
  0xab   : > { %1050 = vst [vmem:[%s1585_s9 + $0x80] sm:$0xff] %v719_v41 }
  0xb0   : > { %v759_v42 = vpop.f32.mrf.mxu2  ;;  %v799_v43 = vpop.f32.mrf.mxu3 }
  0xb1   : > { %1066 = vst [vmem:[%s1585_s9 + $0x100] sm:$0xff] %v759_v42  ;;  %v681_v44 = vpop.f32.mrf.mxu0  ;;  %v721_v45 = vpop.f32.mrf.mxu1 }
  0xb2   : > { %1082 = vst [vmem:[%s1585_s9 + $0x180] sm:$0xff] %v799_v43 }
  0xb3   : > { %1035 = vst [vmem:[%s1585_s9 + $0x8] sm:$0xff] %v681_v44 }
  0xb4   : > { %1051 = vst [vmem:[%s1585_s9 + $0x88] sm:$0xff] %v721_v45 }
  0xb8   : > { %v761_v46 = vpop.f32.mrf.mxu2  ;;  %v801_v47 = vpop.f32.mrf.mxu3 }
  0xb9   : > { %1067 = vst [vmem:[%s1585_s9 + $0x108] sm:$0xff] %v761_v46  ;;  %v684_v48 = vpop.f32.mrf.mxu0  ;;  %v724_v49 = vpop.f32.mrf.mxu1 }
  0xba   : > { %1083 = vst [vmem:[%s1585_s9 + $0x188] sm:$0xff] %v801_v47 }
  0xbb   : > { %1036 = vst [vmem:[%s1585_s9 + $0x10] sm:$0xff] %v684_v48 }
  0xbc   : > { %1052 = vst [vmem:[%s1585_s9 + $0x90] sm:$0xff] %v724_v49 }
  0xc0   : > { %v764_v50 = vpop.f32.mrf.mxu2  ;;  %v804_v51 = vpop.f32.mrf.mxu3 }
  0xc1   : > { %1068 = vst [vmem:[%s1585_s9 + $0x110] sm:$0xff] %v764_v50  ;;  %v686_v52 = vpop.f32.mrf.mxu0  ;;  %v726_v53 = vpop.f32.mrf.mxu1 }
  0xc2   : > { %1084 = vst [vmem:[%s1585_s9 + $0x190] sm:$0xff] %v804_v51 }
  0xc3   : > { %1037 = vst [vmem:[%s1585_s9 + $0x18] sm:$0xff] %v686_v52 }
  0xc4   : > { %1053 = vst [vmem:[%s1585_s9 + $0x98] sm:$0xff] %v726_v53 }
  0xc8   : > { %v766_v54 = vpop.f32.mrf.mxu2  ;;  %v806_v55 = vpop.f32.mrf.mxu3 }
  0xc9   : > { %1069 = vst [vmem:[%s1585_s9 + $0x118] sm:$0xff] %v766_v54  ;;  %v689_v56 = vpop.f32.mrf.mxu0  ;;  %v729_v57 = vpop.f32.mrf.mxu1 }
  0xca   : > { %1085 = vst [vmem:[%s1585_s9 + $0x198] sm:$0xff] %v806_v55 }
  0xcb   : > { %1038 = vst [vmem:[%s1585_s9 + $0x20] sm:$0xff] %v689_v56 }
  0xcc   : > { %1054 = vst [vmem:[%s1585_s9 + $0xa0] sm:$0xff] %v729_v57 }
  0xd0   : > { %v769_v58 = vpop.f32.mrf.mxu2  ;;  %v809_v59 = vpop.f32.mrf.mxu3 }
  0xd1   : > { %1070 = vst [vmem:[%s1585_s9 + $0x120] sm:$0xff] %v769_v58  ;;  %v691_v60 = vpop.f32.mrf.mxu0  ;;  %v731_v61 = vpop.f32.mrf.mxu1 }
  0xd2   : > { %1086 = vst [vmem:[%s1585_s9 + $0x1a0] sm:$0xff] %v809_v59 }
  0xd3   : > { %1039 = vst [vmem:[%s1585_s9 + $0x28] sm:$0xff] %v691_v60 }
  0xd4   : > { %1055 = vst [vmem:[%s1585_s9 + $0xa8] sm:$0xff] %v731_v61 }
  0xd8   : > { %v771_v62 = vpop.f32.mrf.mxu2  ;;  %v811_v63 = vpop.f32.mrf.mxu3 }
  0xd9   : > { %1071 = vst [vmem:[%s1585_s9 + $0x128] sm:$0xff] %v771_v62  ;;  %v694_v0 = vpop.f32.mrf.mxu0  ;;  %v734_v1 = vpop.f32.mrf.mxu1 }
  0xda   : > { %1087 = vst [vmem:[%s1585_s9 + $0x1a8] sm:$0xff] %v811_v63 }
  0xdb   : > { %1040 = vst [vmem:[%s1585_s9 + $0x30] sm:$0xff] %v694_v0 }
  0xdc   : > { %1056 = vst [vmem:[%s1585_s9 + $0xb0] sm:$0xff] %v734_v1 }
  0xe0   : > { %v774_v2 = vpop.f32.mrf.mxu2  ;;  %v814_v3 = vpop.f32.mrf.mxu3 }
  0xe1   : > { %1072 = vst [vmem:[%s1585_s9 + $0x130] sm:$0xff] %v774_v2  ;;  %v696_v4 = vpop.f32.mrf.mxu0  ;;  %v736_v5 = vpop.f32.mrf.mxu1 }
  0xe2   : > { %1088 = vst [vmem:[%s1585_s9 + $0x1b0] sm:$0xff] %v814_v3 }
  0xe3   : > { %1041 = vst [vmem:[%s1585_s9 + $0x38] sm:$0xff] %v696_v4 }
  0xe4   : > { %1057 = vst [vmem:[%s1585_s9 + $0xb8] sm:$0xff] %v736_v5 }
  0xe8   : > { %v776_v6 = vpop.f32.mrf.mxu2  ;;  %v816_v7 = vpop.f32.mrf.mxu3 }
  0xe9   : > { %1073 = vst [vmem:[%s1585_s9 + $0x138] sm:$0xff] %v776_v6  ;;  %v699_v8 = vpop.f32.mrf.mxu0  ;;  %v739_v9 = vpop.f32.mrf.mxu1 }
  0xea   : > { %1089 = vst [vmem:[%s1585_s9 + $0x1b8] sm:$0xff] %v816_v7 }
  0xeb   : > { %1042 = vst [vmem:[%s1585_s9 + $0x40] sm:$0xff] %v699_v8 }
  0xec   : > { %1058 = vst [vmem:[%s1585_s9 + $0xc0] sm:$0xff] %v739_v9 }
  0xf0   : > { %v779_v10 = vpop.f32.mrf.mxu2  ;;  %v819_v11 = vpop.f32.mrf.mxu3 }
  0xf1   : > { %1074 = vst [vmem:[%s1585_s9 + $0x140] sm:$0xff] %v779_v10  ;;  %v701_v12 = vpop.f32.mrf.mxu0  ;;  %v741_v13 = vpop.f32.mrf.mxu1 }
  0xf2   : > { %1090 = vst [vmem:[%s1585_s9 + $0x1c0] sm:$0xff] %v819_v11 }
  0xf3   : > { %1043 = vst [vmem:[%s1585_s9 + $0x48] sm:$0xff] %v701_v12 }
  0xf4   : > { %1059 = vst [vmem:[%s1585_s9 + $0xc8] sm:$0xff] %v741_v13 }
  0xf8   : > { %v781_v14 = vpop.f32.mrf.mxu2  ;;  %v821_v15 = vpop.f32.mrf.mxu3 }
  0xf9   : > { %1075 = vst [vmem:[%s1585_s9 + $0x148] sm:$0xff] %v781_v14  ;;  %v704_v16 = vpop.f32.mrf.mxu0  ;;  %v744_v17 = vpop.f32.mrf.mxu1 }
  0xfa   : > { %1091 = vst [vmem:[%s1585_s9 + $0x1c8] sm:$0xff] %v821_v15 }
  0xfb   : > { %1044 = vst [vmem:[%s1585_s9 + $0x50] sm:$0xff] %v704_v16 }
  0xfc   : > { %1060 = vst [vmem:[%s1585_s9 + $0xd0] sm:$0xff] %v744_v17 }
 0x100   : > { %v784_v18 = vpop.f32.mrf.mxu2  ;;  %v824_v19 = vpop.f32.mrf.mxu3 }
 0x101   : > { %1076 = vst [vmem:[%s1585_s9 + $0x150] sm:$0xff] %v784_v18  ;;  %v706_v20 = vpop.f32.mrf.mxu0  ;;  %v746_v21 = vpop.f32.mrf.mxu1 }
 0x102   : > { %1092 = vst [vmem:[%s1585_s9 + $0x1d0] sm:$0xff] %v824_v19 }
 0x103   : > { %1045 = vst [vmem:[%s1585_s9 + $0x58] sm:$0xff] %v706_v20 }
 0x104   : > { %1061 = vst [vmem:[%s1585_s9 + $0xd8] sm:$0xff] %v746_v21 }
 0x108   : > { %v786_v22 = vpop.f32.mrf.mxu2  ;;  %v826_v23 = vpop.f32.mrf.mxu3 }
 0x109   : > { %1077 = vst [vmem:[%s1585_s9 + $0x158] sm:$0xff] %v786_v22  ;;  %v709_v24 = vpop.f32.mrf.mxu0  ;;  %v749_v25 = vpop.f32.mrf.mxu1 }
 0x10a   : > { %1093 = vst [vmem:[%s1585_s9 + $0x1d8] sm:$0xff] %v826_v23 }
 0x10b   : > { %1046 = vst [vmem:[%s1585_s9 + $0x60] sm:$0xff] %v709_v24 }
 0x10c   : > { %1062 = vst [vmem:[%s1585_s9 + $0xe0] sm:$0xff] %v749_v25 }
 0x110   : > { %v789_v26 = vpop.f32.mrf.mxu2  ;;  %v829_v27 = vpop.f32.mrf.mxu3 }
 0x111   : > { %1078 = vst [vmem:[%s1585_s9 + $0x160] sm:$0xff] %v789_v26  ;;  %v711_v28 = vpop.f32.mrf.mxu0  ;;  %v751_v29 = vpop.f32.mrf.mxu1 }
 0x112   : > { %1094 = vst [vmem:[%s1585_s9 + $0x1e0] sm:$0xff] %v829_v27 }
 0x113   : > { %1047 = vst [vmem:[%s1585_s9 + $0x68] sm:$0xff] %v711_v28 }
 0x114   : > { %1063 = vst [vmem:[%s1585_s9 + $0xe8] sm:$0xff] %v751_v29 }
 0x118   : > { %v791_v30 = vpop.f32.mrf.mxu2  ;;  %v831_v31 = vpop.f32.mrf.mxu3 }
 0x119   : > { %1079 = vst [vmem:[%s1585_s9 + $0x168] sm:$0xff] %v791_v30  ;;  %v714_v32 = vpop.f32.mrf.mxu0  ;;  %v754_v33 = vpop.f32.mrf.mxu1 }
 0x11a   : > { %1095 = vst [vmem:[%s1585_s9 + $0x1e8] sm:$0xff] %v831_v31 }
 0x11b   : > { %1048 = vst [vmem:[%s1585_s9 + $0x70] sm:$0xff] %v714_v32 }
 0x11c   : > { %1064 = vst [vmem:[%s1585_s9 + $0xf0] sm:$0xff] %v754_v33 }
 0x120   : > { %v794_v34 = vpop.f32.mrf.mxu2  ;;  %v834_v35 = vpop.f32.mrf.mxu3 }
 0x121   : > { %1080 = vst [vmem:[%s1585_s9 + $0x170] sm:$0xff] %v794_v34  ;;  %v716_v36 = vpop.f32.mrf.mxu0  ;;  %v756_v37 = vpop.f32.mrf.mxu1 }
 0x122   : > { %1096 = vst [vmem:[%s1585_s9 + $0x1f0] sm:$0xff] %v834_v35 }
 0x123   : > { %1049 = vst [vmem:[%s1585_s9 + $0x78] sm:$0xff] %v716_v36 }
 0x124   : > { %1065 = vst [vmem:[%s1585_s9 + $0xf8] sm:$0xff] %v756_v37 }
 0x128   : > { %v796_v38 = vpop.f32.mrf.mxu2  ;;  %v836_v39 = vpop.f32.mrf.mxu3 }
 0x129   : > { %1081 = vst [vmem:[%s1585_s9 + $0x178] sm:$0xff] %v796_v38 }
 0x12a   : > { %1097 = vst [vmem:[%s1585_s9 + $0x1f8] sm:$0xff] %v836_v39 }
 0x12b PF: > { %s12_s11 = sadd.s32 1, %s1479_s11   ;;  %s1663_s9 = smov %s1475_s10 }
 0x12c   : > { %p9_p5 = scmp.ge.s32.totalorder %s12_s11, 6   ;;  %s1664_s10 = smov %s1666_s12 }
 0x12e   :  { %11 = sbr.rel (!%p9_p5) target bundleno = 2 (0x2), region = 69 }

// kernel: a_call__.52
= control target key start
LH: loop header
LB: loop body
LE: loop exit
PB: predicated region body
PF: predicated region fallthrough
CT: control target
= control target key end

     0   :  { %s1688_s9 = smov 0   ;;  %s1690_s10 = smov 0   ;;  %s1852_s0 = inlined_call_operand.vmem [shape: bf16[2048,128], index: 0, kind: input, shape index: {}]   ;;  %s1853_s1 = inlined_call_operand.vmem [shape: bf16[128,128], index: 1, kind: input, shape index: {}]   ;;  %s1854_s2 = inlined_call_operand.vmem [shape: f32[2048,128], index: 2, kind: output, shape index: {}]  }
   0x1   :  { %s1692_s11 = smov 0  }
   0x2 LB: > { %s31_s12 = sadd.s32 1, %s1667_s10  ;;  %p1266_p0 = scmp.ge.s32.totalorder %s1671_s11, 1  ;;  %s1671_s11 = sphi %s1692_s11, %s12_s11   ;;  %s1667_s10 = sphi %s1690_s10, %s1856_s10   ;;  %s1663_s9 = sphi %s1688_s9, %s1855_s9  }
   0x3   : > { %p33_p1 = scmp.ge.s32.totalorder %s31_s12, 4  ;;  %p155_p2 = scmp.lt.s32.totalorder %s1671_s11, 5 }
   0x5   : > { %s1858_s12 = smov (%p33_p1, %s31_s12), 0  ;;  %p156_p3 = pnand %p1266_p0, %p155_p2 }
   0x6   : > { %s1267_s21 = sshll.u32 (!%p156_p3), %s1663_s9, 6 }
   0x7   : > { %159 = sbr.rel (%p156_p3) target bundleno = 306 (0x132), region = 28  ;;  %p192_p4 = scmp.lt.s32.totalorder (!%p156_p3), %s1267_s21, 255 }
   0xc   : > { %v1472_v0 = vld [vmem:[%s1853_s1 + $0x38] sm:$0xff]  ;;  %v1471_v1 = vld [vmem:[%s1853_s1 + $0x30] sm:$0xff]  ;;  %v1470_v2 = vld [vmem:[%s1853_s1 + $0x28] sm:$0xff]  ;;  %s1860_s21 = smov (!%p192_p4, %s1267_s21), 255 }
   0xd   : > { %670 = vmatpush.bf16.msra.mxu0 %v1472_v0  ;;  %1473 = vmatpush.bf16.msra.mxu1 %v1472_v0  ;;  %v1469_v3 = vld [vmem:[%s1853_s1 + $0x20] sm:$0xff]  ;;  %v1468_v4 = vld [vmem:[%s1853_s1 + $0x18] sm:$0xff]  ;;  %v1467_v5 = vld [vmem:[%s1853_s1 + $0x10] sm:$0xff]  ;;  %s1268_s28 = sshll.u32 %s1860_s21, 2  ;;  %s1270_s6 = sshll.u32 %s1860_s21, 3 }
   0xe   : > { %1474 = vmatpush.bf16.msra.mxu2 %v1472_v0  ;;  %1475 = vmatpush.bf16.msra.mxu3 %v1472_v0  ;;  %v1466_v6 = vld [vmem:[%s1853_s1 + $0x8] sm:$0xff]  ;;  %v1465_v7 = vld [vmem:[%s1853_s1] sm:$0xff]  ;;  %s1739_s5 = scalar_lea.vmem %s1852_s0, %s1268_s28  ;;  %s1777_s9 = scalar_lea.vmem %s1854_s2, %s1270_s6 }
   0xf   : > { %v1433_v8 = vld [vmem:[%s1739_s5] sm:$0xff]  ;;  %v1434_v12 = vld [vmem:[%s1739_s5 + $0x8] sm:$0xff]  ;;  %v1435_v16 = vld [vmem:[%s1739_s5 + $0x10] sm:$0xff] }
  0x10   : > { %v1441_v9 = vld [vmem:[%s1739_s5 + $0x40] sm:$0xff]  ;;  %v1442_v13 = vld [vmem:[%s1739_s5 + $0x48] sm:$0xff]  ;;  %v1443_v17 = vld [vmem:[%s1739_s5 + $0x50] sm:$0xff] }
  0x11   : > { %671 = vmatpush.bf16.msra.mxu0 %v1471_v1  ;;  %1476 = vmatpush.bf16.msra.mxu1 %v1471_v1  ;;  %v1449_v10 = vld [vmem:[%s1739_s5 + $0x80] sm:$0xff]  ;;  %v1450_v14 = vld [vmem:[%s1739_s5 + $0x88] sm:$0xff]  ;;  %v1451_v18 = vld [vmem:[%s1739_s5 + $0x90] sm:$0xff] }
  0x12   : > { %1477 = vmatpush.bf16.msra.mxu2 %v1471_v1  ;;  %1478 = vmatpush.bf16.msra.mxu3 %v1471_v1  ;;  %v1457_v11 = vld [vmem:[%s1739_s5 + $0xc0] sm:$0xff]  ;;  %v1458_v15 = vld [vmem:[%s1739_s5 + $0xc8] sm:$0xff]  ;;  %v1459_v19 = vld [vmem:[%s1739_s5 + $0xd0] sm:$0xff] }
  0x13   : > { %v1436_v20 = vld [vmem:[%s1739_s5 + $0x18] sm:$0xff]  ;;  %v1437_v24 = vld [vmem:[%s1739_s5 + $0x20] sm:$0xff]  ;;  %v1438_v28 = vld [vmem:[%s1739_s5 + $0x28] sm:$0xff] }
  0x14   : > { %v1444_v21 = vld [vmem:[%s1739_s5 + $0x58] sm:$0xff]  ;;  %v1445_v25 = vld [vmem:[%s1739_s5 + $0x60] sm:$0xff]  ;;  %v1446_v29 = vld [vmem:[%s1739_s5 + $0x68] sm:$0xff] }
  0x15   : > { %672 = vmatpush.bf16.msra.mxu0 %v1470_v2  ;;  %1479 = vmatpush.bf16.msra.mxu1 %v1470_v2  ;;  %v1452_v22 = vld [vmem:[%s1739_s5 + $0x98] sm:$0xff]  ;;  %v1453_v26 = vld [vmem:[%s1739_s5 + $0xa0] sm:$0xff]  ;;  %v1454_v30 = vld [vmem:[%s1739_s5 + $0xa8] sm:$0xff] }
  0x16   : > { %1480 = vmatpush.bf16.msra.mxu2 %v1470_v2  ;;  %1481 = vmatpush.bf16.msra.mxu3 %v1470_v2  ;;  %v1460_v23 = vld [vmem:[%s1739_s5 + $0xd8] sm:$0xff]  ;;  %v1461_v27 = vld [vmem:[%s1739_s5 + $0xe0] sm:$0xff]  ;;  %v1462_v31 = vld [vmem:[%s1739_s5 + $0xe8] sm:$0xff] }
  0x17   : > { %v1439_v32 = vld [vmem:[%s1739_s5 + $0x30] sm:$0xff]  ;;  %v1440_v36 = vld [vmem:[%s1739_s5 + $0x38] sm:$0xff] }
  0x18   : > { %v1447_v33 = vld [vmem:[%s1739_s5 + $0x70] sm:$0xff]  ;;  %v1448_v37 = vld [vmem:[%s1739_s5 + $0x78] sm:$0xff] }
  0x19   : > { %673 = vmatpush.bf16.msra.mxu0 %v1469_v3  ;;  %1482 = vmatpush.bf16.msra.mxu1 %v1469_v3  ;;  %v1455_v34 = vld [vmem:[%s1739_s5 + $0xb0] sm:$0xff]  ;;  %v1456_v38 = vld [vmem:[%s1739_s5 + $0xb8] sm:$0xff] }
  0x1a   : > { %1483 = vmatpush.bf16.msra.mxu2 %v1469_v3  ;;  %1484 = vmatpush.bf16.msra.mxu3 %v1469_v3  ;;  %v1463_v35 = vld [vmem:[%s1739_s5 + $0xf0] sm:$0xff]  ;;  %v1464_v39 = vld [vmem:[%s1739_s5 + $0xf8] sm:$0xff] }
  0x1d   : > { %674 = vmatpush.bf16.msra.mxu0 %v1468_v4  ;;  %1485 = vmatpush.bf16.msra.mxu1 %v1468_v4 }
  0x1e   : > { %1486 = vmatpush.bf16.msra.mxu2 %v1468_v4  ;;  %1487 = vmatpush.bf16.msra.mxu3 %v1468_v4 }
  0x21   : > { %675 = vmatpush.bf16.msra.mxu0 %v1467_v5  ;;  %1488 = vmatpush.bf16.msra.mxu1 %v1467_v5 }
  0x22   : > { %1489 = vmatpush.bf16.msra.mxu2 %v1467_v5  ;;  %1490 = vmatpush.bf16.msra.mxu3 %v1467_v5 }
  0x25   : > { %676 = vmatpush.bf16.msra.mxu0 %v1466_v6  ;;  %1491 = vmatpush.bf16.msra.mxu1 %v1466_v6 }
  0x26   : > { %1492 = vmatpush.bf16.msra.mxu2 %v1466_v6  ;;  %1493 = vmatpush.bf16.msra.mxu3 %v1466_v6 }
  0x29   : > { %677 = vmatpush.bf16.msra.mxu0 %v1465_v7  ;;  %1494 = vmatpush.bf16.msra.mxu1 %v1465_v7 }
  0x2a   : > { %1495 = vmatpush.bf16.msra.mxu2 %v1465_v7  ;;  %1496 = vmatpush.bf16.msra.mxu3 %v1465_v7 }
  0x2c   : > { %678 = vmatmul.bf16.vlgmr.msra.gmra.mxu0 %v1433_v8  ;;  %718 = vmatmul.bf16.vlgmr.msra.gmra.mxu1 %v1441_v9 }
  0x2d   : > { %758 = vmatmul.bf16.vlgmr.msra.gmra.mxu2 %v1449_v10  ;;  %798 = vmatmul.bf16.vlgmr.msra.gmra.mxu3 %v1457_v11 }
  0x3c   : > { %683 = vmatmul.bf16.gmra.mxu0 %v1434_v12  ;;  %723 = vmatmul.bf16.gmra.mxu1 %v1442_v13 }
  0x3d   : > { %763 = vmatmul.bf16.gmra.mxu2 %v1450_v14  ;;  %803 = vmatmul.bf16.gmra.mxu3 %v1458_v15 }
  0x4c   : > { %688 = vmatmul.bf16.gmra.mxu0 %v1435_v16  ;;  %728 = vmatmul.bf16.gmra.mxu1 %v1443_v17 }
  0x4d   : > { %768 = vmatmul.bf16.gmra.mxu2 %v1451_v18  ;;  %808 = vmatmul.bf16.gmra.mxu3 %v1459_v19 }
  0x5c   : > { %693 = vmatmul.bf16.gmra.mxu0 %v1436_v20  ;;  %733 = vmatmul.bf16.gmra.mxu1 %v1444_v21 }
  0x5d   : > { %773 = vmatmul.bf16.gmra.mxu2 %v1452_v22  ;;  %813 = vmatmul.bf16.gmra.mxu3 %v1460_v23 }
  0x6c   : > { %698 = vmatmul.bf16.gmra.mxu0 %v1437_v24  ;;  %738 = vmatmul.bf16.gmra.mxu1 %v1445_v25 }
  0x6d   : > { %778 = vmatmul.bf16.gmra.mxu2 %v1453_v26  ;;  %818 = vmatmul.bf16.gmra.mxu3 %v1461_v27 }
  0x7c   : > { %703 = vmatmul.bf16.gmra.mxu0 %v1438_v28  ;;  %743 = vmatmul.bf16.gmra.mxu1 %v1446_v29 }
  0x7d   : > { %783 = vmatmul.bf16.gmra.mxu2 %v1454_v30  ;;  %823 = vmatmul.bf16.gmra.mxu3 %v1462_v31 }
  0x8c   : > { %708 = vmatmul.bf16.gmra.mxu0 %v1439_v32  ;;  %748 = vmatmul.bf16.gmra.mxu1 %v1447_v33 }
  0x8d   : > { %788 = vmatmul.bf16.gmra.mxu2 %v1455_v34  ;;  %828 = vmatmul.bf16.gmra.mxu3 %v1463_v35 }
  0x9c   : > { %713 = vmatmul.bf16.gmra.mxu0 %v1440_v36  ;;  %753 = vmatmul.bf16.gmra.mxu1 %v1448_v37 }
  0x9d   : > { %793 = vmatmul.bf16.gmra.mxu2 %v1456_v38  ;;  %833 = vmatmul.bf16.gmra.mxu3 %v1464_v39 }
  0xa9   : > { %v679_v40 = vpop.f32.mrf.mxu0  ;;  %v719_v41 = vpop.f32.mrf.mxu1 }
  0xaa   : > { %1521 = vtanh.f32 %v679_v40 }
  0xab   : > { %1523 = vtanh.f32 %v719_v41 }
  0xb0   : > { %v1522_v42 = vpop.eup %1521  ;;  %v759_v43 = vpop.f32.mrf.mxu2 }
  0xb1   : > { %v799_v44 = vpop.f32.mrf.mxu3  ;;  %v1524_v45 = vpop.eup %1523  ;;  %1098 = vst [vmem:[%s1777_s9] sm:$0xff] %v1522_v42  ;;  %1525 = vtanh.f32 %v759_v43 }
  0xb2   : > { %v681_v46 = vpop.f32.mrf.mxu0  ;;  %v721_v47 = vpop.f32.mrf.mxu1  ;;  %1114 = vst [vmem:[%s1777_s9 + $0x80] sm:$0xff] %v1524_v45  ;;  %1527 = vtanh.f32 %v799_v44 }
  0xb3   : > { %1529 = vtanh.f32 %v681_v46 }
  0xb4   : > { %1531 = vtanh.f32 %v721_v47 }
  0xb7   : > { %v1526_v48 = vpop.eup %1525 }
  0xb8   : > { %v1528_v49 = vpop.eup %1527  ;;  %1130 = vst [vmem:[%s1777_s9 + $0x100] sm:$0xff] %v1526_v48  ;;  %v761_v50 = vpop.f32.mrf.mxu2 }
  0xb9   : > { %v801_v51 = vpop.f32.mrf.mxu3  ;;  %v1530_v52 = vpop.eup %1529  ;;  %1146 = vst [vmem:[%s1777_s9 + $0x180] sm:$0xff] %v1528_v49  ;;  %1533 = vtanh.f32 %v761_v50 }
  0xba   : > { %v684_v53 = vpop.f32.mrf.mxu0  ;;  %v724_v54 = vpop.f32.mrf.mxu1  ;;  %1099 = vst [vmem:[%s1777_s9 + $0x8] sm:$0xff] %v1530_v52  ;;  %1535 = vtanh.f32 %v801_v51 }
  0xbb   : > { %v1532_v55 = vpop.eup %1531  ;;  %1537 = vtanh.f32 %v684_v53 }
  0xbc   : > { %1115 = vst [vmem:[%s1777_s9 + $0x88] sm:$0xff] %v1532_v55  ;;  %1539 = vtanh.f32 %v724_v54 }
  0xbf   : > { %v1534_v56 = vpop.eup %1533 }
  0xc0   : > { %v1536_v57 = vpop.eup %1535  ;;  %1131 = vst [vmem:[%s1777_s9 + $0x108] sm:$0xff] %v1534_v56  ;;  %v764_v58 = vpop.f32.mrf.mxu2 }
  0xc1   : > { %v804_v59 = vpop.f32.mrf.mxu3  ;;  %v1538_v60 = vpop.eup %1537  ;;  %1147 = vst [vmem:[%s1777_s9 + $0x188] sm:$0xff] %v1536_v57  ;;  %1541 = vtanh.f32 %v764_v58 }
  0xc2   : > { %v686_v61 = vpop.f32.mrf.mxu0  ;;  %v726_v62 = vpop.f32.mrf.mxu1  ;;  %1100 = vst [vmem:[%s1777_s9 + $0x10] sm:$0xff] %v1538_v60  ;;  %1543 = vtanh.f32 %v804_v59 }
  0xc3   : > { %v1540_v63 = vpop.eup %1539  ;;  %1545 = vtanh.f32 %v686_v61 }
  0xc4   : > { %1116 = vst [vmem:[%s1777_s9 + $0x90] sm:$0xff] %v1540_v63  ;;  %1547 = vtanh.f32 %v726_v62 }
  0xc7   : > { %v1542_v0 = vpop.eup %1541 }
  0xc8   : > { %v1544_v1 = vpop.eup %1543  ;;  %1132 = vst [vmem:[%s1777_s9 + $0x110] sm:$0xff] %v1542_v0  ;;  %v766_v2 = vpop.f32.mrf.mxu2 }
  0xc9   : > { %v806_v3 = vpop.f32.mrf.mxu3  ;;  %v1546_v4 = vpop.eup %1545  ;;  %1148 = vst [vmem:[%s1777_s9 + $0x190] sm:$0xff] %v1544_v1  ;;  %1549 = vtanh.f32 %v766_v2 }
  0xca   : > { %v689_v5 = vpop.f32.mrf.mxu0  ;;  %v729_v6 = vpop.f32.mrf.mxu1  ;;  %1101 = vst [vmem:[%s1777_s9 + $0x18] sm:$0xff] %v1546_v4  ;;  %1551 = vtanh.f32 %v806_v3 }
  0xcb   : > { %v1548_v7 = vpop.eup %1547  ;;  %1553 = vtanh.f32 %v689_v5 }
  0xcc   : > { %1117 = vst [vmem:[%s1777_s9 + $0x98] sm:$0xff] %v1548_v7  ;;  %1555 = vtanh.f32 %v729_v6 }
  0xcf   : > { %v1550_v8 = vpop.eup %1549 }
  0xd0   : > { %v1552_v9 = vpop.eup %1551  ;;  %1133 = vst [vmem:[%s1777_s9 + $0x118] sm:$0xff] %v1550_v8  ;;  %v769_v10 = vpop.f32.mrf.mxu2 }
  0xd1   : > { %v809_v11 = vpop.f32.mrf.mxu3  ;;  %v1554_v12 = vpop.eup %1553  ;;  %1149 = vst [vmem:[%s1777_s9 + $0x198] sm:$0xff] %v1552_v9  ;;  %1557 = vtanh.f32 %v769_v10 }
  0xd2   : > { %v691_v13 = vpop.f32.mrf.mxu0  ;;  %v731_v14 = vpop.f32.mrf.mxu1  ;;  %1102 = vst [vmem:[%s1777_s9 + $0x20] sm:$0xff] %v1554_v12  ;;  %1559 = vtanh.f32 %v809_v11 }
  0xd3   : > { %v1556_v15 = vpop.eup %1555  ;;  %1561 = vtanh.f32 %v691_v13 }
  0xd4   : > { %1118 = vst [vmem:[%s1777_s9 + $0xa0] sm:$0xff] %v1556_v15  ;;  %1563 = vtanh.f32 %v731_v14 }
  0xd7   : > { %v1558_v16 = vpop.eup %1557 }
  0xd8   : > { %v1560_v17 = vpop.eup %1559  ;;  %1134 = vst [vmem:[%s1777_s9 + $0x120] sm:$0xff] %v1558_v16  ;;  %v771_v18 = vpop.f32.mrf.mxu2 }
  0xd9   : > { %v811_v19 = vpop.f32.mrf.mxu3  ;;  %v1562_v20 = vpop.eup %1561  ;;  %1150 = vst [vmem:[%s1777_s9 + $0x1a0] sm:$0xff] %v1560_v17  ;;  %1565 = vtanh.f32 %v771_v18 }
  0xda   : > { %v694_v21 = vpop.f32.mrf.mxu0  ;;  %v734_v22 = vpop.f32.mrf.mxu1  ;;  %1103 = vst [vmem:[%s1777_s9 + $0x28] sm:$0xff] %v1562_v20  ;;  %1567 = vtanh.f32 %v811_v19 }
  0xdb   : > { %v1564_v23 = vpop.eup %1563  ;;  %1569 = vtanh.f32 %v694_v21 }
  0xdc   : > { %1119 = vst [vmem:[%s1777_s9 + $0xa8] sm:$0xff] %v1564_v23  ;;  %1571 = vtanh.f32 %v734_v22 }
  0xdf   : > { %v1566_v24 = vpop.eup %1565 }
  0xe0   : > { %v1568_v25 = vpop.eup %1567  ;;  %1135 = vst [vmem:[%s1777_s9 + $0x128] sm:$0xff] %v1566_v24  ;;  %v774_v26 = vpop.f32.mrf.mxu2 }
  0xe1   : > { %v814_v27 = vpop.f32.mrf.mxu3  ;;  %v1570_v28 = vpop.eup %1569  ;;  %1151 = vst [vmem:[%s1777_s9 + $0x1a8] sm:$0xff] %v1568_v25  ;;  %1573 = vtanh.f32 %v774_v26 }
  0xe2   : > { %v696_v29 = vpop.f32.mrf.mxu0  ;;  %v736_v30 = vpop.f32.mrf.mxu1  ;;  %1104 = vst [vmem:[%s1777_s9 + $0x30] sm:$0xff] %v1570_v28  ;;  %1575 = vtanh.f32 %v814_v27 }
  0xe3   : > { %v1572_v31 = vpop.eup %1571  ;;  %1577 = vtanh.f32 %v696_v29 }
  0xe4   : > { %1120 = vst [vmem:[%s1777_s9 + $0xb0] sm:$0xff] %v1572_v31  ;;  %1579 = vtanh.f32 %v736_v30 }
  0xe7   : > { %v1574_v32 = vpop.eup %1573 }
  0xe8   : > { %v1576_v33 = vpop.eup %1575  ;;  %1136 = vst [vmem:[%s1777_s9 + $0x130] sm:$0xff] %v1574_v32  ;;  %v776_v34 = vpop.f32.mrf.mxu2 }
  0xe9   : > { %v816_v35 = vpop.f32.mrf.mxu3  ;;  %v1578_v36 = vpop.eup %1577  ;;  %1152 = vst [vmem:[%s1777_s9 + $0x1b0] sm:$0xff] %v1576_v33  ;;  %1581 = vtanh.f32 %v776_v34 }
  0xea   : > { %v699_v37 = vpop.f32.mrf.mxu0  ;;  %v739_v38 = vpop.f32.mrf.mxu1  ;;  %1105 = vst [vmem:[%s1777_s9 + $0x38] sm:$0xff] %v1578_v36  ;;  %1583 = vtanh.f32 %v816_v35 }
  0xeb   : > { %v1580_v39 = vpop.eup %1579  ;;  %1585 = vtanh.f32 %v699_v37 }
  0xec   : > { %1121 = vst [vmem:[%s1777_s9 + $0xb8] sm:$0xff] %v1580_v39  ;;  %1587 = vtanh.f32 %v739_v38 }
  0xef   : > { %v1582_v40 = vpop.eup %1581 }
  0xf0   : > { %v1584_v41 = vpop.eup %1583  ;;  %1137 = vst [vmem:[%s1777_s9 + $0x138] sm:$0xff] %v1582_v40  ;;  %v779_v42 = vpop.f32.mrf.mxu2 }
  0xf1   : > { %v819_v43 = vpop.f32.mrf.mxu3  ;;  %v1586_v44 = vpop.eup %1585  ;;  %1153 = vst [vmem:[%s1777_s9 + $0x1b8] sm:$0xff] %v1584_v41  ;;  %1589 = vtanh.f32 %v779_v42 }
  0xf2   : > { %v701_v45 = vpop.f32.mrf.mxu0  ;;  %v741_v46 = vpop.f32.mrf.mxu1  ;;  %1106 = vst [vmem:[%s1777_s9 + $0x40] sm:$0xff] %v1586_v44  ;;  %1591 = vtanh.f32 %v819_v43 }
  0xf3   : > { %v1588_v47 = vpop.eup %1587  ;;  %1593 = vtanh.f32 %v701_v45 }
  0xf4   : > { %1122 = vst [vmem:[%s1777_s9 + $0xc0] sm:$0xff] %v1588_v47  ;;  %1595 = vtanh.f32 %v741_v46 }
  0xf7   : > { %v1590_v48 = vpop.eup %1589 }
  0xf8   : > { %v1592_v49 = vpop.eup %1591  ;;  %1138 = vst [vmem:[%s1777_s9 + $0x140] sm:$0xff] %v1590_v48  ;;  %v781_v50 = vpop.f32.mrf.mxu2 }
  0xf9   : > { %v821_v51 = vpop.f32.mrf.mxu3  ;;  %v1594_v52 = vpop.eup %1593  ;;  %1154 = vst [vmem:[%s1777_s9 + $0x1c0] sm:$0xff] %v1592_v49  ;;  %1597 = vtanh.f32 %v781_v50 }
  0xfa   : > { %v704_v53 = vpop.f32.mrf.mxu0  ;;  %v744_v54 = vpop.f32.mrf.mxu1  ;;  %1107 = vst [vmem:[%s1777_s9 + $0x48] sm:$0xff] %v1594_v52  ;;  %1599 = vtanh.f32 %v821_v51 }
  0xfb   : > { %v1596_v55 = vpop.eup %1595  ;;  %1601 = vtanh.f32 %v704_v53 }
  0xfc   : > { %1123 = vst [vmem:[%s1777_s9 + $0xc8] sm:$0xff] %v1596_v55  ;;  %1603 = vtanh.f32 %v744_v54 }
  0xff   : > { %v1598_v56 = vpop.eup %1597 }
 0x100   : > { %v1600_v57 = vpop.eup %1599  ;;  %1139 = vst [vmem:[%s1777_s9 + $0x148] sm:$0xff] %v1598_v56  ;;  %v784_v58 = vpop.f32.mrf.mxu2 }
 0x101   : > { %v824_v59 = vpop.f32.mrf.mxu3  ;;  %v1602_v60 = vpop.eup %1601  ;;  %1155 = vst [vmem:[%s1777_s9 + $0x1c8] sm:$0xff] %v1600_v57  ;;  %1605 = vtanh.f32 %v784_v58 }
 0x102   : > { %v706_v61 = vpop.f32.mrf.mxu0  ;;  %v746_v62 = vpop.f32.mrf.mxu1  ;;  %1108 = vst [vmem:[%s1777_s9 + $0x50] sm:$0xff] %v1602_v60  ;;  %1607 = vtanh.f32 %v824_v59 }
 0x103   : > { %v1604_v63 = vpop.eup %1603  ;;  %1609 = vtanh.f32 %v706_v61 }
 0x104   : > { %1124 = vst [vmem:[%s1777_s9 + $0xd0] sm:$0xff] %v1604_v63  ;;  %1611 = vtanh.f32 %v746_v62 }
 0x107   : > { %v1606_v0 = vpop.eup %1605 }
 0x108   : > { %v1608_v1 = vpop.eup %1607  ;;  %1140 = vst [vmem:[%s1777_s9 + $0x150] sm:$0xff] %v1606_v0  ;;  %v786_v2 = vpop.f32.mrf.mxu2 }
 0x109   : > { %v826_v3 = vpop.f32.mrf.mxu3  ;;  %v1610_v4 = vpop.eup %1609  ;;  %1156 = vst [vmem:[%s1777_s9 + $0x1d0] sm:$0xff] %v1608_v1  ;;  %1613 = vtanh.f32 %v786_v2 }
 0x10a   : > { %v709_v5 = vpop.f32.mrf.mxu0  ;;  %v749_v6 = vpop.f32.mrf.mxu1  ;;  %1109 = vst [vmem:[%s1777_s9 + $0x58] sm:$0xff] %v1610_v4  ;;  %1615 = vtanh.f32 %v826_v3 }
 0x10b   : > { %v1612_v7 = vpop.eup %1611  ;;  %1617 = vtanh.f32 %v709_v5 }
 0x10c   : > { %1125 = vst [vmem:[%s1777_s9 + $0xd8] sm:$0xff] %v1612_v7  ;;  %1619 = vtanh.f32 %v749_v6 }
 0x10f   : > { %v1614_v8 = vpop.eup %1613 }
 0x110   : > { %v1616_v9 = vpop.eup %1615  ;;  %1141 = vst [vmem:[%s1777_s9 + $0x158] sm:$0xff] %v1614_v8  ;;  %v789_v10 = vpop.f32.mrf.mxu2 }
 0x111   : > { %v829_v11 = vpop.f32.mrf.mxu3  ;;  %v1618_v12 = vpop.eup %1617  ;;  %1157 = vst [vmem:[%s1777_s9 + $0x1d8] sm:$0xff] %v1616_v9  ;;  %1621 = vtanh.f32 %v789_v10 }
 0x112   : > { %v711_v13 = vpop.f32.mrf.mxu0  ;;  %v751_v14 = vpop.f32.mrf.mxu1  ;;  %1110 = vst [vmem:[%s1777_s9 + $0x60] sm:$0xff] %v1618_v12  ;;  %1623 = vtanh.f32 %v829_v11 }
 0x113   : > { %v1620_v15 = vpop.eup %1619  ;;  %1625 = vtanh.f32 %v711_v13 }
 0x114   : > { %1126 = vst [vmem:[%s1777_s9 + $0xe0] sm:$0xff] %v1620_v15  ;;  %1627 = vtanh.f32 %v751_v14 }
 0x117   : > { %v1622_v16 = vpop.eup %1621 }
 0x118   : > { %v1624_v17 = vpop.eup %1623  ;;  %1142 = vst [vmem:[%s1777_s9 + $0x160] sm:$0xff] %v1622_v16  ;;  %v791_v18 = vpop.f32.mrf.mxu2 }
 0x119   : > { %v831_v19 = vpop.f32.mrf.mxu3  ;;  %v1626_v20 = vpop.eup %1625  ;;  %1158 = vst [vmem:[%s1777_s9 + $0x1e0] sm:$0xff] %v1624_v17  ;;  %1629 = vtanh.f32 %v791_v18 }
 0x11a   : > { %v714_v21 = vpop.f32.mrf.mxu0  ;;  %v754_v22 = vpop.f32.mrf.mxu1  ;;  %1111 = vst [vmem:[%s1777_s9 + $0x68] sm:$0xff] %v1626_v20  ;;  %1631 = vtanh.f32 %v831_v19 }
 0x11b   : > { %v1628_v23 = vpop.eup %1627  ;;  %1633 = vtanh.f32 %v714_v21 }
 0x11c   : > { %1127 = vst [vmem:[%s1777_s9 + $0xe8] sm:$0xff] %v1628_v23  ;;  %1635 = vtanh.f32 %v754_v22 }
 0x11f   : > { %v1630_v24 = vpop.eup %1629 }
 0x120   : > { %v1632_v25 = vpop.eup %1631  ;;  %1143 = vst [vmem:[%s1777_s9 + $0x168] sm:$0xff] %v1630_v24  ;;  %v794_v26 = vpop.f32.mrf.mxu2 }
 0x121   : > { %v834_v27 = vpop.f32.mrf.mxu3  ;;  %v1634_v28 = vpop.eup %1633  ;;  %1159 = vst [vmem:[%s1777_s9 + $0x1e8] sm:$0xff] %v1632_v25  ;;  %1637 = vtanh.f32 %v794_v26 }
 0x122   : > { %v716_v29 = vpop.f32.mrf.mxu0  ;;  %v756_v30 = vpop.f32.mrf.mxu1  ;;  %1112 = vst [vmem:[%s1777_s9 + $0x70] sm:$0xff] %v1634_v28  ;;  %1639 = vtanh.f32 %v834_v27 }
 0x123   : > { %v1636_v31 = vpop.eup %1635  ;;  %1641 = vtanh.f32 %v716_v29 }
 0x124   : > { %1128 = vst [vmem:[%s1777_s9 + $0xf0] sm:$0xff] %v1636_v31  ;;  %1643 = vtanh.f32 %v756_v30 }
 0x127   : > { %v1638_v32 = vpop.eup %1637 }
 0x128   : > { %v1640_v33 = vpop.eup %1639  ;;  %1144 = vst [vmem:[%s1777_s9 + $0x170] sm:$0xff] %v1638_v32  ;;  %v796_v34 = vpop.f32.mrf.mxu2 }
 0x129   : > { %v836_v35 = vpop.f32.mrf.mxu3  ;;  %v1642_v36 = vpop.eup %1641  ;;  %1160 = vst [vmem:[%s1777_s9 + $0x1f0] sm:$0xff] %v1640_v33  ;;  %1645 = vtanh.f32 %v796_v34 }
 0x12a   : > { %v1644_v37 = vpop.eup %1643  ;;  %1113 = vst [vmem:[%s1777_s9 + $0x78] sm:$0xff] %v1642_v36  ;;  %1647 = vtanh.f32 %v836_v35 }
 0x12b   : > { %1129 = vst [vmem:[%s1777_s9 + $0xf8] sm:$0xff] %v1644_v37 }
 0x12f   : > { %v1646_v38 = vpop.eup %1645 }
 0x130   : > { %v1648_v39 = vpop.eup %1647  ;;  %1145 = vst [vmem:[%s1777_s9 + $0x178] sm:$0xff] %v1646_v38 }
 0x131   : > { %1161 = vst [vmem:[%s1777_s9 + $0x1f8] sm:$0xff] %v1648_v39 }
 0x132 PF: > { %s12_s11 = sadd.s32 1, %s1671_s11   ;;  %s1855_s9 = smov %s1667_s10 }
 0x133   : > { %p9_p5 = scmp.ge.s32.totalorder %s12_s11, 6   ;;  %s1856_s10 = smov %s1858_s12 }
 0x135   :  { %11 = sbr.rel (!%p9_p5) target bundleno = 2 (0x2), region = 69 }

</bundles_post_ra>
